<compile_context>
chip_gen: v5e
topology: v5e:2x2
jax: 0.10.0
libtpu: 0.0.40
codegen_flags: <defaults>
</compile_context>

<pallas_src>
import jax
import jax.numpy as jnp
from jax.experimental import pallas as pl
from jax.experimental.pallas import tpu as pltpu

EPS = 1e-5  # nn.BatchNorm2d default eps


def _dw3x3(xpad, wdw):
    """9-tap depthwise 3x3 conv (stride 1) on a spatially pre-padded NHWC tile."""
    H = xpad.shape[1] - 2
    W = xpad.shape[2] - 2
    acc = None
    for kh in range(3):
        row = xpad[:, kh:kh + H, :, :]          # major-dim slice: cheap, hoisted
        for kw in range(3):
            # TODO(synk): kw slice is sublane-misaligned (W is the sublane axis);
            # replace with pltpu.roll / fused-lane shifts when channel counts grow.
            term = row[:, :, kw:kw + W, :] * wdw[kh, kw, :]
            acc = term if acc is None else acc + term
    return acc


# ---------------------------------------------------------------------------
# Pass 1: depthwise conv -> per-tile partial (sum, sum of squares) over (Cin,)
# ---------------------------------------------------------------------------
def _dw_stats_kernel(xpad_ref, wdw_ref, sum_ref, ssq_ref):
    dw = _dw3x3(xpad_ref[...].astype(jnp.float32), wdw_ref[...])
    bn, H, W, Cin = dw.shape
    d2 = dw.reshape(bn * H * W, Cin)
    sum_ref[...] = jnp.sum(d2, axis=0).reshape(1, 1, Cin)
    ssq_ref[...] = jnp.sum(d2 * d2, axis=0).reshape(1, 1, Cin)


# ---------------------------------------------------------------------------
# Pass 2: recompute depthwise, BN1 (scale folded into weights) + ReLU,
#         pointwise matmul (bf16 operands, f32 acc) producing a channel-major
#         lane-dense (Cout, bn*H*W) tile, per-tile BN2 partial stats,
#         bf16 store of the intermediate.
# ---------------------------------------------------------------------------
def _dw_pw_kernel(xpad_ref, wdw_ref, m1_ref, weff_ref, pwt_ref, sum2_ref, ssq2_ref):
    dw = _dw3x3(xpad_ref[...].astype(jnp.float32), wdw_ref[...])   # (bn, H, W, Cin)
    # ReLU((dw - m1) * s1) == ReLU(dw - m1) * s1 (s1 > 0); s1 is folded into weff.
    y = jnp.maximum(dw - m1_ref[...], 0.0)
    bn, H, W, Cin = y.shape
    y2 = y.reshape(bn * H * W, Cin).astype(jnp.bfloat16)
    # out[o, m] = sum_c weff[c, o] * y2[m, c]  -> (Cout, bn*H*W), lane-dense result
    pwt = jnp.einsum('co,mc->om', weff_ref[...], y2,
                     preferred_element_type=jnp.float32)
    # BN2 statistics from the f32 value, before the bf16 cast.
    sum2_ref[...] = jnp.sum(pwt, axis=1).reshape(1, 1, -1)
    ssq2_ref[...] = jnp.sum(pwt * pwt, axis=1).reshape(1, 1, -1)
    pwt_ref[...] = pwt.astype(pwt_ref.dtype)


# ---------------------------------------------------------------------------
# Pass 3: BN2 normalize + ReLU, written directly as NCHW-flat (bn, Cout, H*W).
# ---------------------------------------------------------------------------
def _bn_relu_nchw_kernel(pwt_ref, m2_ref, s2_ref, out_ref):
    x = pwt_ref[...].astype(jnp.float32)                 # (Cout, bn*H*W)
    y = jnp.maximum((x - m2_ref[...]) * s2_ref[...], 0.0)
    bn, _, HW = out_ref.shape
    for b in range(bn):                                  # static trip count
        out_ref[b, :, :] = y[:, b * HW:(b + 1) * HW].astype(out_ref.dtype)


def _vmem_budget():
    """(vmem_limit_bytes, per-tile budget) derived from the local chip."""
    try:
        cap = int(pltpu.get_tpu_info().vmem_capacity_bytes)
    except Exception:
        cap = 64 * 1024 * 1024          # v7x is the smallest VMEM generation
    return (cap * 3) // 4, cap // 3


def _pick_batch_block(N, H, W, Cin, Cout, budget_bytes):
    """Largest divisor of N whose per-tile footprint (tile-padded, double-buffer
    aware, incl. depthwise tap temporaries) fits the budget."""
    r8 = lambda v: ((v + 7) // 8) * 8
    r128 = lambda v: ((v + 127) // 128) * 128
    Hp, Wp = H + 2, W + 2
    per_sample = 4 * (
        2 * Hp * r8(Wp) * r128(Cin)        # double-buffered padded input tile
        + 4 * H * r8(W) * r128(Cin)        # dw taps / relu temporaries
        + 2 * r8(H * W) * r128(Cin)        # y2 for the matmul (+ copy)
        + 3 * r8(H * W) * r128(Cout)       # matmul result / relayouts
    ) + 2 * 2 * r8(Cout) * r128(H * W)     # bf16 pwT output block, double-buffered
    bn = max(1, min(N, budget_bytes // max(per_sample, 1)))
    while N % bn:
        bn -= 1
    return bn


def depthwise_separable_layer(x_nchw, w_dw, w_pw, *, batch_block=None):
    """x_nchw: (N, Cin, H, W)    -- PyTorch NCHW input
       w_dw:   (Cin, 1, 3, 3)    -- depthwise Conv2d weight (groups=Cin, bias=False)
       w_pw:   (Cout, Cin, 1, 1) -- pointwise Conv2d weight (bias=False)
       returns (N, Cout, H, W)"""
    N, Cin, H, W = x_nchw.shape
    Cout = w_pw.shape[0]
    HW = H * W

    vmem_limit, tile_budget = _vmem_budget()
    bn = batch_block if batch_block is not None else _pick_batch_block(
        N, H, W, Cin, Cout, tile_budget)
    if (bn * HW) % 128 != 0:
        bn = N          # lane-dense pwT block then equals the full array extent
    assert N % bn == 0, "batch tile must divide N"
    T = N // bn
    grid = (T,)

    # Boundary glue kept in XLA (layout/pad fused by the compiler).
    x_nhwc = jnp.transpose(x_nchw, (0, 2, 3, 1)).astype(jnp.float32)
    x_pad = jnp.pad(x_nhwc, ((0, 0), (1, 1), (1, 1), (0, 0)))
    wdw = jnp.transpose(w_dw[:, 0, :, :], (1, 2, 0)).astype(jnp.float32)   # (3, 3, Cin)
    wpw = jnp.transpose(w_pw[:, :, 0, 0], (1, 0)).astype(jnp.float32)      # (Cin, Cout)

    Hp, Wp = H + 2, W + 2
    xpad_spec = pl.BlockSpec((bn, Hp, Wp, Cin), lambda i: (i, 0, 0, 0))
    wdw_spec = pl.BlockSpec((3, 3, Cin), lambda i: (0, 0, 0))
    stat_cin_spec = pl.BlockSpec((1, 1, Cin), lambda i: (i, 0, 0))
    stat_cout_spec = pl.BlockSpec((1, 1, Cout), lambda i: (i, 0, 0))

    # -- pass 1: per-tile partial BN1 statistics of the depthwise output -----
    sum1, ssq1 = pl.pallas_call(
        _dw_stats_kernel,
        grid=grid,
        in_specs=[xpad_spec, wdw_spec],
        out_specs=(stat_cin_spec, stat_cin_spec),
        out_shape=(jax.ShapeDtypeStruct((T, 1, Cin), jnp.float32),
                   jax.ShapeDtypeStruct((T, 1, Cin), jnp.float32)),
        compiler_params=pltpu.CompilerParams(
            dimension_semantics=("parallel",), vmem_limit_bytes=vmem_limit),
    )(x_pad, wdw)

    cnt = float(N * H * W)
    mean1 = jnp.sum(sum1, axis=(0, 1)) / cnt               # (Cin,)
    var1 = jnp.sum(ssq1, axis=(0, 1)) / cnt - mean1 * mean1  # biased variance
    s1 = jax.lax.rsqrt(var1 + EPS)
    m1 = mean1.reshape(1, 1, 1, Cin)
    w_eff = (wpw * s1[:, None]).astype(jnp.bfloat16)        # fold BN1 scale; bf16 MXU operand

    # -- pass 2: depthwise -> BN1/ReLU -> pointwise (channel-major, bf16) ----
    pwt, sum2, ssq2 = pl.pallas_call(
        _dw_pw_kernel,
        grid=grid,
        in_specs=[xpad_spec, wdw_spec,
                  pl.BlockSpec((1, 1, 1, Cin), lambda i: (0, 0, 0, 0)),
                  pl.BlockSpec((Cin, Cout), lambda i: (0, 0))],
        out_specs=(pl.BlockSpec((Cout, bn * HW), lambda i: (0, i)),
                   stat_cout_spec, stat_cout_spec),
        out_shape=(jax.ShapeDtypeStruct((Cout, N * HW), jnp.bfloat16),
                   jax.ShapeDtypeStruct((T, 1, Cout), jnp.float32),
                   jax.ShapeDtypeStruct((T, 1, Cout), jnp.float32)),
        compiler_params=pltpu.CompilerParams(
            dimension_semantics=("parallel",), vmem_limit_bytes=vmem_limit),
    )(x_pad, wdw, m1, w_eff)

    mean2 = jnp.sum(sum2, axis=(0, 1)) / cnt
    var2 = jnp.sum(ssq2, axis=(0, 1)) / cnt - mean2 * mean2
    s2 = jax.lax.rsqrt(var2 + EPS).reshape(Cout, 1)
    m2 = mean2.reshape(Cout, 1)

    # -- pass 3: final BN2 normalize + ReLU, NCHW-flat lane-dense output -----
    out_flat = pl.pallas_call(
        _bn_relu_nchw_kernel,
        grid=grid,
        in_specs=[pl.BlockSpec((Cout, bn * HW), lambda i: (0, i)),
                  pl.BlockSpec((Cout, 1), lambda i: (0, 0)),
                  pl.BlockSpec((Cout, 1), lambda i: (0, 0))],
        out_specs=pl.BlockSpec((bn, Cout, HW), lambda i: (i, 0, 0)),
        out_shape=jax.ShapeDtypeStruct((N, Cout, HW), x_nchw.dtype),
        compiler_params=pltpu.CompilerParams(
            dimension_semantics=("parallel",), vmem_limit_bytes=vmem_limit),
    )(pwt, m2, s2)

    return out_flat.reshape(N, Cout, H, W)   # pure metadata reshape


def _reference(x_nchw, w_dw, w_pw):
    """Pure-JAX reference of the PyTorch forward (training-mode BN)."""
    Cin = x_nchw.shape[1]
    dn = ('NCHW', 'OIHW', 'NCHW')
    dw = jax.lax.conv_general_dilated(x_nchw, w_dw, (1, 1), ((1, 1), (1, 1)),
                                      dimension_numbers=dn,
                                      feature_group_count=Cin)
    m1 = dw.mean(axis=(0, 2, 3), keepdims=True)
    v1 = ((dw - m1) ** 2).mean(axis=(0, 2, 3), keepdims=True)
    y = jnp.maximum((dw - m1) / jnp.sqrt(v1 + EPS), 0.0)
    pw = jax.lax.conv_general_dilated(y, w_pw, (1, 1), 'VALID',
                                      dimension_numbers=dn)
    m2 = pw.mean(axis=(0, 2, 3), keepdims=True)
    v2 = ((pw - m2) ** 2).mean(axis=(0, 2, 3), keepdims=True)
    return jnp.maximum((pw - m2) / jnp.sqrt(v2 + EPS), 0.0)


if __name__ == "__main__":
    N, Cin, Cout, H, W = 2, 8, 16, 16, 16
    key = jax.random.PRNGKey(0)
    kx, kd, kp = jax.random.split(key, 3)

    x = jax.random.normal(kx, (N, Cin, H, W), jnp.float32)
    # deterministic synthetic weights (PyTorch Conv2d shapes, bias=False)
    w_dw = jax.random.normal(kd, (Cin, 1, 3, 3), jnp.float32) * 0.2
    w_pw = jax.random.normal(kp, (Cout, Cin, 1, 1), jnp.float32) * 0.2

    # batch_block=1 -> 2-step grid, exercising the per-tile partial-stat path
    # (auto-pick would fit the whole toy batch in a single tile).
    out = jax.block_until_ready(
        depthwise_separable_layer(x, w_dw, w_pw, batch_block=1))
    ref = jax.block_until_ready(_reference(x, w_dw, w_pw))

    assert out.shape == (N, Cout, H, W)
    err = float(jnp.max(jnp.abs(out - ref)))
    # bf16 pw intermediate + bf16 MXU operands -> compare at a bf16 tolerance.
    assert err < 3e-2, err
    print("KERNEL_OK")
</pallas_src>

<mosaic_0001>
module attributes {stable_mosaic.version = 11 : i64} {
  func.func @_dw_stats_kernel(%arg0: i32, %arg1: memref<1x18x18x8xf32, #tpu.memory_space<vmem>>, %arg2: memref<3x3x8xf32, #tpu.memory_space<vmem>>, %arg3: memref<1x1x8xf32, #tpu.memory_space<vmem>>, %arg4: memref<1x1x8xf32, #tpu.memory_space<vmem>>) attributes {dimension_semantics = [#tpu.dimension_semantics<parallel>], iteration_bounds = array<i64: 2>, scalar_prefetch = 0 : i64, scratch_operands = 0 : i64, tpu.core_type = #tpu.core_type<tc>, window_params = [{transform_indices = @transform_0, window_bounds = array<i64: 1, 18, 18, 8>}, {pipeline_mode = #tpu.pipeline_mode<synchronous>, transform_indices = @transform_1, window_bounds = array<i64: 3, 3, 8>}, {transform_indices = @transform_2, window_bounds = array<i64: 1, 1, 8>}, {transform_indices = @transform_3, window_bounds = array<i64: 1, 1, 8>}]} {
    %c0 = arith.constant 0 : index
    %c0_0 = arith.constant 0 : index
    %c0_1 = arith.constant 0 : index
    %c0_2 = arith.constant 0 : index
    %0 = vector.load %arg1[%c0, %c0_0, %c0_1, %c0_2] : memref<1x18x18x8xf32, #tpu.memory_space<vmem>>, vector<1x18x18x8xf32>
    %c0_3 = arith.constant 0 : index
    %c0_4 = arith.constant 0 : index
    %c0_5 = arith.constant 0 : index
    %1 = vector.load %arg2[%c0_3, %c0_4, %c0_5] : memref<3x3x8xf32, #tpu.memory_space<vmem>>, vector<3x3x8xf32>
    %2 = vector.extract_strided_slice %0 {offsets = [0, 0, 0, 0], sizes = [1, 16, 18, 8], strides = [1, 1, 1, 1]} : vector<1x18x18x8xf32> to vector<1x16x18x8xf32>
    %3 = vector.extract_strided_slice %2 {offsets = [0, 0, 0, 0], sizes = [1, 16, 16, 8], strides = [1, 1, 1, 1]} : vector<1x16x18x8xf32> to vector<1x16x16x8xf32>
    %4 = vector.extract_strided_slice %1 {offsets = [0, 0, 0], sizes = [1, 1, 8], strides = [1, 1, 1]} : vector<3x3x8xf32> to vector<1x1x8xf32>
    %5 = vector.shape_cast %4 : vector<1x1x8xf32> to vector<8xf32>
    %6 = vector.shape_cast %5 : vector<8xf32> to vector<1x1x1x8xf32>
    %7 = vector.broadcast %6 : vector<1x1x1x8xf32> to vector<1x16x16x8xf32>
    %8 = arith.mulf %3, %7 : vector<1x16x16x8xf32>
    %9 = vector.extract_strided_slice %2 {offsets = [0, 0, 1, 0], sizes = [1, 16, 16, 8], strides = [1, 1, 1, 1]} : vector<1x16x18x8xf32> to vector<1x16x16x8xf32>
    %10 = vector.extract_strided_slice %1 {offsets = [0, 1, 0], sizes = [1, 1, 8], strides = [1, 1, 1]} : vector<3x3x8xf32> to vector<1x1x8xf32>
    %11 = vector.shape_cast %10 : vector<1x1x8xf32> to vector<8xf32>
    %12 = vector.shape_cast %11 : vector<8xf32> to vector<1x1x1x8xf32>
    %13 = vector.broadcast %12 : vector<1x1x1x8xf32> to vector<1x16x16x8xf32>
    %14 = arith.mulf %9, %13 : vector<1x16x16x8xf32>
    %15 = arith.addf %8, %14 : vector<1x16x16x8xf32>
    %16 = vector.extract_strided_slice %2 {offsets = [0, 0, 2, 0], sizes = [1, 16, 16, 8], strides = [1, 1, 1, 1]} : vector<1x16x18x8xf32> to vector<1x16x16x8xf32>
    %17 = vector.extract_strided_slice %1 {offsets = [0, 2, 0], sizes = [1, 1, 8], strides = [1, 1, 1]} : vector<3x3x8xf32> to vector<1x1x8xf32>
    %18 = vector.shape_cast %17 : vector<1x1x8xf32> to vector<8xf32>
    %19 = vector.shape_cast %18 : vector<8xf32> to vector<1x1x1x8xf32>
    %20 = vector.broadcast %19 : vector<1x1x1x8xf32> to vector<1x16x16x8xf32>
    %21 = arith.mulf %16, %20 : vector<1x16x16x8xf32>
    %22 = arith.addf %15, %21 : vector<1x16x16x8xf32>
    %23 = vector.extract_strided_slice %0 {offsets = [0, 1, 0, 0], sizes = [1, 16, 18, 8], strides = [1, 1, 1, 1]} : vector<1x18x18x8xf32> to vector<1x16x18x8xf32>
    %24 = vector.extract_strided_slice %23 {offsets = [0, 0, 0, 0], sizes = [1, 16, 16, 8], strides = [1, 1, 1, 1]} : vector<1x16x18x8xf32> to vector<1x16x16x8xf32>
    %25 = vector.extract_strided_slice %1 {offsets = [1, 0, 0], sizes = [1, 1, 8], strides = [1, 1, 1]} : vector<3x3x8xf32> to vector<1x1x8xf32>
    %26 = vector.shape_cast %25 : vector<1x1x8xf32> to vector<8xf32>
    %27 = vector.shape_cast %26 : vector<8xf32> to vector<1x1x1x8xf32>
    %28 = vector.broadcast %27 : vector<1x1x1x8xf32> to vector<1x16x16x8xf32>
    %29 = arith.mulf %24, %28 : vector<1x16x16x8xf32>
    %30 = arith.addf %22, %29 : vector<1x16x16x8xf32>
    %31 = vector.extract_strided_slice %23 {offsets = [0, 0, 1, 0], sizes = [1, 16, 16, 8], strides = [1, 1, 1, 1]} : vector<1x16x18x8xf32> to vector<1x16x16x8xf32>
    %32 = vector.extract_strided_slice %1 {offsets = [1, 1, 0], sizes = [1, 1, 8], strides = [1, 1, 1]} : vector<3x3x8xf32> to vector<1x1x8xf32>
    %33 = vector.shape_cast %32 : vector<1x1x8xf32> to vector<8xf32>
    %34 = vector.shape_cast %33 : vector<8xf32> to vector<1x1x1x8xf32>
    %35 = vector.broadcast %34 : vector<1x1x1x8xf32> to vector<1x16x16x8xf32>
    %36 = arith.mulf %31, %35 : vector<1x16x16x8xf32>
    %37 = arith.addf %30, %36 : vector<1x16x16x8xf32>
    %38 = vector.extract_strided_slice %23 {offsets = [0, 0, 2, 0], sizes = [1, 16, 16, 8], strides = [1, 1, 1, 1]} : vector<1x16x18x8xf32> to vector<1x16x16x8xf32>
    %39 = vector.extract_strided_slice %1 {offsets = [1, 2, 0], sizes = [1, 1, 8], strides = [1, 1, 1]} : vector<3x3x8xf32> to vector<1x1x8xf32>
    %40 = vector.shape_cast %39 : vector<1x1x8xf32> to vector<8xf32>
    %41 = vector.shape_cast %40 : vector<8xf32> to vector<1x1x1x8xf32>
    %42 = vector.broadcast %41 : vector<1x1x1x8xf32> to vector<1x16x16x8xf32>
    %43 = arith.mulf %38, %42 : vector<1x16x16x8xf32>
    %44 = arith.addf %37, %43 : vector<1x16x16x8xf32>
    %45 = vector.extract_strided_slice %0 {offsets = [0, 2, 0, 0], sizes = [1, 16, 18, 8], strides = [1, 1, 1, 1]} : vector<1x18x18x8xf32> to vector<1x16x18x8xf32>
    %46 = vector.extract_strided_slice %45 {offsets = [0, 0, 0, 0], sizes = [1, 16, 16, 8], strides = [1, 1, 1, 1]} : vector<1x16x18x8xf32> to vector<1x16x16x8xf32>
    %47 = vector.extract_strided_slice %1 {offsets = [2, 0, 0], sizes = [1, 1, 8], strides = [1, 1, 1]} : vector<3x3x8xf32> to vector<1x1x8xf32>
    %48 = vector.shape_cast %47 : vector<1x1x8xf32> to vector<8xf32>
    %49 = vector.shape_cast %48 : vector<8xf32> to vector<1x1x1x8xf32>
    %50 = vector.broadcast %49 : vector<1x1x1x8xf32> to vector<1x16x16x8xf32>
    %51 = arith.mulf %46, %50 : vector<1x16x16x8xf32>
    %52 = arith.addf %44, %51 : vector<1x16x16x8xf32>
    %53 = vector.extract_strided_slice %45 {offsets = [0, 0, 1, 0], sizes = [1, 16, 16, 8], strides = [1, 1, 1, 1]} : vector<1x16x18x8xf32> to vector<1x16x16x8xf32>
    %54 = vector.extract_strided_slice %1 {offsets = [2, 1, 0], sizes = [1, 1, 8], strides = [1, 1, 1]} : vector<3x3x8xf32> to vector<1x1x8xf32>
    %55 = vector.shape_cast %54 : vector<1x1x8xf32> to vector<8xf32>
    %56 = vector.shape_cast %55 : vector<8xf32> to vector<1x1x1x8xf32>
    %57 = vector.broadcast %56 : vector<1x1x1x8xf32> to vector<1x16x16x8xf32>
    %58 = arith.mulf %53, %57 : vector<1x16x16x8xf32>
    %59 = arith.addf %52, %58 : vector<1x16x16x8xf32>
    %60 = vector.extract_strided_slice %45 {offsets = [0, 0, 2, 0], sizes = [1, 16, 16, 8], strides = [1, 1, 1, 1]} : vector<1x16x18x8xf32> to vector<1x16x16x8xf32>
    %61 = vector.extract_strided_slice %1 {offsets = [2, 2, 0], sizes = [1, 1, 8], strides = [1, 1, 1]} : vector<3x3x8xf32> to vector<1x1x8xf32>
    %62 = vector.shape_cast %61 : vector<1x1x8xf32> to vector<8xf32>
    %63 = vector.shape_cast %62 : vector<8xf32> to vector<1x1x1x8xf32>
    %64 = vector.broadcast %63 : vector<1x1x1x8xf32> to vector<1x16x16x8xf32>
    %65 = arith.mulf %60, %64 : vector<1x16x16x8xf32>
    %66 = arith.addf %59, %65 : vector<1x16x16x8xf32>
    %67 = vector.shape_cast %66 : vector<1x16x16x8xf32> to vector<256x8xf32>
    %cst = arith.constant dense<0.000000e+00> : vector<8xf32>
    %68 = vector.multi_reduction <add>, %67, %cst [0] : vector<256x8xf32> to vector<8xf32>
    %69 = vector.shape_cast %68 : vector<8xf32> to vector<1x1x8xf32>
    %c0_6 = arith.constant 0 : index
    %c0_7 = arith.constant 0 : index
    %c0_8 = arith.constant 0 : index
    %70 = vector.load %arg3[%c0_6, %c0_7, %c0_8] : memref<1x1x8xf32, #tpu.memory_space<vmem>>, vector<1x1x8xf32>
    tpu.vector_store %arg3[%c0_6, %c0_7, %c0_8], %69 {strides = array<i32>} : memref<1x1x8xf32, #tpu.memory_space<vmem>>, vector<1x1x8xf32>,
    %71 = arith.mulf %67, %67 : vector<256x8xf32>
    %cst_9 = arith.constant dense<0.000000e+00> : vector<8xf32>
    %72 = vector.multi_reduction <add>, %71, %cst_9 [0] : vector<256x8xf32> to vector<8xf32>
    %73 = vector.shape_cast %72 : vector<8xf32> to vector<1x1x8xf32>
    %c0_10 = arith.constant 0 : index
    %c0_11 = arith.constant 0 : index
    %c0_12 = arith.constant 0 : index
    %74 = vector.load %arg4[%c0_10, %c0_11, %c0_12] : memref<1x1x8xf32, #tpu.memory_space<vmem>>, vector<1x1x8xf32>
    tpu.vector_store %arg4[%c0_10, %c0_11, %c0_12], %73 {strides = array<i32>} : memref<1x1x8xf32, #tpu.memory_space<vmem>>, vector<1x1x8xf32>,
    return
  }
  func.func @transform_0(%arg0: i32) -> (i32, i32, i32, i32) {
    %c0_i32 = arith.constant 0 : i32
    %c0_i32_0 = arith.constant 0 : i32
    %c0_i32_1 = arith.constant 0 : i32
    %c0_i32_2 = arith.constant 0 : i32
    return %arg0, %c0_i32, %c0_i32_0, %c0_i32_1 : i32, i32, i32, i32
  }
  func.func @transform_1(%arg0: i32) -> (i32, i32, i32) {
    %c0_i32 = arith.constant 0 : i32
    %c0_i32_0 = arith.constant 0 : i32
    %c0_i32_1 = arith.constant 0 : i32
    %c0_i32_2 = arith.constant 0 : i32
    return %c0_i32, %c0_i32_0, %c0_i32_1 : i32, i32, i32
  }
  func.func @transform_2(%arg0: i32) -> (i32, i32, i32) {
    %c0_i32 = arith.constant 0 : i32
    %c0_i32_0 = arith.constant 0 : i32
    %c0_i32_1 = arith.constant 0 : i32
    return %arg0, %c0_i32, %c0_i32_0 : i32, i32, i32
  }
  func.func @transform_3(%arg0: i32) -> (i32, i32, i32) {
    %c0_i32 = arith.constant 0 : i32
    %c0_i32_0 = arith.constant 0 : i32
    %c0_i32_1 = arith.constant 0 : i32
    return %arg0, %c0_i32, %c0_i32_0 : i32, i32, i32
  }
}

</mosaic_0001>

<bundles_post_ra>
// kernel: tpu_custom_call.1
= control target key start
LH: loop header
LB: loop body
LE: loop exit
PB: predicated region body
PF: predicated region fallthrough
CT: control target
= control target key end

     0   :  { %9 = vsyncpa [#allocation3], 0  ;;  %s5506_s0 = inlined_call_operand.vmem [shape: f32[2,18,18,8], index: 0, kind: input, shape index: {}]   ;;  %s5507_s1 = inlined_call_operand.vmem [shape: f32[3,3,8], index: 1, kind: input, shape index: {}]   ;;  %s5508_s2 = inlined_call_operand.hbm [shape: f32[2,1,8], index: 2, kind: output, shape index: {0}]   ;;  %s5509_s3 = inlined_call_operand.hbm [shape: f32[2,1,8], index: 3, kind: output, shape index: {1}]  }
   0x1   :  { %11 = vsyncpa [#allocation3 + $0x1], 0 }
   0x2   :  { %12 = vsyncpa [#allocation5], 0 }
   0x3   :  { %14 = vsyncpa [#allocation5 + $0x1], 0  ;;  %s2349_s12 = smov 0   ;;  %s2351_s13 = smov 0  }
   0x4   :  { %s2353_s14 = smov 0   ;;  %s2355_s15 = smov 0  }
   0x5 LB: > { %s2370_s16 = sadd.s32 4294967295, %s2327_s15   ;;  %s2133_s17 = sadd.s32 4294967294, %s2327_s15   ;;  %s2327_s15 = sphi %s2355_s15, %s6407_s15   ;;  %s2323_s14 = sphi %s2353_s14, %s6406_s14   ;;  %s2319_s13 = sphi %s2351_s13, %s6405_s13   ;;  %s2315_s12 = sphi %s2349_s12, %s6404_s12  }
   0x6   : > { %s2374_s18 = sadd.s32 1, %s2327_s15   ;;  %s74_s19 = sadd.s32 1, %s2323_s14 }
   0x7   : > { %s71_s20 = ssub.s32 %s2327_s15, %s2374_s18  ;;  %p84_p0 = scmp.ne.s32.totalorder %s2323_s14, %s2319_s13 }
   0x8   : > { %p72_p1 = scmp.eq.s32.totalorder %s71_s20, 0  ;;  %p85_p2 = scmp.eq.s32.totalorder %s2370_s16, 1 }
   0x9   : > { %p90_p3 = scmp.ne.s32.totalorder %s2319_s13, %s2315_s12  ;;  %p91_p4 = scmp.eq.s32.totalorder %s2133_s17, 1 }
   0xa   : > { %s2385_s21 = scalar_select %p72_p1, %s2323_s14, %s74_s19  }
   0xb   : > { %p2387_p5 = por %p85_p2, %p84_p0  ;;  %p2391_p6 = por %p91_p4, %p90_p3 }
   0xc   : > { %p2136_p7 = scmp.ge.s32.totalorder %s2327_s15, 1  ;;  %p146_p8 = scmp.lt.s32.totalorder %s2327_s15, 3 }
   0xe   : > { %p147_p9 = pnand %p2136_p7, %p146_p8 }
  0x10   : > { %150 = sbr.rel (%p147_p9) target bundleno = 505 (0x1f9), region = 28 }
  0x15   : > { %p173_p10 = scmp.lt.s32.totalorder %s2370_s16, 1  ;;  %v2402_v0 = vld [vmem:[%s5507_s1] sm:$0x7]  ;;  %vm365_vm0 = vcmask 1046528   ;;  %vm607_vm1 = vcmask 1045504   ;;  %vm1846_vm2 = vcmask 64512   ;;  %s2033_s11 = scalar_lea.hbm %s5508_s2, %s2370_s16 }
  0x16   : > { %5706 = vst [vmem:[#allocation8_spill] sm:$0xff] %v2402_v0  ;;  %v2410_v1 = vperm.slane %v2402_v0, 0  ;;  %v2413_v2 = vperm.slane %v2402_v0, 1  ;;  %s5449_s8 = sand.u32 1, %s2319_s13   ;;  %s2037_s20 = sshll.u32 %s2033_s11, 4  ;;  %vm1916_vm3 = vcmask 57344   ;;  %s2038_s20 = int_to_ptr.hbm [resolvable:$true] %s2037_s20 }
  0x17   : > { %s174_s24 = scalar_select %p173_p10, %s2370_s16, 1 }
  0x18   : > { %s166_s17 = scalar_lea.vmem [#allocation2], %s5449_s8  ;;  %s2253_s29 = scalar_lea.hbm %s5508_s2, 2 }
  0x19   : > { %s2140_s25 = smul.u32 432, %s174_s24  ;;  %s2035_s19 = sshll.u32 %s166_s17, 4  ;;  %s2036_s19 = int_to_ptr.vmem [resolvable:$true] %s2035_s19 }
  0x1a   : > { %s2021_s24 = scalar_lea.sflag [#allocation3], %s5449_s8 }
  0x1b   : > { %s2407_s30 = scalar_lea.vmem %s5506_s0, %s2140_s25  ;;  %s2247_s25 = sshra.s32 %s2038_s20, 4  ;;  %s2248_s25 = int_to_ptr.hbm [resolvable:$true] %s2247_s25 }
  0x1c   : > { %v2416_v3 = vld [vmem:[%s2407_s30] sm:$0xff]  ;;  %v2419_v4 = vld [vmem:[%s2407_s30 + $0x8] sm:$0xff]  ;;  %v2422_v5 = vld [vmem:[%s2407_s30 + $0x10] sm:$0x3]  ;;  %s2249_s26 = scalar_lea.hbm %s2248_s25, 1  ;;  %p2254_p0 = scmp.lt.s32.totalorder %s2248_s25, %s5508_s2 }
  0x1d   : > { %5707 = vst [vmem:[#allocation9_spill] sm:$0xff] %v2416_v3  ;;  %v2425_v6 = vld [vmem:[%s2407_s30 + $0x18] sm:$0xff]  ;;  %v2428_v7 = vld [vmem:[%s2407_s30 + $0x20] sm:$0xff]  ;;  %v2431_v8 = vld [vmem:[%s2407_s30 + $0x28] sm:$0x3]  ;;  %v2441_v11 = vmul.f32 %v2410_v1, %v2416_v3  ;;  %v2445_v12 = vmul.f32 %v2410_v1, %v2419_v4  ;;  %v2449_v13 = vmul.f32 %v2413_v2, %v2416_v3  ;;  %v2453_v14 = vmul.f32 %v2413_v2, %v2419_v4  ;;  %p2250_p11 = scmp.ne.s32.totalorder %s2248_s25, %s2249_s26  ;;  %p2255_p1 = scmp.lt.s32.totalorder %s2253_s29, %s2249_s26 }
  0x1e   : > { %5708 = vst [vmem:[#allocation10_spill] sm:$0xff] %v2419_v4  ;;  %v2434_v9 = vld [vmem:[%s2407_s30 + $0x30] sm:$0xff]  ;;  %v2437_v10 = vld [vmem:[%s2407_s30 + $0x38] sm:$0xff]  ;;  %v2456_v15 = vld [vmem:[%s2407_s30 + $0x40] sm:$0x3]  ;;  %v2463_v17 = vmul.f32 %v2410_v1, %v2425_v6  ;;  %v2467_v18 = vmul.f32 %v2410_v1, %v2428_v7  ;;  %v2471_v19 = vmul.f32 %v2413_v2, %v2422_v5  ;;  %v2475_v20 = vmul.f32 %v2413_v2, %v2425_v6 }
  0x1f   : > { %5709 = vst [vmem:[#allocation11_spill] sm:$0xff] %v2422_v5  ;;  %v2459_v16 = vld [vmem:[%s2407_s30 + $0x48] sm:$0xff]  ;;  %v2478_v21 = vld [vmem:[%s2407_s30 + $0x50] sm:$0xff]  ;;  %v2481_v22 = vld [vmem:[%s2407_s30 + $0x58] sm:$0x3]  ;;  %v2485_v23 = vmul.f32 %v2410_v1, %v2434_v9  ;;  %v2489_v24 = vmul.f32 %v2410_v1, %v2437_v10  ;;  %v2493_v25 = vmul.f32 %v2413_v2, %v2428_v7  ;;  %v2497_v26 = vmul.f32 %v2413_v2, %v2431_v8  ;;  %p2251_p12 = pnand %p2250_p11, %p2387_p5  ;;  %p2256_p2 = por %p2255_p1, %p2254_p0 }
  0x20   : > { %5710 = vst [vmem:[#allocation12_spill] sm:$0xff] %v2425_v6  ;;  %v2500_v27 = vld [vmem:[%s2407_s30 + $0x60] sm:$0xff]  ;;  %v2503_v28 = vld [vmem:[%s2407_s30 + $0x68] sm:$0xff]  ;;  %v2507_v29 = vmul.f32 %v2410_v1, %v2459_v16  ;;  %v2511_v30 = vmul.f32 %v2410_v1, %v2478_v21  ;;  %v2515_v31 = vmul.f32 %v2413_v2, %v2434_v9  ;;  %v2519_v32 = vmul.f32 %v2413_v2, %v2437_v10  ;;  %v2522_v33 = vld [vmem:[%s2407_s30 + $0x70] sm:$0x3] }
  0x21   : > { %5711 = vst [vmem:[#allocation13_spill] sm:$0xff] %v2428_v7  ;;  %v2525_v34 = vld [vmem:[%s2407_s30 + $0x78] sm:$0xff]  ;;  %v2528_v35 = vld [vmem:[%s2407_s30 + $0x80] sm:$0xff]  ;;  %v2532_v36 = vmul.f32 %v2410_v1, %v2500_v27  ;;  %v2536_v37 = vmul.f32 %v2410_v1, %v2503_v28  ;;  %v2540_v38 = vmul.f32 %v2413_v2, %v2456_v15  ;;  %v2544_v39 = vmul.f32 %v2413_v2, %v2459_v16  ;;  %v2547_v40 = vld [vmem:[%s2407_s30 + $0x88] sm:$0x3]  ;;  %p2252_p13 = pneg %p2251_p12 }
  0x22   : > { %5712 = vst [vmem:[#allocation14_spill] sm:$0xff] %v2431_v8  ;;  %v2550_v41 = vld [vmem:[%s2407_s30 + $0x90] sm:$0xff]  ;;  %v2553_v42 = vld [vmem:[%s2407_s30 + $0x98] sm:$0xff]  ;;  %v2557_v43 = vmul.f32 %v2410_v1, %v2525_v34  ;;  %v2561_v44 = vmul.f32 %v2410_v1, %v2528_v35  ;;  %v2565_v45 = vmul.f32 %v2413_v2, %v2478_v21  ;;  %v2569_v46 = vmul.f32 %v2413_v2, %v2481_v22  ;;  %v2572_v47 = vld [vmem:[%s2407_s30 + $0xa8] sm:$0xff] }
  0x23   : > { %5713 = vst [vmem:[#allocation15_spill] sm:$0xff] %v2434_v9  ;;  %v2575_v48 = vld [vmem:[%s2407_s30 + $0xb0] sm:$0xff]  ;;  %v2579_v49 = vmul.f32 %v2410_v1, %v2550_v41  ;;  %v2583_v50 = vmul.f32 %v2410_v1, %v2553_v42  ;;  %v2587_v51 = vmul.f32 %v2413_v2, %v2500_v27  ;;  %v2591_v52 = vmul.f32 %v2413_v2, %v2503_v28  ;;  %v2594_v53 = vld [vmem:[%s2407_s30 + $0xa0] sm:$0x3]  ;;  %v2600_v55 = vld [vmem:[%s2407_s30 + $0xc8] sm:$0xff]  ;;  %p2257_p3 = pnand %p2256_p2, %p2252_p13 }
  0x24   : > { %5714 = vst [vmem:[#allocation16_spill] sm:$0xff] %v2437_v10  ;;  %v2597_v54 = vld [vmem:[%s2407_s30 + $0xc0] sm:$0xff]  ;;  %v2604_v56 = vmul.f32 %v2410_v1, %v2572_v47  ;;  %v2608_v57 = vmul.f32 %v2410_v1, %v2575_v48  ;;  %v2612_v58 = vmul.f32 %v2413_v2, %v2522_v33  ;;  %v2616_v59 = vmul.f32 %v2413_v2, %v2525_v34  ;;  %v2619_v60 = vld [vmem:[%s2407_s30 + $0xb8] sm:$0x3]  ;;  %v2669_v10 = vld [vmem:[%s2407_s30 + $0x108] sm:$0xff] }
  0x25   : > { %5715 = vst [vmem:[#allocation17_spill] sm:$0xff] %v2456_v15  ;;  %v2622_v61 = vld [vmem:[%s2407_s30 + $0xd8] sm:$0xff]  ;;  %v2625_v62 = vld [vmem:[%s2407_s30 + $0xe0] sm:$0xff]  ;;  %v2629_v63 = vmul.f32 %v2410_v1, %v2597_v54  ;;  %v2666_v15 = vld [vmem:[%s2407_s30 + $0xd0] sm:$0x3]  ;;  %v2688_v7 = vmul.f32 %v2413_v2, %v2572_v47  ;;  %v2701_v3 = vmul.f32 %v2410_v1, %v2669_v10  ;;  %v2738_v0 = vmul.f32 %v2413_v2, %v2600_v55 }
  0x26   : > { %5716 = vst [vmem:[#allocation18_spill] sm:$0xff] %v2459_v16  ;;  %v2655_v16 = vmul.f32 %v2410_v1, %v2625_v62  ;;  %v2672_v9 = vld [vmem:[%s2407_s30 + $0x110] sm:$0xff]  ;;  %v2691_v6 = vld [vmem:[%s2407_s30 + $0xe8] sm:$0x3]  ;;  %v2694_v5 = vld [vmem:[%s2407_s30 + $0x120] sm:$0xff] }
  0x27   : > { %5717 = vst [vmem:[#allocation19_spill] sm:$0xff] %v2478_v21  ;;  %v2651_v21 = vmul.f32 %v2410_v1, %v2622_v61  ;;  %v2697_v4 = vld [vmem:[%s2407_s30 + $0x128] sm:$0xff] }
  0x28   : > { %5718 = vst [vmem:[#allocation20_spill] sm:$0xff] %v2481_v22  ;;  %v2647_v22 = vld [vmem:[%s2407_s30 + $0xf8] sm:$0xff] }
  0x29   : > { %5719 = vst [vmem:[#allocation21_spill] sm:$0xff] %v2500_v27  ;;  %v2644_v27 = vld [vmem:[%s2407_s30 + $0xf0] sm:$0xff] }
  0x2a   : > { %5720 = vst [vmem:[#allocation22_spill] sm:$0xff] %v2503_v28  ;;  %v2641_v28 = vmul.f32 %v2413_v2, %v2547_v40  ;;  %v2676_v8 = vmul.f32 %v2410_v1, %v2644_v27 }
  0x2b   : > { %5721 = vst [vmem:[#allocation23_spill] sm:$0xff] %v2511_v30  ;;  %v374_v30 = vrot.slane %v2497_v26, 1  ;;  %v376_v26 = vrot.slane %v2515_v31, 1  ;;  %v382_v31 = vrot.slane %v2565_v45, 1  ;;  %v401_v45 = vrot.slane %v2688_v7, 1 }
  0x2c   : > { %5722 = vst [vmem:[#allocation24_spill] sm:$0xff] %v2522_v33  ;;  %v2633_v33 = vmul.f32 %v2410_v1, %v2600_v55 }
  0x2d   : > { %5723 = vst [vmem:[#allocation25_spill] sm:$0xff] %v2525_v34  ;;  %v2637_v34 = vmul.f32 %v2413_v2, %v2528_v35 }
  0x2e   : > { %5724 = vst [vmem:[#allocation26_spill] sm:$0xff] %v2528_v35  ;;  %v2659_v35 = vmul.f32 %v2413_v2, %v2550_v41 }
  0x2f   : > { %5725 = vst [vmem:[#allocation27_spill] sm:$0xff] %v2532_v36  ;;  %v371_v36 = vrot.slane %v2475_v20, 1 }
  0x30   : > { %5726 = vst [vmem:[#allocation28_spill] sm:$0xff] %v2536_v37  ;;  %v367_v37 = vrot.slane %v2453_v14, 1 }
  0x31   : > { %5727 = vst [vmem:[#allocation29_spill] sm:$0xff] %v2547_v40  ;;  %v2663_v40 = vmul.f32 %v2413_v2, %v2553_v42 }
  0x32   : > { %5728 = vst [vmem:[#allocation30_spill] sm:$0xff] %v2550_v41  ;;  %v2680_v41 = vmul.f32 %v2410_v1, %v2647_v22 }
  0x33   : > { %5729 = vst [vmem:[#allocation31_spill] sm:$0xff] %v2553_v42  ;;  %v2684_v42 = vmul.f32 %v2413_v2, %v2594_v53 }
  0x34   : > { %5730 = vst [vmem:[#allocation32_spill] sm:$0xff] %v2557_v43 }
  0x35   : > { %5731 = vst [vmem:[#allocation33_spill] sm:$0xff] %v2561_v44  ;;  %v2807_v44 = vld [vmem:[%s2407_s30 + $0x148] sm:$0x3] }
  0x36   : > { %5732 = vst [vmem:[#allocation34_spill] sm:$0xff] %v2572_v47  ;;  %v2709_v47 = vmul.f32 %v2413_v2, %v2575_v48 }
  0x37   : > { %5733 = vst [vmem:[#allocation35_spill] sm:$0xff] %v2575_v48  ;;  %v2730_v48 = vmul.f32 %v2410_v1, %v2697_v4 }
  0x38   : > { %5734 = vst [vmem:[#allocation36_spill] sm:$0xff] %v2579_v49 }
  0x39   : > { %5735 = vst [vmem:[#allocation37_spill] sm:$0xff] %v2583_v50  ;;  %v2772_v50 = vld [vmem:[%s2407_s30 + $0x170] sm:$0xff] }
  0x3a   : > { %5736 = vst [vmem:[#allocation38_spill] sm:$0xff] %v2594_v53  ;;  %v2705_v53 = vmul.f32 %v2410_v1, %v2672_v9  ;;  %v2879_v20 = vmul.f32 %v2413_v2, %v2772_v50 }
  0x3b   : > { %5737 = vst [vmem:[#allocation39_spill] sm:$0xff] %v2597_v54 }
  0x3c   : > { %5738 = vst [vmem:[#allocation40_spill] sm:$0xff] %v2600_v55  ;;  %v2763_v55 = vmul.f32 %v2413_v2, %v2622_v61 }
  0x3d   : > { %5739 = vst [vmem:[#allocation41_spill] sm:$0xff] %v2604_v56  ;;  %v2769_v56 = vld [vmem:[%s2407_s30 + $0x168] sm:$0xff] }
  0x3e   : > { %5740 = vst [vmem:[#allocation42_spill] sm:$0xff] %v2608_v57  ;;  %v2766_v57 = vld [vmem:[%s2407_s30 + $0x130] sm:$0x3]  ;;  %v2792_v49 = vmul.f32 %v2410_v1, %v2769_v56 }
  0x3f   : > { %5741 = vst [vmem:[#allocation43_spill] sm:$0xff] %v2619_v60 }
  0x40   : > { %5742 = vst [vmem:[#allocation44_spill] sm:$0xff] %v2622_v61  ;;  %v2788_v61 = vmul.f32 %v2413_v2, %v2691_v6 }
  0x41   : > { %5743 = vst [vmem:[#allocation45_spill] sm:$0xff] %v2625_v62 }
  0x42   : > { %5744 = vst [vmem:[#allocation46_spill] sm:$0xff] %v2629_v63  ;;  %v2747_v63 = vld [vmem:[%s2407_s30 + $0x158] sm:$0xff] }
  0x43   : > { %5745 = vst [vmem:[#allocation47_spill] sm:$0xff] %v2633_v33  ;;  %v2744_v33 = vld [vmem:[%s2407_s30 + $0x150] sm:$0xff] }
  0x44   : > { %5746 = vst [vmem:[#allocation48_spill] sm:$0xff] %v2644_v27 }
  0x45   : > { %5747 = vst [vmem:[#allocation49_spill] sm:$0xff] %v2647_v22 }
  0x46   : > { %5748 = vst [vmem:[#allocation50_spill] sm:$0xff] %v2651_v21  ;;  %v2741_v21 = vld [vmem:[%s2407_s30 + $0x118] sm:$0x3] }
  0x47   : > { %5749 = vst [vmem:[#allocation51_spill] sm:$0xff] %v2655_v16  ;;  %v2719_v16 = vld [vmem:[%s2407_s30 + $0x138] sm:$0xff] }
  0x48   : > { %5750 = vst [vmem:[#allocation52_spill] sm:$0xff] %v2666_v15 }
  0x49   : > { %5751 = vst [vmem:[#allocation53_spill] sm:$0xff] %v2669_v10 }
  0x4a   : > { %5752 = vst [vmem:[#allocation54_spill] sm:$0xff] %v2672_v9 }
  0x4b   : > { %5753 = vst [vmem:[#allocation55_spill] sm:$0xff] %v2676_v8  ;;  %v2716_v8 = vld [vmem:[%s2407_s30 + $0x100] sm:$0x3] }
  0x4c   : > { %5754 = vst [vmem:[#allocation56_spill] sm:$0xff] %v2680_v41  ;;  %v2713_v41 = vmul.f32 %v2413_v2, %v2619_v60  ;;  %v2734_v60 = vmul.f32 %v2413_v2, %v2597_v54  ;;  %v2759_v54 = vmul.f32 %v2413_v2, %v2666_v15  ;;  %v2784_v15 = vmul.f32 %v2413_v2, %v2625_v62 }
  0x4d   : > { %5755 = vst [vmem:[#allocation57_spill] sm:$0xff] %v2691_v6  ;;  %v2804_v62 = vmul.f32 %v2413_v2, %v2647_v22  ;;  %v2811_v6 = vmul.f32 %v2413_v2, %v2716_v8  ;;  %v2826_v22 = vld [vmem:[%s2407_s30 + $0x160] sm:$0x3] }
  0x4e   : > { %5756 = vst [vmem:[#allocation58_spill] sm:$0xff] %v2694_v5  ;;  %v2871_v14 = vmul.f32 %v2413_v2, %v2826_v22  ;;  %v409_v7 = vrot.slane %v2759_v54, 1  ;;  %v412_v54 = vrot.slane %v2784_v15, 1 }
  0x4f   : > { %5757 = vst [vmem:[#allocation59_spill] sm:$0xff] %v2697_v4 }
  0x50   : > { %5758 = vst [vmem:[#allocation60_spill] sm:$0xff] %v2701_v3  ;;  %v2722_v3 = vld [vmem:[%s2407_s30 + $0x140] sm:$0xff] }
  0x51   : > { %5759 = vst [vmem:[#allocation61_spill] sm:$0xff] %v2705_v53  ;;  %v2726_v53 = vmul.f32 %v2410_v1, %v2694_v5  ;;  %v2849_v43 = vmul.f32 %v2413_v2, %v2722_v3 }
  0x52   : > { %5760 = vst [vmem:[#allocation62_spill] sm:$0xff] %v2716_v8  ;;  %v2834_v8 = vmul.f32 %v2413_v2, %v2697_v4  ;;  %v369_v4 = vrot.slane %v2471_v19, 1  ;;  %v2875_v19 = vmul.f32 %v2413_v2, %v2769_v56 }
  0x53   : > { %5761 = vst [vmem:[#allocation63_spill] sm:$0xff] %v2719_v16 }
  0x54   : > { %5762 = vst [vmem:[#allocation64_spill] sm:$0xff] %v2722_v3  ;;  %v427_v15 = vrot.slane %v2834_v8, 1  ;;  %v441_v8 = vrot.slane %v2875_v19, 1 }
  0x55   : > { %5763 = vst [vmem:[#allocation65_spill] sm:$0xff] %v2726_v53  ;;  %v2751_v53 = vmul.f32 %v2410_v1, %v2719_v16 }
  0x56   : > { %5764 = vst [vmem:[#allocation66_spill] sm:$0xff] %v2730_v48  ;;  %v2755_v48 = vmul.f32 %v2410_v1, %v2722_v3  ;;  %v2863_v3 = vmul.f32 %v2413_v2, %v2744_v33 }
  0x57   : > { %5765 = vst [vmem:[#allocation67_spill] sm:$0xff] %v2741_v21 }
  0x58   : > { %5766 = vst [vmem:[#allocation68_spill] sm:$0xff] %v2744_v33 }
  0x59   : > { %5767 = vst [vmem:[#allocation69_spill] sm:$0xff] %v2747_v63 }
  0x5a   : > { %5768 = vst [vmem:[#allocation70_spill] sm:$0xff] %v2751_v53  ;;  %v2776_v53 = vmul.f32 %v2410_v1, %v2744_v33 }
  0x5b   : > { %5769 = vst [vmem:[#allocation71_spill] sm:$0xff] %v2755_v48  ;;  %v2780_v48 = vmul.f32 %v2410_v1, %v2747_v63 }
  0x5c   : > { %5770 = vst [vmem:[#allocation72_spill] sm:$0xff] %v2766_v57 }
  0x5d   : > { %5771 = vst [vmem:[#allocation73_spill] sm:$0xff] %v2769_v56  ;;  %v379_v56 = vrot.slane %v2540_v38, 1  ;;  %v392_v38 = vrot.slane %v2637_v34, 1  ;;  %v406_v34 = vrot.slane %v2734_v60, 1 }
  0x5e   : > { %5772 = vst [vmem:[#allocation74_spill] sm:$0xff] %v2772_v50 }
  0x5f   : > { %5773 = vst [vmem:[#allocation75_spill] sm:$0xff] %v2776_v53  ;;  %v2796_v53 = vmul.f32 %v2410_v1, %v2772_v50  ;;  %v2819_v1 = vmul.f32 %v2413_v2, %v2672_v9  ;;  %v2842_v9 = vmul.f32 %v2413_v2, %v2719_v16  ;;  %v372_v16 = vrot.slane %v2493_v25, 1 }
  0x60   : > { %5774 = vst [vmem:[#allocation76_spill] sm:$0xff] %v2780_v48  ;;  %v2800_v48 = vmul.f32 %v2413_v2, %v2644_v27  ;;  %v2823_v27 = vmul.f32 %v2413_v2, %v2741_v21  ;;  %v2845_v21 = vld [vmem:[%s2407_s30 + $0x178] sm:$0x3] }
  0x61   : > { %5775 = vst [vmem:[#allocation77_spill] sm:$0xff] %v2792_v49  ;;  %v2815_v49 = vmul.f32 %v2413_v2, %v2669_v10  ;;  %v2838_v10 = vmul.f32 %v2413_v2, %v2766_v57  ;;  %v2856_v57 = vmul.f32 %v2413_v2, %v2807_v44  ;;  %v2883_v25 = vmul.f32 %v2413_v2, %v2845_v21 }
  0x62   : > { %5776 = vst [vmem:[#allocation78_spill] sm:$0xff] %v2796_v53  ;;  %v2830_v53 = vmul.f32 %v2413_v2, %v2694_v5  ;;  %v366_v5 = vrot.slane %v2449_v13, 1  ;;  %v2867_v13 = vmul.f32 %v2413_v2, %v2747_v63  ;;  %v377_v63 = vrot.slane %v2519_v32, 1 }
  0x63   : > { %5777 = vst [vmem:[#allocation79_spill] sm:$0xff] %v2807_v44  ;;  %v381_v44 = vrot.slane %v2544_v39, 1  ;;  %v2896_v50 = vsel %vm365_vm0, %v371_v36, %v372_v16  ;;  %v2899_v2 = vsel %vm365_vm0, %v372_v16, %v374_v30  ;;  %v384_v32 = vrot.slane %v2569_v46, 1 }
  0x64   : > { %5778 = vst [vmem:[#allocation80_spill] sm:$0xff] %v2826_v22  ;;  %v2888_v33 = vsel %vm365_vm0, %v366_v5, %v367_v37  ;;  %v2891_v22 = vsel %vm365_vm0, %v367_v37, %v369_v4  ;;  %v386_v5 = vrot.slane %v2587_v51, 1  ;;  %v389_v4 = vrot.slane %v2612_v58, 1 }
  0x65   : > { %5779 = vst [vmem:[#allocation81_spill] sm:$0xff] %v2845_v21  ;;  %v387_v21 = vrot.slane %v2591_v52, 1  ;;  %v391_v37 = vrot.slane %v2616_v59, 1  ;;  %v394_v36 = vrot.slane %v2641_v28, 1  ;;  %v396_v39 = vrot.slane %v2659_v35, 1 }
  0x66   : > { %v397_v16 = vrot.slane %v2663_v40, 1  ;;  %v399_v30 = vrot.slane %v2684_v42, 1  ;;  %v402_v46 = vrot.slane %v2709_v47, 1  ;;  %v404_v51 = vrot.slane %v2713_v41, 1 }
  0x67   : > { %v378_v52 = vsel %vm365_vm0, %v376_v26, %v377_v63  ;;  %v380_v58 = vsel %vm365_vm0, %v377_v63, %v379_v56  ;;  %v407_v28 = vrot.slane %v2738_v0, 1  ;;  %v383_v35 = vsel %vm365_vm0, %v381_v44, %v382_v31 }
  0x68   : > { %v385_v40 = vsel %vm365_vm0, %v382_v31, %v384_v32  ;;  %v388_v42 = vsel %vm365_vm0, %v386_v5, %v387_v21  ;;  %v390_v47 = vsel %vm365_vm0, %v387_v21, %v389_v4  ;;  %v393_v41 = vsel %vm365_vm0, %v391_v37, %v392_v38 }
  0x69   : > { %v395_v59 = vsel %vm365_vm0, %v392_v38, %v394_v36  ;;  %v398_v56 = vsel %vm365_vm0, %v396_v39, %v397_v16  ;;  %v400_v60 = vsel %vm365_vm0, %v397_v16, %v399_v30  ;;  %v403_v0 = vsel %vm365_vm0, %v401_v45, %v402_v46 }
  0x6a   : > { %v405_v44 = vsel %vm365_vm0, %v402_v46, %v404_v51  ;;  %v411_v63 = vrot.slane %v2763_v55, 1  ;;  %v408_v26 = vsel %vm365_vm0, %v406_v34, %v407_v28  ;;  %v414_v21 = vrot.slane %v2788_v61, 1 }
  0x6b   : > { %v416_v31 = vrot.slane %v2800_v48, 1  ;;  %v410_v32 = vsel %vm365_vm0, %v407_v28, %v409_v7  ;;  %v417_v5 = vrot.slane %v2804_v62, 1  ;;  %v419_v4 = vrot.slane %v2811_v6, 1 }
  0x6c   : > { %v421_v37 = vrot.slane %v2815_v49, 1  ;;  %v422_v38 = vrot.slane %v2819_v1, 1  ;;  %v424_v55 = vrot.slane %v2823_v27, 1  ;;  %v426_v36 = vrot.slane %v2830_v53, 1 }
  0x6d   : > { %v429_v61 = vrot.slane %v2838_v10, 1  ;;  %v431_v48 = vrot.slane %v2842_v9, 1  ;;  %v432_v39 = vrot.slane %v2849_v43, 1  ;;  %v434_v62 = vrot.slane %v2856_v57, 1 }
  0x6e   : > { %v413_v6 = vsel %vm365_vm0, %v411_v63, %v412_v54  ;;  %v436_v49 = vrot.slane %v2863_v3, 1  ;;  %v437_v1 = vrot.slane %v2867_v13, 1  ;;  %v439_v27 = vrot.slane %v2871_v14, 1 }
  0x6f   : > { %v415_v53 = vsel %vm365_vm0, %v412_v54, %v414_v21  ;;  %v442_v10 = vrot.slane %v2879_v20, 1  ;;  %v444_v9 = vrot.slane %v2883_v25, 1  ;;  %v418_v43 = vsel %vm365_vm0, %v416_v31, %v417_v5  ;;  %v5783_v54 = vld [vmem:[#allocation27_spill] sm:$0xff] }
  0x70   : > { %v420_v57 = vsel %vm365_vm0, %v417_v5, %v419_v4  ;;  %v423_v16 = vsel %vm365_vm0, %v421_v37, %v422_v38  ;;  %v425_v3 = vsel %vm365_vm0, %v422_v38, %v424_v55  ;;  %v428_v13 = vsel %vm365_vm0, %v426_v36, %v427_v15  ;;  %v5809_v36 = vld [vmem:[#allocation55_spill] sm:$0xff] }
  0x71   : > { %v430_v14 = vsel %vm365_vm0, %v427_v15, %v429_v61  ;;  %v433_v30 = vsel %vm365_vm0, %v431_v48, %v432_v39  ;;  %v435_v19 = vsel %vm365_vm0, %v432_v39, %v434_v62  ;;  %v438_v20 = vsel %vm365_vm0, %v436_v49, %v437_v1  ;;  %v5811_v15 = vld [vmem:[#allocation56_spill] sm:$0xff]  ;;  %v5815_v39 = vld [vmem:[#allocation61_spill] sm:$0xff] }
  0x72   : > { %v440_v25 = vsel %vm365_vm0, %v437_v1, %v439_v27  ;;  %v2967_v45 = vadd.f32 %v2888_v33, %v2441_v11  ;;  %v2971_v46 = vadd.f32 %v2891_v22, %v2445_v12  ;;  %v443_v51 = vsel %vm365_vm0, %v441_v8, %v442_v10  ;;  %v5781_v22 = vld [vmem:[#allocation23_spill] sm:$0xff]  ;;  %v5813_v61 = vld [vmem:[#allocation60_spill] sm:$0xff]  ;;  %v5819_v1 = vld [vmem:[#allocation66_spill] sm:$0xff] }
  0x73   : > { %v445_v34 = vsel %vm365_vm0, %v442_v10, %v444_v9  ;;  %v2977_v28 = vadd.f32 %v2896_v50, %v2463_v17  ;;  %v2981_v7 = vadd.f32 %v2899_v2, %v2467_v18  ;;  %v2984_v63 = vadd.f32 %v378_v52, %v2485_v23  ;;  %v5785_v17 = vld [vmem:[#allocation28_spill] sm:$0xff]  ;;  %v5789_v23 = vld [vmem:[#allocation33_spill] sm:$0xff]  ;;  %v5823_v10 = vld [vmem:[#allocation71_spill] sm:$0xff] }
  0x74   : > { %v2987_v11 = vadd.f32 %v380_v58, %v2489_v24  ;;  %v2990_v12 = vadd.f32 %v383_v35, %v2507_v29  ;;  %v2993_v33 = vadd.f32 %v385_v40, %v5781_v22  ;;  %v2996_v21 = vadd.f32 %v388_v42, %v5783_v54  ;;  %v5787_v18 = vld [vmem:[#allocation32_spill] sm:$0xff]  ;;  %v5793_v29 = vld [vmem:[#allocation37_spill] sm:$0xff]  ;;  %v5797_v42 = vld [vmem:[#allocation42_spill] sm:$0xff] }
  0x75   : > { %v2999_v50 = vadd.f32 %v390_v47, %v5785_v17  ;;  %v3002_v2 = vadd.f32 %v393_v41, %v5787_v18  ;;  %v3005_v52 = vadd.f32 %v395_v59, %v5789_v23  ;;  %v5791_v24 = vld [vmem:[#allocation36_spill] sm:$0xff]  ;;  %v3011_v35 = vadd.f32 %v400_v60, %v5793_v29  ;;  %v5795_v40 = vld [vmem:[#allocation41_spill] sm:$0xff]  ;;  %v5799_v47 = vld [vmem:[#allocation46_spill] sm:$0xff] }
  0x76   : > { %5780 = vst [vmem:[#allocation82_spill] sm:$0xff] %v2990_v12  ;;  %v3008_v58 = vadd.f32 %v398_v56, %v5791_v24  ;;  %v3014_v31 = vadd.f32 %v403_v0, %v5795_v40  ;;  %v3017_v5 = vadd.f32 %v405_v44, %v5797_v42  ;;  %v3020_v4 = vadd.f32 %v408_v26, %v5799_v47  ;;  %v5801_v41 = vld [vmem:[#allocation47_spill] sm:$0xff]  ;;  %v5803_v59 = vld [vmem:[#allocation50_spill] sm:$0xff]  ;;  %v5805_v56 = vld [vmem:[#allocation8_spill] sm:$0xff] }
  0x77   : > { %5782 = vst [vmem:[#allocation23_spill] sm:$0xff] %v2993_v33  ;;  %v3023_v37 = vadd.f32 %v410_v32, %v5801_v41  ;;  %v3026_v38 = vadd.f32 %v413_v6, %v5803_v59  ;;  %v3029_v55 = vperm.slane %v5805_v56, 2  ;;  %v3034_v60 = vld [vmem:[%s5507_s1 + $0x4] sm:$0x7]  ;;  %v5807_v0 = vld [vmem:[#allocation51_spill] sm:$0xff]  ;;  %v3040_v26 = vadd.f32 %v418_v43, %v5809_v36  ;;  %v5817_v6 = vld [vmem:[#allocation65_spill] sm:$0xff] }
  0x78   : > { %5784 = vst [vmem:[#allocation27_spill] sm:$0xff] %v2996_v21  ;;  %v3037_v44 = vadd.f32 %v415_v53, %v5807_v0  ;;  %v3043_v32 = vadd.f32 %v420_v57, %v5811_v15  ;;  %v3046_v48 = vadd.f32 %v423_v16, %v5813_v61  ;;  %v3049_v62 = vadd.f32 %v425_v3, %v5815_v39  ;;  %v5821_v53 = vld [vmem:[#allocation70_spill] sm:$0xff]  ;;  %v5825_v43 = vld [vmem:[#allocation75_spill] sm:$0xff]  ;;  %v5827_v16 = vld [vmem:[#allocation76_spill] sm:$0xff] }
  0x79   : > { %5786 = vst [vmem:[#allocation28_spill] sm:$0xff] %v2999_v50  ;;  %v3052_v49 = vadd.f32 %v428_v13, %v5817_v6  ;;  %v3055_v27 = vadd.f32 %v430_v14, %v5819_v1  ;;  %v3058_v8 = vadd.f32 %v433_v30, %v5821_v53  ;;  %v3061_v9 = vadd.f32 %v435_v19, %v5823_v10  ;;  %v5829_v3 = vld [vmem:[#allocation77_spill] sm:$0xff]  ;;  %v5831_v13 = vld [vmem:[#allocation78_spill] sm:$0xff]  ;;  %v5840_v47 = vld [vmem:[#allocation15_spill] sm:$0xff] }
  0x7a   : > { %5788 = vst [vmem:[#allocation32_spill] sm:$0xff] %v3002_v2  ;;  %v3064_v57 = vadd.f32 %v438_v20, %v5825_v43  ;;  %v3067_v22 = vadd.f32 %v440_v25, %v5827_v16  ;;  %v3070_v54 = vadd.f32 %v443_v51, %v5829_v3  ;;  %v3073_v17 = vadd.f32 %v445_v34, %v5831_v13  ;;  %v5833_v14 = vld [vmem:[#allocation9_spill] sm:$0xff]  ;;  %v5834_v30 = vld [vmem:[#allocation10_spill] sm:$0xff]  ;;  %v5836_v20 = vld [vmem:[#allocation11_spill] sm:$0xff] }
  0x7b   : > { %5790 = vst [vmem:[#allocation33_spill] sm:$0xff] %v3005_v52  ;;  %v511_v18 = vmul.f32 %v3029_v55, %v5833_v14  ;;  %v512_v23 = vmul.f32 %v3029_v55, %v5834_v30  ;;  %v3080_v19 = vperm.slane %v3034_v60, 0  ;;  %v513_v24 = vmul.f32 %v3029_v55, %v5836_v20  ;;  %v5837_v25 = vld [vmem:[#allocation12_spill] sm:$0xff]  ;;  %v5838_v51 = vld [vmem:[#allocation13_spill] sm:$0xff]  ;;  %v5839_v40 = vld [vmem:[#allocation14_spill] sm:$0xff] }
  0x7c   : > { %5792 = vst [vmem:[#allocation36_spill] sm:$0xff] %v3008_v58  ;;  %v3086_v29 = vmul.f32 %v3029_v55, %v5837_v25  ;;  %v3090_v34 = vmul.f32 %v3029_v55, %v5838_v51  ;;  %v3094_v42 = vmul.f32 %v3029_v55, %v5839_v40  ;;  %v3098_v41 = vmul.f32 %v3029_v55, %v5840_v47  ;;  %v5841_v59 = vld [vmem:[#allocation16_spill] sm:$0xff]  ;;  %v5842_v0 = vld [vmem:[#allocation17_spill] sm:$0xff]  ;;  %v5843_v15 = vld [vmem:[#allocation18_spill] sm:$0xff] }
  0x7d   : > { %5794 = vst [vmem:[#allocation37_spill] sm:$0xff] %v3011_v35  ;;  %v3102_v56 = vmul.f32 %v3029_v55, %v5841_v59  ;;  %v3106_v36 = vmul.f32 %v3029_v55, %v5842_v0  ;;  %v3110_v61 = vmul.f32 %v3029_v55, %v5843_v15  ;;  %v5844_v39 = vld [vmem:[#allocation19_spill] sm:$0xff]  ;;  %v5845_v1 = vld [vmem:[#allocation20_spill] sm:$0xff]  ;;  %v5846_v10 = vld [vmem:[#allocation21_spill] sm:$0xff] }
  0x7e   : > { %5796 = vst [vmem:[#allocation41_spill] sm:$0xff] %v3014_v31  ;;  %v3114_v6 = vmul.f32 %v3029_v55, %v5844_v39  ;;  %v3118_v53 = vmul.f32 %v3029_v55, %v5845_v1  ;;  %v3122_v43 = vmul.f32 %v3029_v55, %v5846_v10  ;;  %v5847_v16 = vld [vmem:[#allocation22_spill] sm:$0xff]  ;;  %v5848_v13 = vld [vmem:[#allocation24_spill] sm:$0xff]  ;;  %v5849_v30 = vld [vmem:[#allocation25_spill] sm:$0xff]  ;;  %v613_v50 = vrot.slane %v3086_v29, 2 }
  0x7f   : > { %5798 = vst [vmem:[#allocation42_spill] sm:$0xff] %v3017_v5  ;;  %v3126_v3 = vmul.f32 %v3029_v55, %v5847_v16  ;;  %v3130_v14 = vmul.f32 %v3029_v55, %v5848_v13  ;;  %v3134_v20 = vmul.f32 %v3029_v55, %v5849_v30  ;;  %v5850_v0 = vld [vmem:[#allocation26_spill] sm:$0xff]  ;;  %v5851_v40 = vld [vmem:[#allocation29_spill] sm:$0xff]  ;;  %v5853_v39 = vld [vmem:[#allocation31_spill] sm:$0xff]  ;;  %v616_v21 = vrot.slane %v3094_v42, 2 }
  0x80   : > { %5800 = vst [vmem:[#allocation46_spill] sm:$0xff] %v3020_v4  ;;  %v3138_v1 = vmul.f32 %v3029_v55, %v5850_v0  ;;  %v5852_v10 = vld [vmem:[#allocation30_spill] sm:$0xff]  ;;  %v3150_v13 = vmul.f32 %v3029_v55, %v5853_v39  ;;  %v5856_v47 = vld [vmem:[#allocation35_spill] sm:$0xff]  ;;  %v5859_v25 = vld [vmem:[#allocation40_spill] sm:$0xff]  ;;  %v618_v33 = vrot.slane %v3098_v41, 2  ;;  %v621_v12 = vrot.slane %v3106_v36, 2 }
  0x81   : > { %5802 = vst [vmem:[#allocation47_spill] sm:$0xff] %v3023_v37  ;;  %v3146_v16 = vmul.f32 %v3029_v55, %v5852_v10  ;;  %v5854_v15 = vld [vmem:[#allocation38_spill] sm:$0xff]  ;;  %v5857_v51 = vld [vmem:[#allocation43_spill] sm:$0xff]  ;;  %v609_v37 = vrot.slane %v512_v23, 2  ;;  %v5878_v23 = vld [vmem:[#allocation80_spill] sm:$0xff]  ;;  %v624_v29 = vrot.slane %v3114_v6, 2 }
  0x82   : > { %5804 = vst [vmem:[#allocation50_spill] sm:$0xff] %v3026_v38  ;;  %v3154_v30 = vmul.f32 %v3029_v55, %v5854_v15  ;;  %v5855_v59 = vld [vmem:[#allocation34_spill] sm:$0xff]  ;;  %v3166_v10 = vmul.f32 %v3029_v55, %v5857_v51  ;;  %v3174_v15 = vmul.f32 %v3029_v55, %v5859_v25  ;;  %v608_v38 = vrot.slane %v511_v18, 2  ;;  %v5873_v4 = vld [vmem:[#allocation63_spill] sm:$0xff]  ;;  %v5881_v2 = vld [vmem:[#allocation81_spill] sm:$0xff] }
  0x83   : > { %5806 = vst [vmem:[#allocation8_spill] sm:$0xff] %v3034_v60  ;;  %v3142_v60 = vmul.f32 %v3029_v55, %v5851_v40  ;;  %v3158_v0 = vmul.f32 %v3029_v55, %v5855_v59  ;;  %v3162_v40 = vmul.f32 %v3029_v55, %v5856_v47  ;;  %v3230_v5 = vmul.f32 %v3029_v55, %v5873_v4  ;;  %v5879_v4 = vld [vmem:[#allocation73_spill] sm:$0xff]  ;;  %v5880_v52 = vld [vmem:[#allocation74_spill] sm:$0xff] }
  0x84   : > { %5808 = vst [vmem:[#allocation51_spill] sm:$0xff] %v3037_v44  ;;  %v5872_v44 = vld [vmem:[#allocation72_spill] sm:$0xff]  ;;  %v628_v42 = vrot.slane %v3122_v43, 2  ;;  %v639_v36 = vrot.slane %v3150_v13, 2  ;;  %v646_v43 = vrot.slane %v3166_v10, 2 }
  0x85   : > { %5810 = vst [vmem:[#allocation55_spill] sm:$0xff] %v3040_v26  ;;  %v5871_v26 = vld [vmem:[#allocation59_spill] sm:$0xff]  ;;  %v636_v41 = vrot.slane %v3142_v60, 2  ;;  %v643_v6 = vrot.slane %v3158_v0, 2  ;;  %v649_v60 = vrot.slane %v3174_v15, 2 }
  0x86   : > { %5812 = vst [vmem:[#allocation56_spill] sm:$0xff] %v3043_v32  ;;  %v5870_v32 = vld [vmem:[#allocation58_spill] sm:$0xff] }
  0x87   : > { %5814 = vst [vmem:[#allocation60_spill] sm:$0xff] %v3046_v48  ;;  %v5869_v48 = vld [vmem:[#allocation67_spill] sm:$0xff] }
  0x88   : > { %5816 = vst [vmem:[#allocation61_spill] sm:$0xff] %v3049_v62  ;;  %v5868_v62 = vld [vmem:[#allocation54_spill] sm:$0xff] }
  0x89   : > { %5818 = vst [vmem:[#allocation65_spill] sm:$0xff] %v3052_v49  ;;  %v5867_v49 = vld [vmem:[#allocation53_spill] sm:$0xff] }
  0x8a   : > { %5820 = vst [vmem:[#allocation66_spill] sm:$0xff] %v3055_v27  ;;  %v5866_v27 = vld [vmem:[#allocation62_spill] sm:$0xff] }
  0x8b   : > { %5822 = vst [vmem:[#allocation70_spill] sm:$0xff] %v3058_v8  ;;  %v5865_v8 = vld [vmem:[#allocation49_spill] sm:$0xff] }
  0x8c   : > { %5824 = vst [vmem:[#allocation71_spill] sm:$0xff] %v3061_v9  ;;  %v5864_v9 = vld [vmem:[#allocation48_spill] sm:$0xff] }
  0x8d   : > { %5826 = vst [vmem:[#allocation75_spill] sm:$0xff] %v3064_v57  ;;  %v5863_v57 = vld [vmem:[#allocation57_spill] sm:$0xff]  ;;  %v3194_v25 = vmul.f32 %v3029_v55, %v5864_v9  ;;  %v3214_v9 = vmul.f32 %v3029_v55, %v5869_v48  ;;  %v5874_v48 = vld [vmem:[#allocation64_spill] sm:$0xff] }
  0x8e   : > { %5828 = vst [vmem:[#allocation76_spill] sm:$0xff] %v3067_v22  ;;  %v5862_v22 = vld [vmem:[#allocation45_spill] sm:$0xff]  ;;  %v3234_v31 = vmul.f32 %v3029_v55, %v5874_v48  ;;  %v3254_v48 = vmul.f32 %v3029_v55, %v5879_v4 }
  0x8f   : > { %5830 = vst [vmem:[#allocation77_spill] sm:$0xff] %v3070_v54  ;;  %v5861_v54 = vld [vmem:[#allocation44_spill] sm:$0xff]  ;;  %v3186_v51 = vmul.f32 %v3029_v55, %v5862_v22  ;;  %v3206_v22 = vmul.f32 %v3029_v55, %v5867_v49  ;;  %v3226_v49 = vmul.f32 %v3029_v55, %v5872_v44  ;;  %v5877_v44 = vld [vmem:[#allocation69_spill] sm:$0xff] }
  0x90   : > { %5832 = vst [vmem:[#allocation78_spill] sm:$0xff] %v3073_v17  ;;  %v5860_v17 = vld [vmem:[#allocation52_spill] sm:$0xff]  ;;  %v3182_v47 = vmul.f32 %v3029_v55, %v5861_v54  ;;  %v3202_v54 = vmul.f32 %v3029_v55, %v5866_v27  ;;  %v3222_v27 = vmul.f32 %v3029_v55, %v5871_v26  ;;  %v3246_v18 = vmul.f32 %v3029_v55, %v5877_v44 }
  0x91   : > { %5835 = vst [vmem:[#allocation9_spill] sm:$0xff] %v3080_v19  ;;  %v5858_v19 = vld [vmem:[#allocation39_spill] sm:$0xff]  ;;  %v3178_v59 = vmul.f32 %v3029_v55, %v5860_v17  ;;  %v3198_v17 = vmul.f32 %v3029_v55, %v5865_v8  ;;  %v3218_v8 = vmul.f32 %v3029_v55, %v5870_v32  ;;  %v5876_v26 = vld [vmem:[#allocation68_spill] sm:$0xff]  ;;  %v614_v44 = vrot.slane %v3090_v34, 2 }
  0x92   : > { %v3170_v39 = vmul.f32 %v3029_v55, %v5858_v19  ;;  %v3190_v19 = vmul.f32 %v3029_v55, %v5863_v57  ;;  %v3210_v57 = vmul.f32 %v3029_v55, %v5868_v62  ;;  %v611_v62 = vrot.slane %v513_v24, 2  ;;  %v5875_v32 = vld [vmem:[#allocation79_spill] sm:$0xff] }
  0x93   : > { %v3238_v35 = vmul.f32 %v3029_v55, %v5875_v32  ;;  %v3242_v58 = vmul.f32 %v3029_v55, %v5876_v26  ;;  %v3250_v24 = vmul.f32 %v3029_v55, %v5878_v23  ;;  %v3258_v32 = vmul.f32 %v3029_v55, %v5880_v52 }
  0x94   : > { %v3262_v26 = vmul.f32 %v3029_v55, %v5881_v2  ;;  %v3268_v23 = vsel %vm607_vm1, %v608_v38, %v609_v37  ;;  %v3271_v4 = vsel %vm607_vm1, %v609_v37, %v611_v62  ;;  %v619_v52 = vrot.slane %v3102_v56, 2 }
  0x95   : > { %v623_v55 = vrot.slane %v3110_v61, 2  ;;  %v626_v34 = vrot.slane %v3118_v53, 2  ;;  %v629_v38 = vrot.slane %v3126_v3, 2  ;;  %v631_v2 = vrot.slane %v3130_v14, 2 }
  0x96   : > { %v633_v37 = vrot.slane %v3134_v20, 2  ;;  %v634_v62 = vrot.slane %v3138_v1, 2  ;;  %v638_v56 = vrot.slane %v3146_v16, 2  ;;  %v641_v61 = vrot.slane %v3154_v30, 2 }
  0x97   : > { %v644_v53 = vrot.slane %v3162_v40, 2  ;;  %v615_v3 = vsel %vm607_vm1, %v613_v50, %v614_v44  ;;  %v617_v14 = vsel %vm607_vm1, %v614_v44, %v616_v21  ;;  %v648_v1 = vrot.slane %v3170_v39, 2 }
  0x98   : > { %v620_v16 = vsel %vm607_vm1, %v618_v33, %v619_v52  ;;  %v622_v13 = vsel %vm607_vm1, %v619_v52, %v621_v12  ;;  %v625_v30 = vsel %vm607_vm1, %v623_v55, %v624_v29  ;;  %v627_v0 = vsel %vm607_vm1, %v624_v29, %v626_v34 }
  0x99   : > { %v630_v40 = vsel %vm607_vm1, %v628_v42, %v629_v38  ;;  %v632_v10 = vsel %vm607_vm1, %v629_v38, %v631_v2  ;;  %v635_v50 = vsel %vm607_vm1, %v633_v37, %v634_v62  ;;  %v637_v21 = vsel %vm607_vm1, %v634_v62, %v636_v41 }
  0x9a   : > { %v640_v44 = vsel %vm607_vm1, %v638_v56, %v639_v36  ;;  %v642_v15 = vsel %vm607_vm1, %v639_v36, %v641_v61  ;;  %v645_v33 = vsel %vm607_vm1, %v643_v6, %v644_v53  ;;  %v647_v12 = vsel %vm607_vm1, %v644_v53, %v646_v43 }
  0x9b   : > { %v650_v52 = vsel %vm607_vm1, %v648_v1, %v649_v60  ;;  %v651_v39 = vrot.slane %v3178_v59, 2  ;;  %v653_v20 = vrot.slane %v3182_v47, 2  ;;  %v654_v2 = vrot.slane %v3186_v51, 2 }
  0x9c   : > { %v656_v55 = vrot.slane %v3190_v19, 2  ;;  %v658_v29 = vrot.slane %v3194_v25, 2  ;;  %v659_v34 = vrot.slane %v3198_v17, 2  ;;  %v661_v42 = vrot.slane %v3202_v54, 2 }
  0x9d   : > { %v663_v38 = vrot.slane %v3206_v22, 2  ;;  %v664_v37 = vrot.slane %v3210_v57, 2  ;;  %v666_v62 = vrot.slane %v3214_v9, 2  ;;  %v668_v59 = vrot.slane %v3218_v8, 2 }
  0x9e   : > { %v669_v47 = vrot.slane %v3222_v27, 2  ;;  %v671_v51 = vrot.slane %v3226_v49, 2  ;;  %v673_v19 = vrot.slane %v3230_v5, 2  ;;  %v674_v25 = vrot.slane %v3234_v31, 2 }
  0x9f   : > { %v676_v17 = vrot.slane %v3238_v35, 2  ;;  %v678_v54 = vrot.slane %v3242_v58, 2  ;;  %v679_v22 = vrot.slane %v3246_v18, 2  ;;  %v681_v57 = vrot.slane %v3250_v24, 2 }
  0xa0   : > { %v652_v9 = vsel %vm607_vm1, %v649_v60, %v651_v39  ;;  %v683_v8 = vrot.slane %v3254_v48, 2  ;;  %v684_v27 = vrot.slane %v3258_v32, 2  ;;  %v686_v49 = vrot.slane %v3262_v26, 2 }
  0xa1   : > { %v655_v5 = vsel %vm607_vm1, %v653_v20, %v654_v2  ;;  %v657_v31 = vsel %vm607_vm1, %v654_v2, %v656_v55  ;;  %v660_v35 = vsel %vm607_vm1, %v658_v29, %v659_v34  ;;  %v662_v58 = vsel %vm607_vm1, %v659_v34, %v661_v42  ;;  %v5882_v2 = vld [vmem:[#allocation82_spill] sm:$0xff] }
  0xa2   : > { %v665_v18 = vsel %vm607_vm1, %v663_v38, %v664_v37  ;;  %v667_v24 = vsel %vm607_vm1, %v664_v37, %v666_v62  ;;  %v670_v41 = vsel %vm607_vm1, %v668_v59, %v669_v47  ;;  %v672_v48 = vsel %vm607_vm1, %v669_v47, %v671_v51 }
  0xa3   : > { %v675_v32 = vsel %vm607_vm1, %v673_v19, %v674_v25  ;;  %v677_v26 = vsel %vm607_vm1, %v674_v25, %v676_v17  ;;  %v680_v56 = vsel %vm607_vm1, %v678_v54, %v679_v22  ;;  %v682_v36 = vsel %vm607_vm1, %v679_v22, %v681_v57  ;;  %v5900_v17 = vld [vmem:[#allocation65_spill] sm:$0xff]  ;;  %v5902_v22 = vld [vmem:[#allocation66_spill] sm:$0xff] }
  0xa4   : > { %v685_v61 = vsel %vm607_vm1, %v683_v8, %v684_v27  ;;  %v687_v6 = vsel %vm607_vm1, %v684_v27, %v686_v49  ;;  %v3347_v53 = vadd.f32 %v3268_v23, %v2967_v45  ;;  %v3351_v43 = vadd.f32 %v3271_v4, %v2971_v46  ;;  %v5883_v45 = vld [vmem:[#allocation23_spill] sm:$0xff] }
  0xa5   : > { %v3354_v1 = vadd.f32 %v615_v3, %v2977_v28  ;;  %v3357_v60 = vadd.f32 %v617_v14, %v2981_v7  ;;  %v3360_v39 = vadd.f32 %v620_v16, %v2984_v63  ;;  %v3363_v20 = vadd.f32 %v622_v13, %v2987_v11  ;;  %v5884_v46 = vld [vmem:[#allocation27_spill] sm:$0xff]  ;;  %v5885_v28 = vld [vmem:[#allocation28_spill] sm:$0xff]  ;;  %v5887_v63 = vld [vmem:[#allocation33_spill] sm:$0xff] }
  0xa6   : > { %v3366_v55 = vadd.f32 %v625_v30, %v5882_v2  ;;  %v3369_v23 = vadd.f32 %v627_v0, %v5883_v45  ;;  %v3372_v4 = vadd.f32 %v630_v40, %v5884_v46  ;;  %v3375_v3 = vadd.f32 %v632_v10, %v5885_v28  ;;  %v5886_v7 = vld [vmem:[#allocation32_spill] sm:$0xff]  ;;  %v5889_v30 = vld [vmem:[#allocation37_spill] sm:$0xff]  ;;  %v5891_v40 = vld [vmem:[#allocation42_spill] sm:$0xff] }
  0xa7   : > { %v3378_v14 = vadd.f32 %v635_v50, %v5886_v7  ;;  %v3381_v16 = vadd.f32 %v637_v21, %v5887_v63  ;;  %v5888_v11 = vld [vmem:[#allocation36_spill] sm:$0xff]  ;;  %v3387_v29 = vadd.f32 %v642_v15, %v5889_v30  ;;  %v5890_v0 = vld [vmem:[#allocation41_spill] sm:$0xff]  ;;  %v3393_v42 = vadd.f32 %v647_v12, %v5891_v40  ;;  %v5892_v10 = vld [vmem:[#allocation46_spill] sm:$0xff] }
  0xa8   : > { %v3384_v13 = vadd.f32 %v640_v44, %v5888_v11  ;;  %v3390_v34 = vadd.f32 %v645_v33, %v5890_v0  ;;  %v3396_v38 = vadd.f32 %v650_v52, %v5892_v10  ;;  %v5893_v50 = vld [vmem:[#allocation47_spill] sm:$0xff]  ;;  %v5894_v21 = vld [vmem:[#allocation50_spill] sm:$0xff]  ;;  %v5897_v33 = vld [vmem:[#allocation56_spill] sm:$0xff]  ;;  %v3420_v54 = vadd.f32 %v670_v41, %v5900_v17 }
  0xa9   : > { %v3399_v37 = vadd.f32 %v652_v9, %v5893_v50  ;;  %v3402_v62 = vadd.f32 %v655_v5, %v5894_v21  ;;  %v5895_v44 = vld [vmem:[#allocation51_spill] sm:$0xff]  ;;  %v3411_v51 = vadd.f32 %v662_v58, %v5897_v33  ;;  %v5898_v12 = vld [vmem:[#allocation60_spill] sm:$0xff]  ;;  %v5899_v52 = vld [vmem:[#allocation61_spill] sm:$0xff]  ;;  %v3423_v57 = vadd.f32 %v672_v48, %v5902_v22 }
  0xaa   : > { %v3405_v59 = vadd.f32 %v657_v31, %v5895_v44  ;;  %v5896_v15 = vld [vmem:[#allocation55_spill] sm:$0xff]  ;;  %v3414_v19 = vadd.f32 %v665_v18, %v5898_v12  ;;  %v3417_v25 = vadd.f32 %v667_v24, %v5899_v52  ;;  %5901 = vst [vmem:[#allocation10_spill] sm:$0xff] %v3420_v54  ;;  %v5904_v9 = vld [vmem:[#allocation70_spill] sm:$0xff]  ;;  %v5912_v18 = vld [vmem:[#allocation77_spill] sm:$0xff] }
  0xab   : > { %v3408_v47 = vadd.f32 %v660_v35, %v5896_v15  ;;  %5903 = vst [vmem:[#allocation11_spill] sm:$0xff] %v3423_v57  ;;  %v3426_v8 = vadd.f32 %v675_v32, %v5904_v9  ;;  %v5906_v27 = vld [vmem:[#allocation71_spill] sm:$0xff]  ;;  %v5910_v35 = vld [vmem:[#allocation76_spill] sm:$0xff]  ;;  %v3438_v24 = vadd.f32 %v685_v61, %v5912_v18  ;;  %v5914_v41 = vld [vmem:[#allocation78_spill] sm:$0xff] }
  0xac   : > { %v3429_v49 = vadd.f32 %v677_v26, %v5906_v27  ;;  %v5908_v5 = vld [vmem:[#allocation75_spill] sm:$0xff]  ;;  %v3435_v58 = vadd.f32 %v682_v36, %v5910_v35  ;;  %v3441_v2 = vadd.f32 %v687_v6, %v5914_v41  ;;  %v5916_v48 = vld [vmem:[#allocation12_spill] sm:$0xff]  ;;  %v5917_v45 = vld [vmem:[#allocation9_spill] sm:$0xff] }
  0xad   : > { %5905 = vst [vmem:[#allocation82_spill] sm:$0xff] %v3426_v8  ;;  %v3432_v31 = vadd.f32 %v680_v56, %v5908_v5  ;;  %v753_v46 = vmul.f32 %v5917_v45, %v5916_v48  ;;  %v5918_v32 = vld [vmem:[#allocation13_spill] sm:$0xff]  ;;  %v5919_v26 = vld [vmem:[#allocation15_spill] sm:$0xff]  ;;  %v5920_v56 = vld [vmem:[#allocation16_spill] sm:$0xff] }
  0xae   : > { %5907 = vst [vmem:[#allocation23_spill] sm:$0xff] %v3429_v49  ;;  %v754_v28 = vmul.f32 %v5917_v45, %v5918_v32  ;;  %v755_v7 = vmul.f32 %v5917_v45, %v5919_v26  ;;  %v756_v36 = vmul.f32 %v5917_v45, %v5920_v56  ;;  %v5921_v63 = vld [vmem:[#allocation18_spill] sm:$0xff]  ;;  %v5922_v11 = vld [vmem:[#allocation19_spill] sm:$0xff]  ;;  %v5923_v30 = vld [vmem:[#allocation21_spill] sm:$0xff] }
  0xaf   : > { %5909 = vst [vmem:[#allocation27_spill] sm:$0xff] %v3432_v31  ;;  %v757_v61 = vmul.f32 %v5917_v45, %v5921_v63  ;;  %v758_v6 = vmul.f32 %v5917_v45, %v5922_v11  ;;  %v759_v0 = vmul.f32 %v5917_v45, %v5923_v30  ;;  %v5924_v40 = vld [vmem:[#allocation22_spill] sm:$0xff]  ;;  %v5925_v50 = vld [vmem:[#allocation25_spill] sm:$0xff]  ;;  %v5928_v52 = vld [vmem:[#allocation31_spill] sm:$0xff]  ;;  %v3514_v54 = vadd.f32 %v753_v46, %v3347_v53 }
  0xb0   : > { %5911 = vst [vmem:[#allocation28_spill] sm:$0xff] %v3435_v58  ;;  %v760_v10 = vmul.f32 %v5917_v45, %v5924_v40  ;;  %v761_v21 = vmul.f32 %v5917_v45, %v5925_v50  ;;  %v5926_v44 = vld [vmem:[#allocation26_spill] sm:$0xff]  ;;  %v764_v17 = vmul.f32 %v5917_v45, %v5928_v52  ;;  %v5930_v27 = vld [vmem:[#allocation35_spill] sm:$0xff]  ;;  %v5932_v41 = vld [vmem:[#allocation40_spill] sm:$0xff] }
  0xb1   : > { %5913 = vst [vmem:[#allocation32_spill] sm:$0xff] %v3438_v24  ;;  %v762_v15 = vmul.f32 %v5917_v45, %v5926_v44  ;;  %v5927_v33 = vld [vmem:[#allocation30_spill] sm:$0xff]  ;;  %v766_v5 = vmul.f32 %v5917_v45, %v5930_v27  ;;  %v5931_v35 = vld [vmem:[#allocation39_spill] sm:$0xff]  ;;  %v768_v50 = vmul.f32 %v5917_v45, %v5932_v41  ;;  %v5933_v44 = vld [vmem:[#allocation44_spill] sm:$0xff] }
  0xb2   : > { %5915 = vst [vmem:[#allocation33_spill] sm:$0xff] %v3441_v2  ;;  %v763_v12 = vmul.f32 %v5917_v45, %v5927_v33  ;;  %v5929_v22 = vld [vmem:[#allocation34_spill] sm:$0xff]  ;;  %v767_v18 = vmul.f32 %v5917_v45, %v5931_v35  ;;  %v769_v40 = vmul.f32 %v5917_v45, %v5933_v44  ;;  %v5934_v33 = vld [vmem:[#allocation45_spill] sm:$0xff]  ;;  %v3480_v52 = vld [vmem:[%s2407_s30 + $0x180] sm:$0xff]  ;;  %v3535_v53 = vadd.f32 %v760_v10, %v3369_v23 }
  0xb3   : > { %v765_v9 = vmul.f32 %v5917_v45, %v5929_v22  ;;  %v770_v30 = vmul.f32 %v5917_v45, %v5934_v33  ;;  %5935 = vst [vmem:[#allocation36_spill] sm:$0xff] %v3480_v52  ;;  %v5936_v11 = vld [vmem:[#allocation48_spill] sm:$0xff]  ;;  %v5937_v63 = vld [vmem:[#allocation49_spill] sm:$0xff]  ;;  %v5939_v26 = vld [vmem:[#allocation54_spill] sm:$0xff] }
  0xb4   : > { %v771_v22 = vmul.f32 %v5917_v45, %v5936_v11  ;;  %v772_v27 = vmul.f32 %v5917_v45, %v5937_v63  ;;  %v5938_v56 = vld [vmem:[#allocation53_spill] sm:$0xff]  ;;  %v774_v41 = vmul.f32 %v5917_v45, %v5939_v26  ;;  %v5940_v32 = vld [vmem:[#allocation58_spill] sm:$0xff]  ;;  %v5941_v48 = vld [vmem:[#allocation59_spill] sm:$0xff]  ;;  %5949 = vst [vmem:[#allocation41_spill] sm:$0xff] %v3535_v53  ;;  %v3556_v23 = vadd.f32 %v767_v18, %v3390_v34 }
  0xb5   : > { %v773_v35 = vmul.f32 %v5917_v45, %v5938_v56  ;;  %v775_v44 = vmul.f32 %v5917_v45, %v5940_v32  ;;  %v776_v33 = vmul.f32 %v5917_v45, %v5941_v48  ;;  %v5942_v2 = vld [vmem:[#allocation63_spill] sm:$0xff]  ;;  %v5943_v58 = vld [vmem:[#allocation64_spill] sm:$0xff]  ;;  %v5946_v49 = vld [vmem:[#allocation69_spill] sm:$0xff] }
  0xb6   : > { %v777_v24 = vmul.f32 %v5917_v45, %v5942_v2  ;;  %v778_v11 = vmul.f32 %v5917_v45, %v5943_v58  ;;  %v3499_v31 = vld [vmem:[%s2407_s30 + $0x188] sm:$0xff]  ;;  %v780_v26 = vmul.f32 %v5917_v45, %v5946_v49  ;;  %v5948_v57 = vld [vmem:[#allocation74_spill] sm:$0xff]  ;;  %v783_v2 = vmul.f32 %v5917_v45, %v3480_v52  ;;  %5956 = vst [vmem:[#allocation56_spill] sm:$0xff] %v3556_v23 }
  0xb7   : > { %5944 = vst [vmem:[#allocation37_spill] sm:$0xff] %v3499_v31  ;;  %v5945_v63 = vld [vmem:[#allocation68_spill] sm:$0xff]  ;;  %v5947_v8 = vld [vmem:[#allocation73_spill] sm:$0xff]  ;;  %v782_v48 = vmul.f32 %v5917_v45, %v5948_v57  ;;  %v784_v58 = vmul.f32 %v5917_v45, %v3499_v31  ;;  %v3520_v49 = vadd.f32 %v755_v7, %v3354_v1  ;;  %v3526_v57 = vadd.f32 %v757_v61, %v3360_v39  ;;  %v5973_v61 = vld [vmem:[#allocation23_spill] sm:$0xff] }
  0xb8   : > { %v779_v56 = vmul.f32 %v5917_v45, %v5945_v63  ;;  %v781_v32 = vmul.f32 %v5917_v45, %v5947_v8  ;;  %v3517_v63 = vadd.f32 %v754_v28, %v3351_v43  ;;  %v3523_v8 = vadd.f32 %v756_v36, %v3357_v60  ;;  %v5963_v34 = vld [vmem:[#allocation8_spill] sm:$0xff]  ;;  %v5993_v18 = vld [vmem:[#allocation21_spill] sm:$0xff] }
  0xb9   : > { %v3529_v52 = vadd.f32 %v758_v6, %v3363_v20  ;;  %v3532_v45 = vadd.f32 %v759_v0, %v3366_v55  ;;  %v3538_v43 = vadd.f32 %v761_v21, %v3372_v4  ;;  %v3541_v1 = vadd.f32 %v762_v15, %v3375_v3 }
  0xba   : > { %v3544_v60 = vadd.f32 %v763_v12, %v3378_v14  ;;  %v3547_v39 = vadd.f32 %v764_v17, %v3381_v16  ;;  %v3550_v20 = vadd.f32 %v765_v9, %v3384_v13  ;;  %v3553_v55 = vadd.f32 %v766_v5, %v3387_v29  ;;  %v5990_v17 = vld [vmem:[#allocation18_spill] sm:$0xff]  ;;  %v5991_v9 = vld [vmem:[#allocation19_spill] sm:$0xff]  ;;  %v5992_v5 = vld [vmem:[#allocation20_spill] sm:$0xff] }
  0xbb   : > { %5950 = vst [vmem:[#allocation42_spill] sm:$0xff] %v3538_v43  ;;  %v3559_v4 = vadd.f32 %v768_v50, %v3393_v42  ;;  %v3562_v3 = vadd.f32 %v769_v40, %v3396_v38  ;;  %v3565_v14 = vadd.f32 %v770_v30, %v3399_v37  ;;  %v3568_v16 = vadd.f32 %v771_v22, %v3402_v62  ;;  %v5967_v62 = vld [vmem:[#allocation10_spill] sm:$0xff] }
  0xbc   : > { %5951 = vst [vmem:[#allocation46_spill] sm:$0xff] %v3541_v1  ;;  %v3571_v13 = vadd.f32 %v772_v27, %v3405_v59  ;;  %v3574_v29 = vadd.f32 %v773_v35, %v3408_v47  ;;  %v3577_v46 = vperm.slane %v5963_v34, 1  ;;  %v3580_v42 = vadd.f32 %v774_v41, %v3411_v51  ;;  %v5969_v59 = vld [vmem:[#allocation11_spill] sm:$0xff]  ;;  %v5971_v47 = vld [vmem:[#allocation82_spill] sm:$0xff]  ;;  %v6027_v1 = vld [vmem:[#allocation73_spill] sm:$0xff] }
  0xbd   : > { %5952 = vst [vmem:[#allocation47_spill] sm:$0xff] %v3544_v60  ;;  %v3583_v38 = vadd.f32 %v775_v44, %v3414_v19  ;;  %v3586_v37 = vadd.f32 %v776_v33, %v3417_v25  ;;  %v3589_v28 = vadd.f32 %v777_v24, %v5967_v62  ;;  %v3592_v7 = vadd.f32 %v778_v11, %v5969_v59  ;;  %v5975_v51 = vld [vmem:[#allocation27_spill] sm:$0xff]  ;;  %v5977_v19 = vld [vmem:[#allocation28_spill] sm:$0xff]  ;;  %v5981_v24 = vld [vmem:[#allocation33_spill] sm:$0xff] }
  0xbe   : > { %5953 = vst [vmem:[#allocation50_spill] sm:$0xff] %v3547_v39  ;;  %v3595_v36 = vadd.f32 %v779_v56, %v5971_v47  ;;  %v3598_v6 = vadd.f32 %v780_v26, %v5973_v61  ;;  %v3601_v30 = vadd.f32 %v781_v32, %v5975_v51  ;;  %v3604_v0 = vadd.f32 %v782_v48, %v5977_v19  ;;  %v5979_v25 = vld [vmem:[#allocation32_spill] sm:$0xff]  ;;  %v5985_v26 = vld [vmem:[#allocation13_spill] sm:$0xff]  ;;  %v5986_v32 = vld [vmem:[#allocation14_spill] sm:$0xff] }
  0xbf   : > { %5954 = vst [vmem:[#allocation51_spill] sm:$0xff] %v3550_v20  ;;  %v3607_v40 = vadd.f32 %v783_v2, %v5979_v25  ;;  %v3610_v10 = vadd.f32 %v784_v58, %v5981_v24  ;;  %v3613_v11 = vperm.slane %v5963_v34, 2  ;;  %v5984_v56 = vld [vmem:[#allocation12_spill] sm:$0xff]  ;;  %v819_v21 = vmul.f32 %v3577_v46, %v5985_v26  ;;  %v5987_v48 = vld [vmem:[#allocation15_spill] sm:$0xff]  ;;  %v5989_v58 = vld [vmem:[#allocation17_spill] sm:$0xff] }
  0xc0   : > { %5955 = vst [vmem:[#allocation55_spill] sm:$0xff] %v3553_v55  ;;  %v818_v50 = vmul.f32 %v3577_v46, %v5984_v56  ;;  %v820_v44 = vmul.f32 %v3577_v46, %v5986_v32  ;;  %v821_v15 = vmul.f32 %v3577_v46, %v5987_v48  ;;  %v5988_v2 = vld [vmem:[#allocation16_spill] sm:$0xff]  ;;  %v823_v12 = vmul.f32 %v3577_v46, %v5989_v58  ;;  %v5994_v34 = vld [vmem:[#allocation22_spill] sm:$0xff]  ;;  %v5996_v61 = vld [vmem:[#allocation25_spill] sm:$0xff] }
  0xc1   : > { %5957 = vst [vmem:[#allocation60_spill] sm:$0xff] %v3559_v4  ;;  %v822_v33 = vmul.f32 %v3577_v46, %v5988_v2  ;;  %v3629_v22 = vmul.f32 %v3577_v46, %v5990_v17  ;;  %v3633_v27 = vmul.f32 %v3577_v46, %v5991_v9  ;;  %v3637_v35 = vmul.f32 %v3577_v46, %v5992_v5  ;;  %v5995_v59 = vld [vmem:[#allocation24_spill] sm:$0xff]  ;;  %v5997_v19 = vld [vmem:[#allocation26_spill] sm:$0xff]  ;;  %v5998_v24 = vld [vmem:[#allocation29_spill] sm:$0xff] }
  0xc2   : > { %5958 = vst [vmem:[#allocation61_spill] sm:$0xff] %v3562_v3  ;;  %v3641_v41 = vmul.f32 %v3577_v46, %v5993_v18  ;;  %v3645_v62 = vmul.f32 %v3577_v46, %v5994_v34  ;;  %v3649_v47 = vmul.f32 %v3577_v46, %v5995_v59  ;;  %v3653_v51 = vmul.f32 %v3577_v46, %v5996_v61  ;;  %v5999_v26 = vld [vmem:[#allocation30_spill] sm:$0xff]  ;;  %v6000_v48 = vld [vmem:[#allocation31_spill] sm:$0xff]  ;;  %v3764_v3 = vld [vmem:[%s2407_s30 + $0x190] sm:$0x3] }
  0xc3   : > { %5959 = vst [vmem:[#allocation65_spill] sm:$0xff] %v3565_v14  ;;  %v3657_v25 = vmul.f32 %v3577_v46, %v5997_v19  ;;  %v3661_v56 = vmul.f32 %v3577_v46, %v5998_v24  ;;  %v3665_v32 = vmul.f32 %v3577_v46, %v5999_v26  ;;  %v3669_v2 = vmul.f32 %v3577_v46, %v6000_v48  ;;  %v6001_v58 = vld [vmem:[#allocation38_spill] sm:$0xff]  ;;  %v6003_v18 = vld [vmem:[#allocation35_spill] sm:$0xff]  ;;  %v6006_v26 = vld [vmem:[#allocation40_spill] sm:$0xff] }
  0xc4   : > { %5960 = vst [vmem:[#allocation66_spill] sm:$0xff] %v3568_v16  ;;  %v3673_v17 = vmul.f32 %v3577_v46, %v6001_v58  ;;  %v6002_v9 = vld [vmem:[#allocation34_spill] sm:$0xff]  ;;  %v3681_v34 = vmul.f32 %v3577_v46, %v6003_v18  ;;  %v6004_v59 = vld [vmem:[#allocation43_spill] sm:$0xff]  ;;  %v3693_v48 = vmul.f32 %v3577_v46, %v6006_v26  ;;  %v6007_v58 = vld [vmem:[#allocation52_spill] sm:$0xff]  ;;  %v915_v23 = vrot.slane %v819_v21, 1 }
  0xc5   : > { %5961 = vst [vmem:[#allocation70_spill] sm:$0xff] %v3571_v13  ;;  %v3677_v5 = vmul.f32 %v3577_v46, %v6002_v9  ;;  %v3685_v61 = vmul.f32 %v3577_v46, %v6004_v59  ;;  %v6005_v19 = vld [vmem:[#allocation39_spill] sm:$0xff]  ;;  %v3697_v9 = vmul.f32 %v3577_v46, %v6007_v58  ;;  %v6021_v13 = vld [vmem:[#allocation64_spill] sm:$0xff]  ;;  %v917_v55 = vrot.slane %v820_v44, 1  ;;  %v6028_v43 = vld [vmem:[#allocation74_spill] sm:$0xff] }
  0xc6   : > { %5962 = vst [vmem:[#allocation71_spill] sm:$0xff] %v3574_v29  ;;  %v3689_v24 = vmul.f32 %v3577_v46, %v6005_v19  ;;  %v6020_v29 = vld [vmem:[#allocation63_spill] sm:$0xff]  ;;  %v6023_v14 = vld [vmem:[#allocation68_spill] sm:$0xff]  ;;  %v919_v39 = vrot.slane %v821_v15, 1  ;;  %v922_v60 = vrot.slane %v823_v12, 1  ;;  %v3780_v53 = vmul.f32 %v3577_v46, %v6028_v43 }
  0xc7   : > { %5964 = vst [vmem:[#allocation75_spill] sm:$0xff] %v3580_v42  ;;  %v6019_v42 = vld [vmem:[#allocation72_spill] sm:$0xff]  ;;  %v6022_v16 = vld [vmem:[#allocation79_spill] sm:$0xff]  ;;  %v924_v15 = vrot.slane %v3629_v22, 1  ;;  %v925_v43 = vrot.slane %v3633_v27, 1  ;;  %v3804_v12 = vsel %vm365_vm0, %v915_v23, %v917_v55  ;;  %v930_v22 = vrot.slane %v3645_v62, 1 }
  0xc8   : > { %5965 = vst [vmem:[#allocation76_spill] sm:$0xff] %v3583_v38  ;;  %v6018_v38 = vld [vmem:[#allocation59_spill] sm:$0xff]  ;;  %v6026_v20 = vld [vmem:[#allocation80_spill] sm:$0xff]  ;;  %v932_v27 = vrot.slane %v3649_v47, 1  ;;  %v937_v55 = vrot.slane %v3661_v56, 1  ;;  %v947_v62 = vrot.slane %v3685_v61, 1 }
  0xc9   : > { %5966 = vst [vmem:[#allocation77_spill] sm:$0xff] %v3586_v37  ;;  %v6017_v37 = vld [vmem:[#allocation58_spill] sm:$0xff]  ;;  %v6030_v21 = vld [vmem:[#allocation36_spill] sm:$0xff]  ;;  %v949_v47 = vrot.slane %v3689_v24, 1  ;;  %v926_v56 = vsel %vm365_vm0, %v924_v15, %v925_v43 }
  0xca   : > { %5968 = vst [vmem:[#allocation78_spill] sm:$0xff] %v3589_v28  ;;  %v6016_v28 = vld [vmem:[#allocation67_spill] sm:$0xff]  ;;  %v3788_v44 = vmul.f32 %v3577_v46, %v6030_v21  ;;  %v929_v21 = vrot.slane %v3641_v41, 1  ;;  %v944_v41 = vrot.slane %v3677_v5, 1 }
  0xcb   : > { %5970 = vst [vmem:[#allocation9_spill] sm:$0xff] %v3592_v7  ;;  %v6015_v7 = vld [vmem:[#allocation54_spill] sm:$0xff] }
  0xcc   : > { %5972 = vst [vmem:[#allocation8_spill] sm:$0xff] %v3595_v36  ;;  %v6014_v36 = vld [vmem:[#allocation53_spill] sm:$0xff]  ;;  %v931_v5 = vsel %vm365_vm0, %v929_v21, %v930_v22 }
  0xcd   : > { %5974 = vst [vmem:[#allocation10_spill] sm:$0xff] %v3598_v6  ;;  %v6013_v6 = vld [vmem:[#allocation62_spill] sm:$0xff] }
  0xce   : > { %5976 = vst [vmem:[#allocation11_spill] sm:$0xff] %v3601_v30  ;;  %v6012_v30 = vld [vmem:[#allocation49_spill] sm:$0xff] }
  0xcf   : > { %5978 = vst [vmem:[#allocation82_spill] sm:$0xff] %v3604_v0  ;;  %v6011_v0 = vld [vmem:[#allocation48_spill] sm:$0xff]  ;;  %v3717_v58 = vmul.f32 %v3577_v46, %v6012_v30  ;;  %v3737_v30 = vmul.f32 %v3577_v46, %v6017_v37  ;;  %v3757_v37 = vmul.f32 %v3577_v46, %v6022_v16  ;;  %v920_v16 = vrot.slane %v822_v33, 1 }
  0xd0   : > { %5980 = vst [vmem:[#allocation23_spill] sm:$0xff] %v3607_v40  ;;  %v6010_v40 = vld [vmem:[#allocation57_spill] sm:$0xff]  ;;  %v3713_v26 = vmul.f32 %v3577_v46, %v6011_v0  ;;  %v3733_v0 = vmul.f32 %v3577_v46, %v6016_v28  ;;  %v3753_v28 = vmul.f32 %v3577_v46, %v6021_v13  ;;  %v3772_v13 = vmul.f32 %v3577_v46, %v6026_v20 }
  0xd1   : > { %5982 = vst [vmem:[#allocation27_spill] sm:$0xff] %v3610_v10  ;;  %v6009_v10 = vld [vmem:[#allocation45_spill] sm:$0xff]  ;;  %v3709_v19 = vmul.f32 %v3577_v46, %v6010_v40  ;;  %v3729_v40 = vmul.f32 %v3577_v46, %v6015_v7  ;;  %v3749_v7 = vmul.f32 %v3577_v46, %v6020_v29  ;;  %v914_v29 = vrot.slane %v818_v50, 1 }
  0xd2   : > { %5983 = vst [vmem:[#allocation28_spill] sm:$0xff] %v3613_v11  ;;  %v6008_v11 = vld [vmem:[#allocation44_spill] sm:$0xff]  ;;  %v3705_v59 = vmul.f32 %v3577_v46, %v6009_v10  ;;  %v3725_v10 = vmul.f32 %v3577_v46, %v6014_v36  ;;  %v3745_v36 = vmul.f32 %v3577_v46, %v6019_v42  ;;  %v6025_v42 = vld [vmem:[#allocation69_spill] sm:$0xff]  ;;  %v3792_v20 = vmul.f32 %v3577_v46, %v3499_v31 }
  0xd3   : > { %v3701_v18 = vmul.f32 %v3577_v46, %v6008_v11  ;;  %v3721_v11 = vmul.f32 %v3577_v46, %v6013_v6  ;;  %v3741_v6 = vmul.f32 %v3577_v46, %v6018_v38  ;;  %v3761_v38 = vmul.f32 %v3577_v46, %v6023_v14  ;;  %6024 = vst [vmem:[#allocation32_spill] sm:$0xff] %v3764_v3 }
  0xd4   : > { %v3768_v4 = vmul.f32 %v3577_v46, %v6025_v42  ;;  %v3776_v14 = vmul.f32 %v3577_v46, %v6027_v1  ;;  %v6029_v42 = vld [vmem:[#allocation81_spill] sm:$0xff]  ;;  %v3796_v1 = vmul.f32 %v3577_v46, %v3764_v3  ;;  %v3801_v33 = vsel %vm365_vm0, %v914_v29, %v915_v23 }
  0xd5   : > { %v3784_v50 = vmul.f32 %v3577_v46, %v6029_v42  ;;  %v927_v42 = vrot.slane %v3637_v35, 1  ;;  %v3809_v31 = vsel %vm365_vm0, %v919_v39, %v920_v16  ;;  %v3812_v46 = vsel %vm365_vm0, %v920_v16, %v922_v60 }
  0xd6   : > { %v934_v29 = vrot.slane %v3653_v51, 1  ;;  %v935_v3 = vrot.slane %v3657_v25, 1  ;;  %v939_v23 = vrot.slane %v3665_v32, 1  ;;  %v940_v35 = vrot.slane %v3669_v2, 1 }
  0xd7   : > { %v942_v39 = vrot.slane %v3673_v17, 1  ;;  %v945_v60 = vrot.slane %v3681_v34, 1  ;;  %v950_v51 = vrot.slane %v3693_v48, 1  ;;  %v952_v25 = vrot.slane %v3697_v9, 1 }
  0xd8   : > { %v928_v32 = vsel %vm365_vm0, %v925_v43, %v927_v42  ;;  %v954_v2 = vrot.slane %v3701_v18, 1  ;;  %v955_v17 = vrot.slane %v3705_v59, 1  ;;  %v933_v34 = vsel %vm365_vm0, %v930_v22, %v932_v27 }
  0xd9   : > { %v936_v61 = vsel %vm365_vm0, %v934_v29, %v935_v3  ;;  %v957_v24 = vrot.slane %v3709_v19, 1  ;;  %v938_v48 = vsel %vm365_vm0, %v935_v3, %v937_v55  ;;  %v941_v9 = vsel %vm365_vm0, %v939_v23, %v940_v35 }
  0xda   : > { %v943_v16 = vsel %vm365_vm0, %v940_v35, %v942_v39  ;;  %v946_v15 = vsel %vm365_vm0, %v944_v41, %v945_v60  ;;  %v948_v18 = vsel %vm365_vm0, %v945_v60, %v947_v62  ;;  %v951_v59 = vsel %vm365_vm0, %v949_v47, %v950_v51 }
  0xdb   : > { %v953_v21 = vsel %vm365_vm0, %v950_v51, %v952_v25  ;;  %v959_v43 = vrot.slane %v3713_v26, 1  ;;  %v956_v42 = vsel %vm365_vm0, %v954_v2, %v955_v17  ;;  %v960_v19 = vrot.slane %v3717_v58, 1 }
  0xdc   : > { %v962_v3 = vrot.slane %v3721_v11, 1  ;;  %v964_v22 = vrot.slane %v3725_v10, 1  ;;  %v958_v27 = vsel %vm365_vm0, %v955_v17, %v957_v24  ;;  %v965_v29 = vrot.slane %v3729_v40, 1 }
  0xdd   : > { %v967_v55 = vrot.slane %v3733_v0, 1  ;;  %v969_v23 = vrot.slane %v3737_v30, 1  ;;  %v970_v35 = vrot.slane %v3741_v6, 1  ;;  %v972_v26 = vrot.slane %v3745_v36, 1 }
  0xde   : > { %v974_v39 = vrot.slane %v3749_v7, 1  ;;  %v975_v58 = vrot.slane %v3753_v28, 1  ;;  %v977_v11 = vrot.slane %v3757_v37, 1  ;;  %v979_v10 = vrot.slane %v3761_v38, 1 }
  0xdf   : > { %v980_v41 = vrot.slane %v3768_v4, 1  ;;  %v982_v40 = vrot.slane %v3772_v13, 1  ;;  %v961_v0 = vsel %vm365_vm0, %v959_v43, %v960_v19  ;;  %v984_v30 = vrot.slane %v3776_v14, 1 }
  0xe0   : > { %v985_v6 = vrot.slane %v3780_v53, 1  ;;  %v987_v36 = vrot.slane %v3784_v50, 1  ;;  %v963_v7 = vsel %vm365_vm0, %v960_v19, %v962_v3  ;;  %v989_v28 = vrot.slane %v3788_v44, 1  ;;  %v6033_v19 = vld [vmem:[#allocation42_spill] sm:$0xff] }
  0xe1   : > { %v990_v37 = vrot.slane %v3792_v20, 1  ;;  %v992_v38 = vrot.slane %v3796_v1, 1  ;;  %v966_v4 = vsel %vm365_vm0, %v964_v22, %v965_v29  ;;  %v968_v13 = vsel %vm365_vm0, %v965_v29, %v967_v55 }
  0xe2   : > { %v971_v60 = vsel %vm365_vm0, %v969_v23, %v970_v35  ;;  %v973_v14 = vsel %vm365_vm0, %v970_v35, %v972_v26  ;;  %v976_v53 = vsel %vm365_vm0, %v974_v39, %v975_v58  ;;  %v978_v50 = vsel %vm365_vm0, %v975_v58, %v977_v11  ;;  %v6057_v26 = vld [vmem:[#allocation71_spill] sm:$0xff]  ;;  %v6063_v11 = vld [vmem:[#allocation77_spill] sm:$0xff] }
  0xe3   : > { %v981_v62 = vsel %vm365_vm0, %v979_v10, %v980_v41  ;;  %v983_v44 = vsel %vm365_vm0, %v980_v41, %v982_v40  ;;  %v986_v20 = vsel %vm365_vm0, %v984_v30, %v985_v6  ;;  %v988_v1 = vsel %vm365_vm0, %v985_v6, %v987_v36  ;;  %v6059_v39 = vld [vmem:[#allocation75_spill] sm:$0xff]  ;;  %v6065_v10 = vld [vmem:[#allocation78_spill] sm:$0xff]  ;;  %v6067_v40 = vld [vmem:[#allocation9_spill] sm:$0xff] }
  0xe4   : > { %v3880_v47 = vadd.f32 %v3801_v33, %v3514_v54  ;;  %v3884_v51 = vadd.f32 %v3804_v12, %v3517_v63  ;;  %v991_v25 = vsel %vm365_vm0, %v989_v28, %v990_v37  ;;  %v993_v2 = vsel %vm365_vm0, %v990_v37, %v992_v38  ;;  %v6031_v33 = vld [vmem:[#allocation41_spill] sm:$0xff]  ;;  %v6069_v30 = vld [vmem:[#allocation8_spill] sm:$0xff]  ;;  %v6071_v36 = vld [vmem:[#allocation10_spill] sm:$0xff] }
  0xe5   : > { %v3890_v17 = vadd.f32 %v3809_v31, %v3520_v49  ;;  %v3894_v24 = vadd.f32 %v3812_v46, %v3523_v8  ;;  %v3897_v43 = vadd.f32 %v926_v56, %v3526_v57  ;;  %v3900_v54 = vadd.f32 %v928_v32, %v3529_v52  ;;  %v6035_v49 = vld [vmem:[#allocation46_spill] sm:$0xff]  ;;  %v6037_v8 = vld [vmem:[#allocation47_spill] sm:$0xff] }
  0xe6   : > { %v3903_v63 = vadd.f32 %v931_v5, %v3532_v45  ;;  %v3906_v12 = vadd.f32 %v933_v34, %v6031_v33  ;;  %v3909_v3 = vadd.f32 %v936_v61, %v6033_v19  ;;  %v3912_v31 = vadd.f32 %v938_v48, %v6035_v49  ;;  %v6039_v57 = vld [vmem:[#allocation50_spill] sm:$0xff]  ;;  %v6041_v52 = vld [vmem:[#allocation51_spill] sm:$0xff]  ;;  %v6045_v34 = vld [vmem:[#allocation56_spill] sm:$0xff] }
  0xe7   : > { %v3915_v46 = vadd.f32 %v941_v9, %v6037_v8  ;;  %v3918_v56 = vadd.f32 %v943_v16, %v6039_v57  ;;  %v3921_v32 = vadd.f32 %v946_v15, %v6041_v52  ;;  %v6043_v45 = vld [vmem:[#allocation55_spill] sm:$0xff]  ;;  %v3927_v22 = vadd.f32 %v951_v59, %v6045_v34  ;;  %v6047_v61 = vld [vmem:[#allocation60_spill] sm:$0xff]  ;;  %v6049_v48 = vld [vmem:[#allocation61_spill] sm:$0xff] }
  0xe8   : > { %6032 = vst [vmem:[#allocation33_spill] sm:$0xff] %v3906_v12  ;;  %v3924_v5 = vadd.f32 %v948_v18, %v6043_v45  ;;  %v3930_v29 = vadd.f32 %v953_v21, %v6047_v61  ;;  %v3933_v55 = vadd.f32 %v956_v42, %v6049_v48  ;;  %v6051_v9 = vld [vmem:[#allocation65_spill] sm:$0xff]  ;;  %v6053_v16 = vld [vmem:[#allocation66_spill] sm:$0xff]  ;;  %v3945_v59 = vadd.f32 %v966_v4, %v6057_v26  ;;  %v6061_v42 = vld [vmem:[#allocation76_spill] sm:$0xff] }
  0xe9   : > { %6034 = vst [vmem:[#allocation12_spill] sm:$0xff] %v3909_v3  ;;  %v3936_v23 = vadd.f32 %v958_v27, %v6051_v9  ;;  %v3939_v35 = vadd.f32 %v961_v0, %v6053_v16  ;;  %v6055_v15 = vld [vmem:[#allocation70_spill] sm:$0xff]  ;;  %v3948_v21 = vadd.f32 %v968_v13, %v6059_v39  ;;  %v3951_v58 = vadd.f32 %v971_v60, %v6061_v42  ;;  %v6073_v28 = vld [vmem:[#allocation11_spill] sm:$0xff]  ;;  %v2187_v19 = vld [vmem:[%s2407_s30 + $0x28] sm:$0x3] }
  0xea   : > { %6036 = vst [vmem:[#allocation13_spill] sm:$0xff] %v3912_v31  ;;  %v3942_v18 = vadd.f32 %v963_v7, %v6055_v15  ;;  %v3954_v27 = vadd.f32 %v973_v14, %v6063_v11  ;;  %v3957_v41 = vadd.f32 %v976_v53, %v6065_v10  ;;  %v3960_v0 = vadd.f32 %v978_v50, %v6067_v40  ;;  %v6075_v38 = vld [vmem:[#allocation82_spill] sm:$0xff]  ;;  %v6077_v13 = vld [vmem:[#allocation23_spill] sm:$0xff]  ;;  %v4014_v45 = vld [vmem:[%s2407_s30 + $0x48] sm:$0xff] }
  0xeb   : > { %6038 = vst [vmem:[#allocation14_spill] sm:$0xff] %v3915_v46  ;;  %v3963_v6 = vadd.f32 %v981_v62, %v6069_v30  ;;  %v3966_v7 = vadd.f32 %v983_v44, %v6071_v36  ;;  %v3969_v37 = vadd.f32 %v986_v20, %v6073_v28  ;;  %v3972_v4 = vadd.f32 %v988_v1, %v6075_v38  ;;  %v6079_v14 = vld [vmem:[#allocation27_spill] sm:$0xff]  ;;  %v6081_v62 = vld [vmem:[#allocation28_spill] sm:$0xff]  ;;  %v4021_v61 = vld [vmem:[%s2407_s30 + $0x50] sm:$0xff] }
  0xec   : > { %6040 = vst [vmem:[#allocation15_spill] sm:$0xff] %v3918_v56  ;;  %v3975_v60 = vadd.f32 %v991_v25, %v6077_v13  ;;  %v3978_v53 = vadd.f32 %v993_v2, %v6079_v14  ;;  %v2185_v50 = vld [vmem:[%s2407_s30 + $0x18] sm:$0xff]  ;;  %v2186_v44 = vld [vmem:[%s2407_s30 + $0x20] sm:$0xff]  ;;  %v3990_v1 = vmul.f32 %v2187_v19, %v6081_v62  ;;  %v3993_v25 = vld [vmem:[%s2407_s30 + $0x30] sm:$0xff]  ;;  %v4018_v34 = vmul.f32 %v4014_v45, %v6081_v62 }
  0xed   : > { %6042 = vst [vmem:[#allocation16_spill] sm:$0xff] %v3921_v32  ;;  %v3982_v33 = vmul.f32 %v2185_v50, %v6081_v62  ;;  %v3986_v20 = vmul.f32 %v2186_v44, %v6081_v62  ;;  %v3997_v2 = vmul.f32 %v3993_v25, %v6081_v62  ;;  %v4000_v49 = vld [vmem:[%s2407_s30 + $0x38] sm:$0xff]  ;;  %v4007_v57 = vld [vmem:[%s2407_s30 + $0x40] sm:$0x3]  ;;  %v4025_v48 = vmul.f32 %v4021_v61, %v6081_v62  ;;  %v4042_v39 = vld [vmem:[%s2407_s30 + $0x68] sm:$0xff] }
  0xee   : > { %6044 = vst [vmem:[#allocation17_spill] sm:$0xff] %v3924_v5  ;;  %v4004_v8 = vmul.f32 %v4000_v49, %v6081_v62  ;;  %v4011_v52 = vmul.f32 %v4007_v57, %v6081_v62  ;;  %v4028_v9 = vld [vmem:[%s2407_s30 + $0x58] sm:$0x3]  ;;  %v4035_v15 = vld [vmem:[%s2407_s30 + $0x60] sm:$0xff]  ;;  %v4046_v42 = vmul.f32 %v4042_v39, %v6081_v62  ;;  %v4049_v11 = vld [vmem:[%s2407_s30 + $0x70] sm:$0x3] }
  0xef   : > { %6046 = vst [vmem:[#allocation18_spill] sm:$0xff] %v3927_v22  ;;  %v4032_v16 = vmul.f32 %v4028_v9, %v6081_v62  ;;  %v4039_v26 = vmul.f32 %v4035_v15, %v6081_v62  ;;  %v4053_v10 = vmul.f32 %v4049_v11, %v6081_v62  ;;  %v4056_v40 = vld [vmem:[%s2407_s30 + $0x78] sm:$0xff]  ;;  %v4063_v36 = vld [vmem:[%s2407_s30 + $0x80] sm:$0xff]  ;;  %v4070_v38 = vld [vmem:[%s2407_s30 + $0x88] sm:$0x3]  ;;  %v1166_v31 = vrot.slane %v4025_v48, 2 }
  0xf0   : > { %6048 = vst [vmem:[#allocation19_spill] sm:$0xff] %v3930_v29  ;;  %v4060_v30 = vmul.f32 %v4056_v40, %v6081_v62  ;;  %v4067_v28 = vmul.f32 %v4063_v36, %v6081_v62  ;;  %v4074_v13 = vmul.f32 %v4070_v38, %v6081_v62  ;;  %v4077_v14 = vld [vmem:[%s2407_s30 + $0x90] sm:$0xff]  ;;  %v4084_v44 = vld [vmem:[%s2407_s30 + $0x98] sm:$0xff]  ;;  %v1161_v22 = vrot.slane %v4004_v8, 2  ;;  %v6124_v8 = vld [vmem:[#allocation36_spill] sm:$0xff] }
  0xf1   : > { %6050 = vst [vmem:[#allocation20_spill] sm:$0xff] %v3933_v55  ;;  %v4081_v50 = vmul.f32 %v4077_v14, %v6081_v62  ;;  %v4088_v19 = vmul.f32 %v4084_v44, %v6081_v62  ;;  %v4262_v55 = vld [vmem:[%s2407_s30 + $0x160] sm:$0x3]  ;;  %v1163_v5 = vrot.slane %v4011_v52, 2  ;;  %v4294_v52 = vmul.f32 %v6081_v62, %v6124_v8  ;;  %v6125_v32 = vld [vmem:[#allocation37_spill] sm:$0xff]  ;;  %v6126_v56 = vld [vmem:[#allocation32_spill] sm:$0xff] }
  0xf2   : > { %6052 = vst [vmem:[#allocation21_spill] sm:$0xff] %v3936_v23  ;;  %v1156_v23 = vrot.slane %v3986_v20, 2  ;;  %v4266_v29 = vmul.f32 %v4262_v55, %v6081_v62  ;;  %v4279_v20 = vld [vmem:[%s2407_s30 + $0x170] sm:$0xff]  ;;  %v4302_v46 = vmul.f32 %v6081_v62, %v6126_v56  ;;  %v1168_v8 = vrot.slane %v4032_v16, 2 }
  0xf3   : > { %6054 = vst [vmem:[#allocation22_spill] sm:$0xff] %v3939_v35  ;;  %v1155_v35 = vrot.slane %v3982_v33, 2  ;;  %v1170_v12 = vrot.slane %v4039_v26, 2  ;;  %v1173_v48 = vrot.slane %v4053_v10, 2  ;;  %v1176_v56 = vrot.slane %v4067_v28, 2 }
  0xf4   : > { %6056 = vst [vmem:[#allocation24_spill] sm:$0xff] %v3942_v18  ;;  %v4252_v18 = vld [vmem:[%s2407_s30 + $0x158] sm:$0xff]  ;;  %v1181_v16 = vrot.slane %v4088_v19, 2 }
  0xf5   : > { %6058 = vst [vmem:[#allocation25_spill] sm:$0xff] %v3945_v59  ;;  %v4245_v59 = vld [vmem:[%s2407_s30 + $0x150] sm:$0xff]  ;;  %v4307_v3 = vsel %vm607_vm1, %v1155_v35, %v1156_v23  ;;  %v1175_v35 = vrot.slane %v4060_v30, 2 }
  0xf6   : > { %6060 = vst [vmem:[#allocation26_spill] sm:$0xff] %v3948_v21  ;;  %v4238_v21 = vld [vmem:[%s2407_s30 + $0x148] sm:$0x3] }
  0xf7   : > { %6062 = vst [vmem:[#allocation29_spill] sm:$0xff] %v3951_v58 }
  0xf8   : > { %6064 = vst [vmem:[#allocation30_spill] sm:$0xff] %v3954_v27 }
  0xf9   : > { %6066 = vst [vmem:[#allocation31_spill] sm:$0xff] %v3957_v41 }
  0xfa   : > { %6068 = vst [vmem:[#allocation38_spill] sm:$0xff] %v3960_v0  ;;  %v4210_v0 = vld [vmem:[%s2407_s30 + $0x128] sm:$0xff] }
  0xfb   : > { %6070 = vst [vmem:[#allocation34_spill] sm:$0xff] %v3963_v6  ;;  %v4203_v6 = vld [vmem:[%s2407_s30 + $0x120] sm:$0xff]  ;;  %v4214_v41 = vmul.f32 %v4210_v0, %v6081_v62 }
  0xfc   : > { %6072 = vst [vmem:[#allocation35_spill] sm:$0xff] %v3966_v7  ;;  %v4196_v7 = vld [vmem:[%s2407_s30 + $0x118] sm:$0x3] }
  0xfd   : > { %6074 = vst [vmem:[#allocation43_spill] sm:$0xff] %v3969_v37  ;;  %v4189_v37 = vld [vmem:[%s2407_s30 + $0x110] sm:$0xff] }
  0xfe   : > { %6076 = vst [vmem:[#allocation39_spill] sm:$0xff] %v3972_v4  ;;  %v4182_v4 = vld [vmem:[%s2407_s30 + $0x108] sm:$0xff] }
  0xff   : > { %6078 = vst [vmem:[#allocation40_spill] sm:$0xff] %v3975_v60  ;;  %v4175_v60 = vld [vmem:[%s2407_s30 + $0x100] sm:$0x3] }
 0x100   : > { %6080 = vst [vmem:[#allocation52_spill] sm:$0xff] %v3978_v53  ;;  %v4168_v53 = vld [vmem:[%s2407_s30 + $0xf8] sm:$0xff] }
 0x101   : > { %6082 = vst [vmem:[#allocation44_spill] sm:$0xff] %v3993_v25  ;;  %v4161_v25 = vld [vmem:[%s2407_s30 + $0xf0] sm:$0xff] }
 0x102   : > { %6083 = vst [vmem:[#allocation45_spill] sm:$0xff] %v4000_v49  ;;  %v4154_v49 = vld [vmem:[%s2407_s30 + $0xe8] sm:$0x3] }
 0x103   : > { %6084 = vst [vmem:[#allocation57_spill] sm:$0xff] %v4007_v57 }
 0x104   : > { %6085 = vst [vmem:[#allocation48_spill] sm:$0xff] %v4014_v45  ;;  %v4147_v45 = vld [vmem:[%s2407_s30 + $0xe0] sm:$0xff] }
 0x105   : > { %6086 = vst [vmem:[#allocation49_spill] sm:$0xff] %v4021_v61  ;;  %v4140_v61 = vld [vmem:[%s2407_s30 + $0xd8] sm:$0xff] }
 0x106   : > { %6087 = vst [vmem:[#allocation62_spill] sm:$0xff] %v4028_v9  ;;  %v4098_v9 = vld [vmem:[%s2407_s30 + $0xa8] sm:$0xff] }
 0x107   : > { %6088 = vst [vmem:[#allocation53_spill] sm:$0xff] %v4035_v15  ;;  %v4102_v57 = vmul.f32 %v4098_v9, %v6081_v62  ;;  %v4133_v15 = vld [vmem:[%s2407_s30 + $0xd0] sm:$0x3] }
 0x108   : > { %6089 = vst [vmem:[#allocation54_spill] sm:$0xff] %v4042_v39  ;;  %v4126_v39 = vld [vmem:[%s2407_s30 + $0xc8] sm:$0xff] }
 0x109   : > { %6090 = vst [vmem:[#allocation67_spill] sm:$0xff] %v4049_v11  ;;  %v4091_v11 = vld [vmem:[%s2407_s30 + $0xa0] sm:$0x3]  ;;  %v1185_v26 = vrot.slane %v4102_v57, 2 }
 0x10a   : > { %6091 = vst [vmem:[#allocation58_spill] sm:$0xff] %v4056_v40  ;;  %v4119_v40 = vld [vmem:[%s2407_s30 + $0xc0] sm:$0xff] }
 0x10b   : > { %6092 = vst [vmem:[#allocation59_spill] sm:$0xff] %v4063_v36  ;;  %v4112_v36 = vld [vmem:[%s2407_s30 + $0xb8] sm:$0x3] }
 0x10c   : > { %6093 = vst [vmem:[#allocation72_spill] sm:$0xff] %v4070_v38  ;;  %v4095_v38 = vmul.f32 %v4091_v11, %v6081_v62 }
 0x10d   : > { %6094 = vst [vmem:[#allocation63_spill] sm:$0xff] %v4077_v14  ;;  %v4105_v14 = vld [vmem:[%s2407_s30 + $0xb0] sm:$0xff] }
 0x10e   : > { %6095 = vst [vmem:[#allocation64_spill] sm:$0xff] %v4084_v44  ;;  %v4109_v44 = vmul.f32 %v4105_v14, %v6081_v62 }
 0x10f   : > { %6096 = vst [vmem:[#allocation79_spill] sm:$0xff] %v4091_v11  ;;  %v4116_v11 = vmul.f32 %v4112_v36, %v6081_v62 }
 0x110   : > { %6097 = vst [vmem:[#allocation68_spill] sm:$0xff] %v4098_v9  ;;  %v4123_v9 = vmul.f32 %v4119_v40, %v6081_v62 }
 0x111   : > { %6098 = vst [vmem:[#allocation69_spill] sm:$0xff] %v4105_v14  ;;  %v4130_v14 = vmul.f32 %v4126_v39, %v6081_v62 }
 0x112   : > { %6099 = vst [vmem:[#allocation80_spill] sm:$0xff] %v4112_v36  ;;  %v4137_v36 = vmul.f32 %v4133_v15, %v6081_v62 }
 0x113   : > { %6100 = vst [vmem:[#allocation73_spill] sm:$0xff] %v4119_v40  ;;  %v4144_v40 = vmul.f32 %v4140_v61, %v6081_v62  ;;  %v1191_v10 = vrot.slane %v4130_v14, 2 }
 0x114   : > { %6101 = vst [vmem:[#allocation74_spill] sm:$0xff] %v4126_v39  ;;  %v4151_v39 = vmul.f32 %v4147_v45, %v6081_v62  ;;  %v1193_v30 = vrot.slane %v4137_v36, 2 }
 0x115   : > { %6102 = vst [vmem:[#allocation81_spill] sm:$0xff] %v4133_v15  ;;  %v4158_v15 = vmul.f32 %v4154_v49, %v6081_v62 }
 0x116   : > { %6103 = vst [vmem:[#allocation41_spill] sm:$0xff] %v4140_v61  ;;  %v4165_v61 = vmul.f32 %v4161_v25, %v6081_v62 }
 0x117   : > { %6104 = vst [vmem:[#allocation42_spill] sm:$0xff] %v4147_v45  ;;  %v4172_v45 = vmul.f32 %v4168_v53, %v6081_v62 }
 0x118   : > { %6105 = vst [vmem:[#allocation46_spill] sm:$0xff] %v4154_v49  ;;  %v4179_v49 = vmul.f32 %v4175_v60, %v6081_v62 }
 0x119   : > { %6106 = vst [vmem:[#allocation47_spill] sm:$0xff] %v4161_v25  ;;  %v4186_v25 = vmul.f32 %v4182_v4, %v6081_v62 }
 0x11a   : > { %6107 = vst [vmem:[#allocation50_spill] sm:$0xff] %v4168_v53  ;;  %v4193_v53 = vmul.f32 %v4189_v37, %v6081_v62 }
 0x11b   : > { %6108 = vst [vmem:[#allocation51_spill] sm:$0xff] %v4175_v60  ;;  %v4200_v60 = vmul.f32 %v4196_v7, %v6081_v62 }
 0x11c   : > { %6109 = vst [vmem:[#allocation55_spill] sm:$0xff] %v4182_v4  ;;  %v4207_v4 = vmul.f32 %v4203_v6, %v6081_v62 }
 0x11d   : > { %6110 = vst [vmem:[#allocation56_spill] sm:$0xff] %v4189_v37  ;;  %v4217_v37 = vld [vmem:[%s2407_s30 + $0x130] sm:$0x3] }
 0x11e   : > { %6111 = vst [vmem:[#allocation60_spill] sm:$0xff] %v4196_v7  ;;  %v4221_v27 = vmul.f32 %v4217_v37, %v6081_v62  ;;  %v4224_v7 = vld [vmem:[%s2407_s30 + $0x138] sm:$0xff] }
 0x11f   : > { %6112 = vst [vmem:[#allocation61_spill] sm:$0xff] %v4203_v6  ;;  %v4228_v58 = vmul.f32 %v4224_v7, %v6081_v62  ;;  %v4231_v6 = vld [vmem:[%s2407_s30 + $0x140] sm:$0xff] }
 0x120   : > { %6113 = vst [vmem:[#allocation65_spill] sm:$0xff] %v4210_v0  ;;  %v4235_v0 = vmul.f32 %v4231_v6, %v6081_v62 }
 0x121   : > { %6114 = vst [vmem:[#allocation66_spill] sm:$0xff] %v4217_v37  ;;  %v4242_v37 = vmul.f32 %v4238_v21, %v6081_v62 }
 0x122   : > { %6115 = vst [vmem:[#allocation70_spill] sm:$0xff] %v4224_v7  ;;  %v4249_v7 = vmul.f32 %v4245_v59, %v6081_v62 }
 0x123   : > { %6116 = vst [vmem:[#allocation71_spill] sm:$0xff] %v4231_v6  ;;  %v4256_v6 = vmul.f32 %v4252_v18, %v6081_v62 }
 0x124   : > { %6117 = vst [vmem:[#allocation75_spill] sm:$0xff] %v4238_v21  ;;  %v1158_v21 = vrot.slane %v3990_v1, 2  ;;  %v4283_v1 = vmul.f32 %v4279_v20, %v6081_v62 }
 0x125   : > { %6118 = vst [vmem:[#allocation76_spill] sm:$0xff] %v4245_v59  ;;  %v1160_v59 = vrot.slane %v3997_v2, 2 }
 0x126   : > { %6119 = vst [vmem:[#allocation77_spill] sm:$0xff] %v4252_v18  ;;  %v4272_v18 = vld [vmem:[%s2407_s30 + $0x168] sm:$0xff] }
 0x127   : > { %6120 = vst [vmem:[#allocation78_spill] sm:$0xff] %v4262_v55  ;;  %v4276_v33 = vmul.f32 %v4272_v18, %v6081_v62  ;;  %v4286_v55 = vld [vmem:[%s2407_s30 + $0x178] sm:$0x3] }
 0x128   : > { %6121 = vst [vmem:[#allocation9_spill] sm:$0xff] %v4272_v18  ;;  %v4290_v2 = vmul.f32 %v4286_v55, %v6081_v62  ;;  %v4298_v18 = vmul.f32 %v6081_v62, %v6125_v32  ;;  %v4315_v32 = vsel %vm607_vm1, %v1160_v59, %v1161_v22  ;;  %v4318_v62 = vsel %vm607_vm1, %v1161_v22, %v1163_v5 }
 0x129   : > { %6122 = vst [vmem:[#allocation8_spill] sm:$0xff] %v4279_v20  ;;  %v1165_v20 = vrot.slane %v4018_v34, 2  ;;  %v1171_v34 = vrot.slane %v4046_v42, 2  ;;  %v1183_v59 = vrot.slane %v4095_v38, 2  ;;  %v1186_v5 = vrot.slane %v4109_v44, 2 }
 0x12a   : > { %6123 = vst [vmem:[#allocation10_spill] sm:$0xff] %v4286_v55  ;;  %v4310_v55 = vsel %vm607_vm1, %v1156_v23, %v1158_v21  ;;  %v1178_v23 = vrot.slane %v4074_v13, 2  ;;  %v1180_v21 = vrot.slane %v4081_v50, 2  ;;  %v1188_v22 = vrot.slane %v4116_v11, 2 }
 0x12b   : > { %v1190_v42 = vrot.slane %v4123_v9, 2  ;;  %v1167_v28 = vsel %vm607_vm1, %v1165_v20, %v1166_v31  ;;  %v1169_v13 = vsel %vm607_vm1, %v1166_v31, %v1168_v8  ;;  %v1195_v50 = vrot.slane %v4144_v40, 2 }
 0x12c   : > { %v1196_v38 = vrot.slane %v4151_v39, 2  ;;  %v1172_v57 = vsel %vm607_vm1, %v1170_v12, %v1171_v34  ;;  %v1174_v44 = vsel %vm607_vm1, %v1171_v34, %v1173_v48  ;;  %v1177_v11 = vsel %vm607_vm1, %v1175_v35, %v1176_v56 }
 0x12d   : > { %v1198_v9 = vrot.slane %v4158_v15, 2  ;;  %v1179_v14 = vsel %vm607_vm1, %v1176_v56, %v1178_v23  ;;  %v1182_v36 = vsel %vm607_vm1, %v1180_v21, %v1181_v16  ;;  %v1184_v19 = vsel %vm607_vm1, %v1181_v16, %v1183_v59 }
 0x12e   : > { %v1187_v31 = vsel %vm607_vm1, %v1185_v26, %v1186_v5  ;;  %v1189_v40 = vsel %vm607_vm1, %v1186_v5, %v1188_v22  ;;  %v1192_v39 = vsel %vm607_vm1, %v1190_v42, %v1191_v10  ;;  %v1194_v12 = vsel %vm607_vm1, %v1191_v10, %v1193_v30 }
 0x12f   : > { %v1200_v20 = vrot.slane %v4165_v61, 2  ;;  %v1197_v8 = vsel %vm607_vm1, %v1195_v50, %v1196_v38  ;;  %v1201_v15 = vrot.slane %v4172_v45, 2  ;;  %v1203_v56 = vrot.slane %v4179_v49, 2 }
 0x130   : > { %v1205_v34 = vrot.slane %v4186_v25, 2  ;;  %v1199_v48 = vsel %vm607_vm1, %v1196_v38, %v1198_v9  ;;  %v1206_v35 = vrot.slane %v4193_v53, 2  ;;  %v1208_v23 = vrot.slane %v4200_v60, 2 }
 0x131   : > { %v1210_v21 = vrot.slane %v4207_v4, 2  ;;  %v1211_v16 = vrot.slane %v4214_v41, 2  ;;  %v1213_v61 = vrot.slane %v4221_v27, 2  ;;  %v1215_v59 = vrot.slane %v4228_v58, 2 }
 0x132   : > { %v1216_v45 = vrot.slane %v4235_v0, 2  ;;  %v1218_v49 = vrot.slane %v4242_v37, 2  ;;  %v1220_v25 = vrot.slane %v4249_v7, 2  ;;  %v1221_v26 = vrot.slane %v4256_v6, 2 }
 0x133   : > { %v1223_v53 = vrot.slane %v4266_v29, 2  ;;  %v1202_v60 = vsel %vm607_vm1, %v1200_v20, %v1201_v15  ;;  %v1225_v4 = vrot.slane %v4276_v33, 2  ;;  %v1226_v41 = vrot.slane %v4283_v1, 2  ;;  %v6129_v20 = vld [vmem:[#allocation12_spill] sm:$0xff] }
 0x134   : > { %v1228_v27 = vrot.slane %v4290_v2, 2  ;;  %v1204_v58 = vsel %vm607_vm1, %v1201_v15, %v1203_v56  ;;  %v1230_v0 = vrot.slane %v4294_v52, 2  ;;  %v1231_v37 = vrot.slane %v4298_v18, 2  ;;  %v6131_v56 = vld [vmem:[#allocation14_spill] sm:$0xff] }
 0x135   : > { %v1233_v7 = vrot.slane %v4302_v46, 2  ;;  %v1207_v6 = vsel %vm607_vm1, %v1205_v34, %v1206_v35  ;;  %v1209_v29 = vsel %vm607_vm1, %v1206_v35, %v1208_v23  ;;  %v1212_v5 = vsel %vm607_vm1, %v1210_v21, %v1211_v16 }
 0x136   : > { %v1214_v33 = vsel %vm607_vm1, %v1211_v16, %v1213_v61  ;;  %v1217_v1 = vsel %vm607_vm1, %v1215_v59, %v1216_v45  ;;  %v1219_v2 = vsel %vm607_vm1, %v1216_v45, %v1218_v49  ;;  %v1222_v22 = vsel %vm607_vm1, %v1220_v25, %v1221_v26  ;;  %v6140_v59 = vld [vmem:[#allocation24_spill] sm:$0xff]  ;;  %v6141_v45 = vld [vmem:[#allocation25_spill] sm:$0xff]  ;;  %v6142_v49 = vld [vmem:[#allocation26_spill] sm:$0xff] }
 0x137   : > { %v1224_v52 = vsel %vm607_vm1, %v1221_v26, %v1223_v53  ;;  %v1227_v18 = vsel %vm607_vm1, %v1225_v4, %v1226_v41  ;;  %v1229_v46 = vsel %vm607_vm1, %v1226_v41, %v1228_v27  ;;  %v4386_v42 = vadd.f32 %v4307_v3, %v3880_v47  ;;  %v4405_v47 = vld [vmem:[%s5507_s1 + $0x8] sm:$0x7]  ;;  %v6143_v25 = vld [vmem:[#allocation29_spill] sm:$0xff]  ;;  %v6145_v26 = vld [vmem:[#allocation30_spill] sm:$0xff] }
 0x138   : > { %v4390_v10 = vadd.f32 %v4310_v55, %v3884_v51  ;;  %v1232_v30 = vsel %vm607_vm1, %v1230_v0, %v1231_v37  ;;  %v1234_v50 = vsel %vm607_vm1, %v1231_v37, %v1233_v7  ;;  %v4396_v38 = vadd.f32 %v4315_v32, %v3890_v17  ;;  %6127 = vst [vmem:[#allocation11_spill] sm:$0xff] %v4405_v47  ;;  %v6128_v17 = vld [vmem:[#allocation33_spill] sm:$0xff]  ;;  %v6147_v53 = vld [vmem:[#allocation31_spill] sm:$0xff]  ;;  %v6149_v4 = vld [vmem:[#allocation38_spill] sm:$0xff] }
 0x139   : > { %v4400_v9 = vadd.f32 %v4318_v62, %v3894_v24  ;;  %v4408_v51 = vadd.f32 %v1167_v28, %v3897_v43  ;;  %v4411_v3 = vadd.f32 %v1169_v13, %v3900_v54  ;;  %v4414_v55 = vadd.f32 %v1172_v57, %v3903_v63  ;;  %v6130_v62 = vld [vmem:[#allocation13_spill] sm:$0xff]  ;;  %v6132_v43 = vld [vmem:[#allocation15_spill] sm:$0xff]  ;;  %v6133_v54 = vld [vmem:[#allocation16_spill] sm:$0xff] }
 0x13a   : > { %v4417_v32 = vadd.f32 %v1174_v44, %v6128_v17  ;;  %v4420_v24 = vadd.f32 %v1177_v11, %v6129_v20  ;;  %v4423_v15 = vadd.f32 %v1179_v14, %v6130_v62  ;;  %v4426_v34 = vadd.f32 %v1182_v36, %v6131_v56  ;;  %v6134_v63 = vld [vmem:[#allocation17_spill] sm:$0xff]  ;;  %v6135_v44 = vld [vmem:[#allocation18_spill] sm:$0xff]  ;;  %v6136_v11 = vld [vmem:[#allocation19_spill] sm:$0xff] }
 0x13b   : > { %v4429_v28 = vadd.f32 %v1184_v19, %v6132_v43  ;;  %v4432_v13 = vadd.f32 %v1187_v31, %v6133_v54  ;;  %v4435_v57 = vadd.f32 %v1189_v40, %v6134_v63  ;;  %v4438_v35 = vadd.f32 %v1192_v39, %v6135_v44  ;;  %v6137_v14 = vld [vmem:[#allocation20_spill] sm:$0xff]  ;;  %v6138_v36 = vld [vmem:[#allocation21_spill] sm:$0xff]  ;;  %v6139_v19 = vld [vmem:[#allocation22_spill] sm:$0xff] }
 0x13c   : > { %v4441_v23 = vadd.f32 %v1194_v12, %v6136_v11  ;;  %v4444_v21 = vadd.f32 %v1197_v8, %v6137_v14  ;;  %v4447_v16 = vadd.f32 %v1199_v48, %v6138_v36  ;;  %v4450_v61 = vadd.f32 %v1202_v60, %v6139_v19  ;;  %v6151_v27 = vld [vmem:[#allocation34_spill] sm:$0xff]  ;;  %v6153_v0 = vld [vmem:[#allocation35_spill] sm:$0xff]  ;;  %v6164_v56 = vld [vmem:[#allocation45_spill] sm:$0xff] }
 0x13d   : > { %v1299_v31 = vperm.slane %v4405_v47, 0  ;;  %v4454_v40 = vadd.f32 %v1204_v58, %v6140_v59  ;;  %v4457_v39 = vadd.f32 %v1207_v6, %v6141_v45  ;;  %v4460_v12 = vadd.f32 %v1209_v29, %v6142_v49  ;;  %v6155_v7 = vld [vmem:[#allocation43_spill] sm:$0xff]  ;;  %v6169_v11 = vld [vmem:[#allocation54_spill] sm:$0xff]  ;;  %v6173_v49 = vld [vmem:[#allocation64_spill] sm:$0xff] }
 0x13e   : > { %v4463_v8 = vadd.f32 %v1212_v5, %v6143_v25  ;;  %v4466_v48 = vadd.f32 %v1214_v33, %v6145_v26  ;;  %v4469_v60 = vadd.f32 %v1217_v1, %v6147_v53  ;;  %v4472_v41 = vadd.f32 %v1219_v2, %v6149_v4  ;;  %v6157_v29 = vld [vmem:[#allocation39_spill] sm:$0xff]  ;;  %v6159_v33 = vld [vmem:[#allocation40_spill] sm:$0xff]  ;;  %v6170_v14 = vld [vmem:[#allocation58_spill] sm:$0xff] }
 0x13f   : > { %v4475_v58 = vadd.f32 %v1222_v22, %v6151_v27  ;;  %v4478_v37 = vadd.f32 %v1224_v52, %v6153_v0  ;;  %v4481_v6 = vadd.f32 %v1227_v18, %v6155_v7  ;;  %v4484_v5 = vadd.f32 %v1229_v46, %v6157_v29  ;;  %v6161_v1 = vld [vmem:[#allocation52_spill] sm:$0xff]  ;;  %v6167_v18 = vld [vmem:[#allocation49_spill] sm:$0xff]  ;;  %v6172_v59 = vld [vmem:[#allocation63_spill] sm:$0xff] }
 0x140   : > { %6144 = vst [vmem:[#allocation82_spill] sm:$0xff] %v4463_v8  ;;  %v4487_v17 = vadd.f32 %v1232_v30, %v6159_v33  ;;  %v4490_v20 = vadd.f32 %v1234_v50, %v6161_v1  ;;  %v6163_v2 = vld [vmem:[#allocation44_spill] sm:$0xff]  ;;  %v1301_v22 = vmul.f32 %v6164_v56, %v1299_v31  ;;  %v4495_v43 = vperm.slane %v4405_v47, 1  ;;  %v6168_v46 = vld [vmem:[#allocation53_spill] sm:$0xff]  ;;  %v6171_v50 = vld [vmem:[#allocation59_spill] sm:$0xff] }
 0x141   : > { %6146 = vst [vmem:[#allocation23_spill] sm:$0xff] %v4466_v48  ;;  %v1300_v62 = vmul.f32 %v6163_v2, %v1299_v31  ;;  %v6166_v52 = vld [vmem:[#allocation48_spill] sm:$0xff]  ;;  %v1303_v63 = vmul.f32 %v6167_v18, %v1299_v31  ;;  %v1304_v44 = vmul.f32 %v6168_v46, %v1299_v31  ;;  %v1305_v30 = vmul.f32 %v6169_v11, %v1299_v31  ;;  %v6175_v4 = vld [vmem:[#allocation69_spill] sm:$0xff]  ;;  %v6177_v29 = vld [vmem:[#allocation74_spill] sm:$0xff] }
 0x142   : > { %6148 = vst [vmem:[#allocation27_spill] sm:$0xff] %v4469_v60  ;;  %v1302_v54 = vmul.f32 %v6166_v52, %v1299_v31  ;;  %v1306_v36 = vmul.f32 %v6170_v14, %v1299_v31  ;;  %v1307_v19 = vmul.f32 %v6171_v50, %v1299_v31  ;;  %v1308_v45 = vmul.f32 %v6172_v59, %v1299_v31  ;;  %v6174_v26 = vld [vmem:[#allocation68_spill] sm:$0xff]  ;;  %v6176_v0 = vld [vmem:[#allocation73_spill] sm:$0xff]  ;;  %v6179_v11 = vld [vmem:[#allocation42_spill] sm:$0xff] }
 0x143   : > { %6150 = vst [vmem:[#allocation28_spill] sm:$0xff] %v4472_v41  ;;  %v1309_v25 = vmul.f32 %v6173_v49, %v1299_v31  ;;  %v1310_v53 = vmul.f32 %v6174_v26, %v1299_v31  ;;  %v1311_v27 = vmul.f32 %v6175_v4, %v1299_v31  ;;  %v1312_v7 = vmul.f32 %v6176_v0, %v1299_v31  ;;  %v6178_v1 = vld [vmem:[#allocation41_spill] sm:$0xff]  ;;  %v6180_v14 = vld [vmem:[#allocation47_spill] sm:$0xff]  ;;  %v6181_v50 = vld [vmem:[#allocation50_spill] sm:$0xff] }
 0x144   : > { %6152 = vst [vmem:[#allocation33_spill] sm:$0xff] %v4475_v58  ;;  %v1313_v33 = vmul.f32 %v6177_v29, %v1299_v31  ;;  %v1314_v47 = vmul.f32 %v6178_v1, %v1299_v31  ;;  %v1315_v46 = vmul.f32 %v6179_v11, %v1299_v31  ;;  %v1316_v18 = vmul.f32 %v6180_v14, %v1299_v31  ;;  %v4514_v59 = vld [vmem:[%s2407_s30 + $0x198] sm:$0xff]  ;;  %v6184_v26 = vld [vmem:[#allocation56_spill] sm:$0xff]  ;;  %v6185_v4 = vld [vmem:[#allocation61_spill] sm:$0xff] }
 0x145   : > { %6154 = vst [vmem:[#allocation12_spill] sm:$0xff] %v4478_v37  ;;  %v1317_v52 = vmul.f32 %v6181_v50, %v1299_v31  ;;  %v6183_v49 = vld [vmem:[#allocation55_spill] sm:$0xff]  ;;  %v1319_v2 = vmul.f32 %v6184_v26, %v1299_v31  ;;  %v6190_v37 = vld [vmem:[#allocation77_spill] sm:$0xff]  ;;  %v6193_v60 = vld [vmem:[#allocation8_spill] sm:$0xff] }
 0x146   : > { %6156 = vst [vmem:[#allocation13_spill] sm:$0xff] %v4481_v6  ;;  %v1318_v56 = vmul.f32 %v6183_v49, %v1299_v31  ;;  %v6189_v6 = vld [vmem:[#allocation76_spill] sm:$0xff]  ;;  %v1325_v14 = vmul.f32 %v6190_v37, %v1299_v31  ;;  %v6192_v50 = vld [vmem:[#allocation9_spill] sm:$0xff]  ;;  %v1327_v49 = vmul.f32 %v6193_v60, %v1299_v31  ;;  %v4540_v37 = vadd.f32 %v1302_v54, %v4396_v38 }
 0x147   : > { %6158 = vst [vmem:[#allocation14_spill] sm:$0xff] %v4484_v5  ;;  %v6188_v5 = vld [vmem:[#allocation71_spill] sm:$0xff]  ;;  %v1324_v11 = vmul.f32 %v6189_v6, %v1299_v31  ;;  %v1326_v41 = vmul.f32 %v6192_v50, %v1299_v31  ;;  %v6194_v48 = vld [vmem:[#allocation36_spill] sm:$0xff]  ;;  %v6195_v8 = vld [vmem:[#allocation37_spill] sm:$0xff]  ;;  %v4537_v6 = vadd.f32 %v1301_v22, %v4390_v10  ;;  %v4543_v50 = vadd.f32 %v1303_v63, %v4400_v9 }
 0x148   : > { %6160 = vst [vmem:[#allocation15_spill] sm:$0xff] %v4487_v17  ;;  %v6187_v17 = vld [vmem:[#allocation70_spill] sm:$0xff]  ;;  %v1323_v1 = vmul.f32 %v6188_v5, %v1299_v31  ;;  %v4525_v58 = vld [vmem:[%s2407_s30 + $0x1a0] sm:$0xff]  ;;  %v1328_v26 = vmul.f32 %v1299_v31, %v6194_v48  ;;  %v4534_v5 = vadd.f32 %v1300_v62, %v4386_v42  ;;  %v4546_v48 = vadd.f32 %v1304_v44, %v4408_v51 }
 0x149   : > { %6162 = vst [vmem:[#allocation16_spill] sm:$0xff] %v4490_v20  ;;  %v6186_v20 = vld [vmem:[#allocation65_spill] sm:$0xff]  ;;  %v1322_v29 = vmul.f32 %v6187_v17, %v1299_v31  ;;  %v1331_v17 = vmul.f32 %v1299_v31, %v4525_v58  ;;  %v4555_v42 = vadd.f32 %v1307_v19, %v4417_v32  ;;  %v4558_v10 = vadd.f32 %v1308_v45, %v4420_v24 }
 0x14a   : > { %6165 = vst [vmem:[#allocation17_spill] sm:$0xff] %v4495_v43  ;;  %v1320_v43 = vmul.f32 %v6185_v4, %v1299_v31  ;;  %v1321_v0 = vmul.f32 %v6186_v20, %v1299_v31  ;;  %v1329_v4 = vmul.f32 %v1299_v31, %v6195_v8  ;;  %v1330_v20 = vmul.f32 %v1299_v31, %v4514_v59  ;;  %v6235_v45 = vld [vmem:[#allocation57_spill] sm:$0xff] }
 0x14b   : > { %6182 = vst [vmem:[#allocation18_spill] sm:$0xff] %v4514_v59  ;;  %v4549_v8 = vadd.f32 %v1305_v30, %v4411_v3  ;;  %v4552_v31 = vadd.f32 %v1306_v36, %v4414_v55  ;;  %v4561_v38 = vadd.f32 %v1309_v25, %v4423_v15  ;;  %v4564_v9 = vadd.f32 %v1310_v53, %v4426_v34  ;;  %v6236_v25 = vld [vmem:[#allocation48_spill] sm:$0xff]  ;;  %v6237_v53 = vld [vmem:[#allocation49_spill] sm:$0xff] }
 0x14c   : > { %6191 = vst [vmem:[#allocation19_spill] sm:$0xff] %v4525_v58  ;;  %v4567_v51 = vadd.f32 %v1311_v27, %v4429_v28  ;;  %v4570_v3 = vadd.f32 %v1312_v7, %v4432_v13  ;;  %v4573_v55 = vadd.f32 %v1313_v33, %v4435_v57  ;;  %v4576_v32 = vadd.f32 %v1314_v47, %v4438_v35  ;;  %v6212_v35 = vld [vmem:[#allocation82_spill] sm:$0xff]  ;;  %v6239_v27 = vld [vmem:[#allocation53_spill] sm:$0xff]  ;;  %v6241_v33 = vld [vmem:[#allocation67_spill] sm:$0xff] }
 0x14d   : > { %6196 = vst [vmem:[#allocation20_spill] sm:$0xff] %v4552_v31  ;;  %v4579_v24 = vadd.f32 %v1315_v46, %v4441_v23  ;;  %v4582_v15 = vadd.f32 %v1316_v18, %v4444_v21  ;;  %v4585_v34 = vadd.f32 %v1317_v52, %v4447_v16  ;;  %v4588_v28 = vadd.f32 %v1318_v56, %v4450_v61  ;;  %v6214_v21 = vld [vmem:[#allocation23_spill] sm:$0xff]  ;;  %v6218_v61 = vld [vmem:[#allocation28_spill] sm:$0xff]  ;;  %v6240_v7 = vld [vmem:[#allocation54_spill] sm:$0xff] }
 0x14e   : > { %6197 = vst [vmem:[#allocation21_spill] sm:$0xff] %v4555_v42  ;;  %v4591_v13 = vadd.f32 %v1319_v2, %v4454_v40  ;;  %v4594_v57 = vadd.f32 %v1320_v43, %v4457_v39  ;;  %v4597_v47 = vadd.f32 %v1321_v0, %v4460_v12  ;;  %v4600_v23 = vadd.f32 %v1322_v29, %v6212_v35  ;;  %v6216_v16 = vld [vmem:[#allocation27_spill] sm:$0xff]  ;;  %v6220_v40 = vld [vmem:[#allocation33_spill] sm:$0xff]  ;;  %v6222_v39 = vld [vmem:[#allocation12_spill] sm:$0xff] }
 0x14f   : > { %6198 = vst [vmem:[#allocation22_spill] sm:$0xff] %v4558_v10  ;;  %v4603_v62 = vadd.f32 %v1323_v1, %v6214_v21  ;;  %v4606_v22 = vadd.f32 %v1324_v11, %v6216_v16  ;;  %v4609_v56 = vadd.f32 %v1325_v14, %v6218_v61  ;;  %v4612_v2 = vadd.f32 %v1326_v41, %v6220_v40  ;;  %v6224_v12 = vld [vmem:[#allocation13_spill] sm:$0xff]  ;;  %v6226_v54 = vld [vmem:[#allocation14_spill] sm:$0xff]  ;;  %v6228_v63 = vld [vmem:[#allocation15_spill] sm:$0xff] }
 0x150   : > { %6199 = vst [vmem:[#allocation24_spill] sm:$0xff] %v4561_v38  ;;  %v4615_v43 = vadd.f32 %v1327_v49, %v6222_v39  ;;  %v4618_v52 = vadd.f32 %v1328_v26, %v6224_v12  ;;  %v4621_v18 = vadd.f32 %v1329_v4, %v6226_v54  ;;  %v4624_v46 = vadd.f32 %v1330_v20, %v6228_v63  ;;  %v6230_v44 = vld [vmem:[#allocation16_spill] sm:$0xff]  ;;  %v6234_v41 = vld [vmem:[#allocation45_spill] sm:$0xff]  ;;  %v6242_v35 = vld [vmem:[#allocation58_spill] sm:$0xff] }
 0x151   : > { %6200 = vst [vmem:[#allocation25_spill] sm:$0xff] %v4564_v9  ;;  %v4627_v11 = vadd.f32 %v1331_v17, %v6230_v44  ;;  %v6232_v30 = vld [vmem:[#allocation17_spill] sm:$0xff]  ;;  %v6233_v14 = vld [vmem:[#allocation44_spill] sm:$0xff]  ;;  %v6238_v17 = vld [vmem:[#allocation62_spill] sm:$0xff] }
 0x152   : > { %6201 = vst [vmem:[#allocation26_spill] sm:$0xff] %v4567_v51  ;;  %v1365_v36 = vmul.f32 %v6233_v14, %v6232_v30  ;;  %v1366_v19 = vmul.f32 %v6234_v41, %v6232_v30  ;;  %v1367_v49 = vmul.f32 %v6235_v45, %v6232_v30  ;;  %v4637_v26 = vmul.f32 %v6236_v25, %v6232_v30  ;;  %v6243_v16 = vld [vmem:[#allocation59_spill] sm:$0xff]  ;;  %v6244_v40 = vld [vmem:[#allocation72_spill] sm:$0xff]  ;;  %v6253_v25 = vld [vmem:[#allocation81_spill] sm:$0xff] }
 0x153   : > { %6202 = vst [vmem:[#allocation29_spill] sm:$0xff] %v4570_v3  ;;  %v4641_v20 = vmul.f32 %v6237_v53, %v6232_v30  ;;  %v4645_v4 = vmul.f32 %v6238_v17, %v6232_v30  ;;  %v4649_v0 = vmul.f32 %v6239_v27, %v6232_v30  ;;  %v4653_v29 = vmul.f32 %v6240_v7, %v6232_v30  ;;  %v6245_v12 = vld [vmem:[#allocation63_spill] sm:$0xff]  ;;  %v6246_v63 = vld [vmem:[#allocation64_spill] sm:$0xff]  ;;  %v6249_v7 = vld [vmem:[#allocation69_spill] sm:$0xff] }
 0x154   : > { %6203 = vst [vmem:[#allocation30_spill] sm:$0xff] %v4573_v55  ;;  %v4657_v1 = vmul.f32 %v6241_v33, %v6232_v30  ;;  %v4661_v21 = vmul.f32 %v6242_v35, %v6232_v30  ;;  %v4665_v61 = vmul.f32 %v6243_v16, %v6232_v30  ;;  %v4669_v39 = vmul.f32 %v6244_v40, %v6232_v30  ;;  %v6248_v33 = vld [vmem:[#allocation68_spill] sm:$0xff]  ;;  %v6251_v17 = vld [vmem:[#allocation73_spill] sm:$0xff]  ;;  %v6252_v53 = vld [vmem:[#allocation74_spill] sm:$0xff] }
 0x155   : > { %6204 = vst [vmem:[#allocation31_spill] sm:$0xff] %v4576_v32  ;;  %v4673_v54 = vmul.f32 %v6245_v12, %v6232_v30  ;;  %v4677_v44 = vmul.f32 %v6246_v63, %v6232_v30  ;;  %v4685_v16 = vmul.f32 %v6248_v33, %v6232_v30  ;;  %v4689_v40 = vmul.f32 %v6249_v7, %v6232_v30  ;;  %v6250_v27 = vld [vmem:[#allocation80_spill] sm:$0xff]  ;;  %v6254_v45 = vld [vmem:[#allocation41_spill] sm:$0xff]  ;;  %v6255_v41 = vld [vmem:[#allocation42_spill] sm:$0xff] }
 0x156   : > { %6205 = vst [vmem:[#allocation38_spill] sm:$0xff] %v4579_v24  ;;  %v4693_v12 = vmul.f32 %v6250_v27, %v6232_v30  ;;  %v4697_v63 = vmul.f32 %v6251_v17, %v6232_v30  ;;  %v4705_v33 = vmul.f32 %v6253_v25, %v6232_v30  ;;  %v4709_v7 = vmul.f32 %v6254_v45, %v6232_v30  ;;  %v6256_v14 = vld [vmem:[#allocation46_spill] sm:$0xff]  ;;  %v6259_v45 = vld [vmem:[#allocation51_spill] sm:$0xff]  ;;  %v6275_v9 = vld [vmem:[#allocation36_spill] sm:$0xff] }
 0x157   : > { %6206 = vst [vmem:[#allocation34_spill] sm:$0xff] %v4582_v15  ;;  %v4713_v27 = vmul.f32 %v6255_v41, %v6232_v30  ;;  %v4717_v17 = vmul.f32 %v6256_v14, %v6232_v30  ;;  %v6258_v25 = vld [vmem:[#allocation50_spill] sm:$0xff]  ;;  %v6260_v41 = vld [vmem:[#allocation55_spill] sm:$0xff]  ;;  %v4776_v15 = vld [vmem:[%s2407_s30 + $0x1a8] sm:$0x3]  ;;  %v1462_v32 = vrot.slane %v1366_v19, 1  ;;  %v4796_v38 = vmul.f32 %v6232_v30, %v6275_v9 }
 0x158   : > { %6207 = vst [vmem:[#allocation35_spill] sm:$0xff] %v4585_v34  ;;  %v6270_v34 = vld [vmem:[#allocation77_spill] sm:$0xff]  ;;  %v1464_v55 = vrot.slane %v1367_v49, 1  ;;  %v6277_v19 = vld [vmem:[#allocation32_spill] sm:$0xff]  ;;  %v4816_v9 = vmul.f32 %v6232_v30, %v4776_v15  ;;  %v1469_v10 = vrot.slane %v4645_v4, 1  ;;  %v1471_v42 = vrot.slane %v4649_v0, 1 }
 0x159   : > { %6208 = vst [vmem:[#allocation43_spill] sm:$0xff] %v4588_v28  ;;  %v6269_v28 = vld [vmem:[#allocation76_spill] sm:$0xff]  ;;  %v4804_v49 = vmul.f32 %v6232_v30, %v6277_v19  ;;  %v1474_v31 = vrot.slane %v4657_v1, 1  ;;  %v1481_v4 = vrot.slane %v4673_v54, 1  ;;  %v1489_v0 = vrot.slane %v4693_v12, 1 }
 0x15a   : > { %6209 = vst [vmem:[#allocation39_spill] sm:$0xff] %v4591_v13  ;;  %v6268_v13 = vld [vmem:[#allocation75_spill] sm:$0xff]  ;;  %v1499_v54 = vrot.slane %v4717_v17, 1 }
 0x15b   : > { %6210 = vst [vmem:[#allocation40_spill] sm:$0xff] %v4594_v57  ;;  %v6267_v57 = vld [vmem:[#allocation71_spill] sm:$0xff] }
 0x15c   : > { %6211 = vst [vmem:[#allocation52_spill] sm:$0xff] %v4597_v47  ;;  %v6266_v47 = vld [vmem:[#allocation70_spill] sm:$0xff] }
 0x15d   : > { %6213 = vst [vmem:[#allocation82_spill] sm:$0xff] %v4600_v23  ;;  %v6265_v23 = vld [vmem:[#allocation66_spill] sm:$0xff] }
 0x15e   : > { %6215 = vst [vmem:[#allocation23_spill] sm:$0xff] %v4603_v62  ;;  %v6264_v62 = vld [vmem:[#allocation65_spill] sm:$0xff] }
 0x15f   : > { %6217 = vst [vmem:[#allocation27_spill] sm:$0xff] %v4606_v22  ;;  %v6263_v22 = vld [vmem:[#allocation61_spill] sm:$0xff] }
 0x160   : > { %6219 = vst [vmem:[#allocation28_spill] sm:$0xff] %v4609_v56  ;;  %v6262_v56 = vld [vmem:[#allocation60_spill] sm:$0xff] }
 0x161   : > { %6221 = vst [vmem:[#allocation33_spill] sm:$0xff] %v4612_v2  ;;  %v6261_v2 = vld [vmem:[#allocation56_spill] sm:$0xff] }
 0x162   : > { %6223 = vst [vmem:[#allocation12_spill] sm:$0xff] %v4615_v43  ;;  %v6247_v43 = vld [vmem:[#allocation79_spill] sm:$0xff]  ;;  %v4737_v14 = vmul.f32 %v6261_v2, %v6232_v30  ;;  %v4757_v2 = vmul.f32 %v6266_v47, %v6232_v30  ;;  %v6272_v47 = vld [vmem:[#allocation78_spill] sm:$0xff] }
 0x163   : > { %6225 = vst [vmem:[#allocation13_spill] sm:$0xff] %v4618_v52  ;;  %v4681_v35 = vmul.f32 %v6247_v43, %v6232_v30  ;;  %v4701_v43 = vmul.f32 %v6252_v53, %v6232_v30  ;;  %v6257_v53 = vld [vmem:[#allocation47_spill] sm:$0xff]  ;;  %v4733_v52 = vmul.f32 %v6260_v41, %v6232_v30  ;;  %v4753_v41 = vmul.f32 %v6265_v23, %v6232_v30 }
 0x164   : > { %6227 = vst [vmem:[#allocation14_spill] sm:$0xff] %v4621_v18  ;;  %v4729_v18 = vmul.f32 %v6259_v45, %v6232_v30  ;;  %v4749_v45 = vmul.f32 %v6264_v62, %v6232_v30  ;;  %v4769_v62 = vmul.f32 %v6269_v28, %v6232_v30  ;;  %v4773_v23 = vmul.f32 %v6270_v34, %v6232_v30  ;;  %v6274_v34 = vld [vmem:[#allocation10_spill] sm:$0xff] }
 0x165   : > { %6229 = vst [vmem:[#allocation15_spill] sm:$0xff] %v4624_v46  ;;  %v4725_v46 = vmul.f32 %v6258_v25, %v6232_v30  ;;  %v4745_v25 = vmul.f32 %v6263_v22, %v6232_v30  ;;  %v4765_v22 = vmul.f32 %v6268_v13, %v6232_v30  ;;  %v4780_v24 = vmul.f32 %v6272_v47, %v6232_v30  ;;  %v6273_v13 = vld [vmem:[#allocation9_spill] sm:$0xff] }
 0x166   : > { %6231 = vst [vmem:[#allocation16_spill] sm:$0xff] %v4627_v11  ;;  %v4721_v11 = vmul.f32 %v6257_v53, %v6232_v30  ;;  %v4741_v53 = vmul.f32 %v6262_v56, %v6232_v30  ;;  %v4761_v56 = vmul.f32 %v6267_v57, %v6232_v30  ;;  %v1461_v57 = vrot.slane %v1365_v36, 1  ;;  %v6276_v47 = vld [vmem:[#allocation37_spill] sm:$0xff] }
 0x167   : > { %6271 = vst [vmem:[#allocation17_spill] sm:$0xff] %v4776_v15  ;;  %v4784_v3 = vmul.f32 %v6273_v13, %v6232_v30  ;;  %v4788_v28 = vmul.f32 %v6193_v60, %v6232_v30  ;;  %v4792_v51 = vmul.f32 %v6274_v34, %v6232_v30  ;;  %v4800_v36 = vmul.f32 %v6232_v30, %v6276_v47 }
 0x168   : > { %v4808_v60 = vmul.f32 %v6232_v30, %v4514_v59  ;;  %v4812_v34 = vmul.f32 %v6232_v30, %v4525_v58  ;;  %v1466_v13 = vrot.slane %v4637_v26, 1  ;;  %v1467_v47 = vrot.slane %v4641_v20, 1 }
 0x169   : > { %v4822_v19 = vsel %vm365_vm0, %v1461_v57, %v1462_v32  ;;  %v4825_v59 = vsel %vm365_vm0, %v1462_v32, %v1464_v55  ;;  %v1472_v58 = vrot.slane %v4653_v29, 1  ;;  %v1476_v30 = vrot.slane %v4661_v21, 1 }
 0x16a   : > { %v1477_v26 = vrot.slane %v4665_v61, 1  ;;  %v1479_v20 = vrot.slane %v4669_v39, 1  ;;  %v1482_v57 = vrot.slane %v4677_v44, 1  ;;  %v1484_v15 = vrot.slane %v4681_v35, 1 }
 0x16b   : > { %v1486_v55 = vrot.slane %v4685_v16, 1  ;;  %v1487_v32 = vrot.slane %v4689_v40, 1  ;;  %v1491_v29 = vrot.slane %v4697_v63, 1  ;;  %v1492_v1 = vrot.slane %v4701_v43, 1 }
 0x16c   : > { %v1494_v21 = vrot.slane %v4705_v33, 1  ;;  %v1496_v61 = vrot.slane %v4709_v7, 1  ;;  %v1497_v39 = vrot.slane %v4713_v27, 1  ;;  %v1468_v35 = vsel %vm365_vm0, %v1466_v13, %v1467_v47 }
 0x16d   : > { %v1470_v16 = vsel %vm365_vm0, %v1467_v47, %v1469_v10  ;;  %v1501_v40 = vrot.slane %v4721_v11, 1  ;;  %v1502_v12 = vrot.slane %v4725_v46, 1  ;;  %v1473_v63 = vsel %vm365_vm0, %v1471_v42, %v1472_v58 }
 0x16e   : > { %v1475_v43 = vsel %vm365_vm0, %v1472_v58, %v1474_v31  ;;  %v1478_v33 = vsel %vm365_vm0, %v1476_v30, %v1477_v26  ;;  %v1480_v7 = vsel %vm365_vm0, %v1477_v26, %v1479_v20  ;;  %v1483_v27 = vsel %vm365_vm0, %v1481_v4, %v1482_v57 }
 0x16f   : > { %v1485_v17 = vsel %vm365_vm0, %v1482_v57, %v1484_v15  ;;  %v1488_v13 = vsel %vm365_vm0, %v1486_v55, %v1487_v32  ;;  %v1490_v10 = vsel %vm365_vm0, %v1487_v32, %v1489_v0  ;;  %v1493_v11 = vsel %vm365_vm0, %v1491_v29, %v1492_v1 }
 0x170   : > { %v1495_v46 = vsel %vm365_vm0, %v1492_v1, %v1494_v21  ;;  %v1498_v42 = vsel %vm365_vm0, %v1496_v61, %v1497_v39  ;;  %v1500_v58 = vsel %vm365_vm0, %v1497_v39, %v1499_v54  ;;  %v1503_v31 = vsel %vm365_vm0, %v1501_v40, %v1502_v12 }
 0x171   : > { %v1504_v44 = vrot.slane %v4729_v18, 1  ;;  %v1506_v47 = vrot.slane %v4733_v52, 1  ;;  %v1507_v15 = vrot.slane %v4737_v14, 1  ;;  %v1509_v30 = vrot.slane %v4741_v53, 1 }
 0x172   : > { %v1511_v26 = vrot.slane %v4745_v25, 1  ;;  %v1512_v20 = vrot.slane %v4749_v45, 1  ;;  %v1514_v4 = vrot.slane %v4753_v41, 1  ;;  %v1516_v57 = vrot.slane %v4757_v2, 1 }
 0x173   : > { %v1517_v55 = vrot.slane %v4761_v56, 1  ;;  %v1519_v32 = vrot.slane %v4765_v22, 1  ;;  %v1521_v18 = vrot.slane %v4769_v62, 1  ;;  %v1522_v52 = vrot.slane %v4773_v23, 1 }
 0x174   : > { %v1524_v14 = vrot.slane %v4780_v24, 1  ;;  %v1526_v53 = vrot.slane %v4784_v3, 1  ;;  %v1527_v25 = vrot.slane %v4788_v28, 1  ;;  %v1529_v45 = vrot.slane %v4792_v51, 1 }
 0x175   : > { %v1531_v41 = vrot.slane %v4796_v38, 1  ;;  %v1532_v2 = vrot.slane %v4800_v36, 1  ;;  %v1534_v56 = vrot.slane %v4804_v49, 1  ;;  %v1505_v22 = vsel %vm365_vm0, %v1502_v12, %v1504_v44 }
 0x176   : > { %v1536_v62 = vrot.slane %v4808_v60, 1  ;;  %v1537_v23 = vrot.slane %v4812_v34, 1  ;;  %v1539_v24 = vrot.slane %v4816_v9, 1  ;;  %v1508_v3 = vsel %vm365_vm0, %v1506_v47, %v1507_v15 }
 0x177   : > { %v1510_v28 = vsel %vm365_vm0, %v1507_v15, %v1509_v30  ;;  %v1513_v51 = vsel %vm365_vm0, %v1511_v26, %v1512_v20  ;;  %v1515_v38 = vsel %vm365_vm0, %v1512_v20, %v1514_v4  ;;  %v1518_v36 = vsel %vm365_vm0, %v1516_v57, %v1517_v55  ;;  %v6279_v15 = vld [vmem:[#allocation20_spill] sm:$0xff] }
 0x178   : > { %v1520_v49 = vsel %vm365_vm0, %v1517_v55, %v1519_v32  ;;  %v1523_v0 = vsel %vm365_vm0, %v1521_v18, %v1522_v52  ;;  %v1525_v60 = vsel %vm365_vm0, %v1522_v52, %v1524_v14  ;;  %v1528_v34 = vsel %vm365_vm0, %v1526_v53, %v1527_v25 }
 0x179   : > { %v4895_v9 = vsel %vm365_vm0, %v1527_v25, %v1529_v45  ;;  %v1533_v29 = vsel %vm365_vm0, %v1531_v41, %v1532_v2  ;;  %v1535_v1 = vsel %vm365_vm0, %v1532_v2, %v1534_v56  ;;  %v1538_v21 = vsel %vm365_vm0, %v1536_v62, %v1537_v23  ;;  %v6308_v45 = vld [vmem:[#allocation23_spill] sm:$0xff] }
 0x17a   : > { %6278 = vst [vmem:[#allocation36_spill] sm:$0xff] %v4895_v9  ;;  %v1540_v61 = vsel %vm365_vm0, %v1537_v23, %v1539_v24  ;;  %v4903_v39 = vadd.f32 %v4822_v19, %v4534_v5  ;;  %v4907_v54 = vadd.f32 %v4825_v59, %v4537_v6  ;;  %v4910_v40 = vadd.f32 %v1468_v35, %v4540_v37  ;;  %v6280_v5 = vld [vmem:[#allocation21_spill] sm:$0xff]  ;;  %v6281_v6 = vld [vmem:[#allocation22_spill] sm:$0xff]  ;;  %v6282_v37 = vld [vmem:[#allocation24_spill] sm:$0xff] }
 0x17b   : > { %v4913_v12 = vadd.f32 %v1470_v16, %v4543_v50  ;;  %v4916_v44 = vadd.f32 %v1473_v63, %v4546_v48  ;;  %v4919_v47 = vadd.f32 %v1475_v43, %v4549_v8  ;;  %v4922_v30 = vadd.f32 %v1478_v33, %v6279_v15  ;;  %v6283_v50 = vld [vmem:[#allocation25_spill] sm:$0xff]  ;;  %v6284_v48 = vld [vmem:[#allocation26_spill] sm:$0xff]  ;;  %v6310_v2 = vld [vmem:[#allocation27_spill] sm:$0xff] }
 0x17c   : > { %v4925_v19 = vadd.f32 %v1480_v7, %v6280_v5  ;;  %v4928_v59 = vadd.f32 %v1483_v27, %v6281_v6  ;;  %v4931_v35 = vadd.f32 %v1485_v17, %v6282_v37  ;;  %v4934_v16 = vadd.f32 %v1488_v13, %v6283_v50  ;;  %v6285_v8 = vld [vmem:[#allocation29_spill] sm:$0xff]  ;;  %v6287_v33 = vld [vmem:[#allocation30_spill] sm:$0xff]  ;;  %v6289_v7 = vld [vmem:[#allocation31_spill] sm:$0xff] }
 0x17d   : > { %v4937_v63 = vadd.f32 %v1490_v10, %v6284_v48  ;;  %v4940_v43 = vadd.f32 %v1493_v11, %v6285_v8  ;;  %v4943_v26 = vadd.f32 %v1495_v46, %v6287_v33  ;;  %v4946_v20 = vadd.f32 %v1498_v42, %v6289_v7  ;;  %v6291_v27 = vld [vmem:[#allocation38_spill] sm:$0xff]  ;;  %v6295_v13 = vld [vmem:[#allocation11_spill] sm:$0xff]  ;;  %v6302_v42 = vld [vmem:[#allocation40_spill] sm:$0xff] }
 0x17e   : > { %v4949_v4 = vadd.f32 %v1500_v58, %v6291_v27  ;;  %v6293_v17 = vld [vmem:[#allocation34_spill] sm:$0xff]  ;;  %v4955_v55 = vperm.slane %v6295_v13, 2  ;;  %v6296_v10 = vld [vmem:[#allocation35_spill] sm:$0xff]  ;;  %v4967_v14 = vadd.f32 %v1513_v51, %v6302_v42  ;;  %v6304_v58 = vld [vmem:[#allocation52_spill] sm:$0xff]  ;;  %v4976_v41 = vadd.f32 %v1520_v49, %v6308_v45 }
 0x17f   : > { %6286 = vst [vmem:[#allocation37_spill] sm:$0xff] %v4940_v43  ;;  %v4952_v57 = vadd.f32 %v1503_v31, %v6293_v17  ;;  %v4958_v32 = vadd.f32 %v1505_v22, %v6296_v10  ;;  %v6298_v11 = vld [vmem:[#allocation43_spill] sm:$0xff]  ;;  %v4970_v53 = vadd.f32 %v1515_v38, %v6304_v58  ;;  %v6306_v31 = vld [vmem:[#allocation82_spill] sm:$0xff]  ;;  %v4979_v56 = vadd.f32 %v1523_v0, %v6310_v2  ;;  %v6312_v22 = vld [vmem:[#allocation28_spill] sm:$0xff] }
 0x180   : > { %6288 = vst [vmem:[#allocation32_spill] sm:$0xff] %v4943_v26  ;;  %v4961_v18 = vadd.f32 %v1508_v3, %v6298_v11  ;;  %v6300_v46 = vld [vmem:[#allocation39_spill] sm:$0xff]  ;;  %v4973_v25 = vadd.f32 %v1518_v36, %v6306_v31  ;;  %v4982_v62 = vadd.f32 %v1525_v60, %v6312_v22  ;;  %v6314_v23 = vld [vmem:[#allocation33_spill] sm:$0xff]  ;;  %v6318_v51 = vld [vmem:[#allocation14_spill] sm:$0xff] }
 0x181   : > { %6290 = vst [vmem:[#allocation20_spill] sm:$0xff] %v4946_v20  ;;  %v4964_v52 = vadd.f32 %v1510_v28, %v6300_v46  ;;  %v4985_v24 = vadd.f32 %v1528_v34, %v6314_v23  ;;  %v6316_v3 = vld [vmem:[#allocation13_spill] sm:$0xff]  ;;  %v4991_v38 = vadd.f32 %v1535_v1, %v6318_v51  ;;  %v6320_v36 = vld [vmem:[#allocation15_spill] sm:$0xff]  ;;  %v6322_v49 = vld [vmem:[#allocation16_spill] sm:$0xff] }
 0x182   : > { %6292 = vst [vmem:[#allocation21_spill] sm:$0xff] %v4949_v4  ;;  %v4988_v28 = vadd.f32 %v1533_v29, %v6316_v3  ;;  %v4994_v15 = vadd.f32 %v1538_v21, %v6320_v36  ;;  %v4997_v5 = vadd.f32 %v1540_v61, %v6322_v49  ;;  %v6324_v0 = vld [vmem:[#allocation44_spill] sm:$0xff]  ;;  %v6325_v60 = vld [vmem:[#allocation45_spill] sm:$0xff]  ;;  %v6329_v48 = vld [vmem:[#allocation62_spill] sm:$0xff] }
 0x183   : > { %6294 = vst [vmem:[#allocation22_spill] sm:$0xff] %v4952_v57  ;;  %v5001_v6 = vmul.f32 %v6324_v0, %v4955_v55  ;;  %v5005_v34 = vmul.f32 %v6325_v60, %v4955_v55  ;;  %v6326_v29 = vld [vmem:[#allocation57_spill] sm:$0xff]  ;;  %v6327_v1 = vld [vmem:[#allocation48_spill] sm:$0xff]  ;;  %v5021_v8 = vmul.f32 %v6329_v48, %v4955_v55  ;;  %v6331_v27 = vld [vmem:[#allocation54_spill] sm:$0xff] }
 0x184   : > { %6297 = vst [vmem:[#allocation24_spill] sm:$0xff] %v4958_v32  ;;  %v5009_v37 = vmul.f32 %v6326_v29, %v4955_v55  ;;  %v5013_v50 = vmul.f32 %v6327_v1, %v4955_v55  ;;  %v6328_v21 = vld [vmem:[#allocation49_spill] sm:$0xff]  ;;  %v5029_v17 = vmul.f32 %v6331_v27, %v4955_v55  ;;  %v6332_v13 = vld [vmem:[#allocation67_spill] sm:$0xff]  ;;  %v6333_v11 = vld [vmem:[#allocation58_spill] sm:$0xff] }
 0x185   : > { %6299 = vst [vmem:[#allocation25_spill] sm:$0xff] %v4961_v18  ;;  %v5017_v61 = vmul.f32 %v6328_v21, %v4955_v55  ;;  %v6330_v33 = vld [vmem:[#allocation53_spill] sm:$0xff]  ;;  %v5033_v10 = vmul.f32 %v6332_v13, %v4955_v55  ;;  %v5037_v46 = vmul.f32 %v6333_v11, %v4955_v55  ;;  %v6334_v42 = vld [vmem:[#allocation59_spill] sm:$0xff]  ;;  %v6335_v31 = vld [vmem:[#allocation72_spill] sm:$0xff]  ;;  %v1702_v43 = vrot.slane %v5001_v6, 2 }
 0x186   : > { %6301 = vst [vmem:[#allocation26_spill] sm:$0xff] %v4964_v52  ;;  %v5025_v7 = vmul.f32 %v6330_v33, %v4955_v55  ;;  %v5041_v58 = vmul.f32 %v6334_v42, %v4955_v55  ;;  %v5045_v45 = vmul.f32 %v6335_v31, %v4955_v55  ;;  %v6336_v2 = vld [vmem:[#allocation63_spill] sm:$0xff]  ;;  %v6337_v23 = vld [vmem:[#allocation64_spill] sm:$0xff]  ;;  %v6340_v60 = vld [vmem:[#allocation69_spill] sm:$0xff] }
 0x187   : > { %6303 = vst [vmem:[#allocation29_spill] sm:$0xff] %v4967_v14  ;;  %v5049_v22 = vmul.f32 %v6336_v2, %v4955_v55  ;;  %v5053_v3 = vmul.f32 %v6337_v23, %v4955_v55  ;;  %v6338_v51 = vld [vmem:[#allocation79_spill] sm:$0xff]  ;;  %v6339_v49 = vld [vmem:[#allocation68_spill] sm:$0xff]  ;;  %v5065_v29 = vmul.f32 %v6340_v60, %v4955_v55  ;;  %v6342_v48 = vld [vmem:[#allocation73_spill] sm:$0xff] }
 0x188   : > { %6305 = vst [vmem:[#allocation30_spill] sm:$0xff] %v4970_v53  ;;  %v5057_v36 = vmul.f32 %v6338_v51, %v4955_v55  ;;  %v5061_v0 = vmul.f32 %v6339_v49, %v4955_v55  ;;  %v6341_v1 = vld [vmem:[#allocation80_spill] sm:$0xff]  ;;  %v5073_v33 = vmul.f32 %v6342_v48, %v4955_v55  ;;  %v6343_v27 = vld [vmem:[#allocation74_spill] sm:$0xff]  ;;  %v6344_v11 = vld [vmem:[#allocation81_spill] sm:$0xff]  ;;  %v1718_v6 = vrot.slane %v5041_v58, 2 }
 0x189   : > { %6307 = vst [vmem:[#allocation31_spill] sm:$0xff] %v4973_v25  ;;  %v5069_v21 = vmul.f32 %v6341_v1, %v4955_v55  ;;  %v5077_v13 = vmul.f32 %v6343_v27, %v4955_v55  ;;  %v5081_v42 = vmul.f32 %v6344_v11, %v4955_v55  ;;  %v6345_v31 = vld [vmem:[#allocation41_spill] sm:$0xff]  ;;  %v6346_v23 = vld [vmem:[#allocation42_spill] sm:$0xff]  ;;  %v6348_v1 = vld [vmem:[#allocation47_spill] sm:$0xff] }
 0x18a   : > { %6309 = vst [vmem:[#allocation38_spill] sm:$0xff] %v4976_v41  ;;  %v5085_v2 = vmul.f32 %v6345_v31, %v4955_v55  ;;  %v5089_v51 = vmul.f32 %v6346_v23, %v4955_v55  ;;  %v6347_v49 = vld [vmem:[#allocation46_spill] sm:$0xff]  ;;  %v5097_v48 = vmul.f32 %v6348_v1, %v4955_v55  ;;  %v6353_v1 = vld [vmem:[#allocation60_spill] sm:$0xff]  ;;  %v6361_v18 = vld [vmem:[#allocation77_spill] sm:$0xff] }
 0x18b   : > { %6311 = vst [vmem:[#allocation34_spill] sm:$0xff] %v4979_v56  ;;  %v5093_v60 = vmul.f32 %v6347_v49, %v4955_v55  ;;  %v6349_v27 = vld [vmem:[#allocation50_spill] sm:$0xff]  ;;  %v6352_v49 = vld [vmem:[#allocation56_spill] sm:$0xff]  ;;  %v5117_v56 = vmul.f32 %v6353_v1, %v4955_v55  ;;  %v6358_v1 = vld [vmem:[#allocation71_spill] sm:$0xff] }
 0x18c   : > { %6313 = vst [vmem:[#allocation11_spill] sm:$0xff] %v4982_v62  ;;  %v5101_v11 = vmul.f32 %v6349_v27, %v4955_v55  ;;  %v6351_v62 = vld [vmem:[#allocation55_spill] sm:$0xff]  ;;  %v5113_v9 = vmul.f32 %v6352_v49, %v4955_v55  ;;  %v6354_v27 = vld [vmem:[#allocation61_spill] sm:$0xff]  ;;  %v6357_v49 = vld [vmem:[#allocation70_spill] sm:$0xff] }
 0x18d   : > { %6315 = vst [vmem:[#allocation35_spill] sm:$0xff] %v4985_v24  ;;  %v6350_v24 = vld [vmem:[#allocation51_spill] sm:$0xff]  ;;  %v5109_v23 = vmul.f32 %v6351_v62, %v4955_v55  ;;  %v5121_v41 = vmul.f32 %v6354_v27, %v4955_v55  ;;  %v6356_v62 = vld [vmem:[#allocation66_spill] sm:$0xff]  ;;  %v5133_v14 = vmul.f32 %v6357_v49, %v4955_v55  ;;  %v6363_v32 = vld [vmem:[#allocation9_spill] sm:$0xff] }
 0x18e   : > { %6317 = vst [vmem:[#allocation43_spill] sm:$0xff] %v4988_v28  ;;  %v5105_v31 = vmul.f32 %v6350_v24, %v4955_v55  ;;  %v6355_v24 = vld [vmem:[#allocation65_spill] sm:$0xff]  ;;  %v5129_v53 = vmul.f32 %v6356_v62, %v4955_v55  ;;  %v6359_v27 = vld [vmem:[#allocation75_spill] sm:$0xff]  ;;  %v5149_v62 = vmul.f32 %v6361_v18, %v4955_v55  ;;  %v6364_v28 = vld [vmem:[#allocation8_spill] sm:$0xff] }
 0x18f   : > { %6319 = vst [vmem:[#allocation39_spill] sm:$0xff] %v4991_v38  ;;  %v5125_v25 = vmul.f32 %v6355_v24, %v4955_v55  ;;  %v5141_v52 = vmul.f32 %v6359_v27, %v4955_v55  ;;  %v6362_v38 = vld [vmem:[#allocation78_spill] sm:$0xff]  ;;  %v5161_v27 = vmul.f32 %v6364_v28, %v4955_v55  ;;  %v2230_v4 = vld [vmem:[%s2407_s30 + $0x180] sm:$0xff]  ;;  %v2231_v20 = vld [vmem:[%s2407_s30 + $0x188] sm:$0xff]  ;;  %v1703_v28 = vrot.slane %v5005_v34, 2 }
 0x190   : > { %6321 = vst [vmem:[#allocation40_spill] sm:$0xff] %v4994_v15  ;;  %v6360_v15 = vld [vmem:[#allocation76_spill] sm:$0xff]  ;;  %v5153_v49 = vmul.f32 %v6362_v38, %v4955_v55  ;;  %v6366_v57 = vld [vmem:[#allocation10_spill] sm:$0xff]  ;;  %v5169_v18 = vmul.f32 %v2230_v4, %v4955_v55  ;;  %v5173_v38 = vmul.f32 %v2231_v20, %v4955_v55  ;;  %v2232_v26 = vld [vmem:[%s2407_s30 + $0x190] sm:$0x3]  ;;  %v1710_v4 = vrot.slane %v5021_v8, 2 }
 0x191   : > { %6323 = vst [vmem:[#allocation52_spill] sm:$0xff] %v4997_v5  ;;  %v5137_v5 = vmul.f32 %v6358_v1, %v4955_v55  ;;  %v5145_v24 = vmul.f32 %v6360_v15, %v4955_v55  ;;  %v5157_v1 = vmul.f32 %v6363_v32, %v4955_v55  ;;  %v5165_v15 = vmul.f32 %v6366_v57, %v4955_v55  ;;  %v6375_v58 = vld [vmem:[#allocation17_spill] sm:$0xff] }
 0x192   : > { %6365 = vst [vmem:[#allocation82_spill] sm:$0xff] %v5161_v27  ;;  %v5177_v32 = vmul.f32 %v2232_v26, %v4955_v55  ;;  %v1705_v27 = vrot.slane %v5009_v37, 2  ;;  %v1707_v57 = vrot.slane %v5013_v50, 2  ;;  %v1713_v20 = vrot.slane %v5029_v17, 2 }
 0x193   : > { %6367 = vst [vmem:[#allocation23_spill] sm:$0xff] %v5165_v15  ;;  %v1708_v15 = vrot.slane %v5017_v61, 2  ;;  %v1717_v26 = vrot.slane %v5037_v46, 2  ;;  %v1720_v34 = vrot.slane %v5045_v45, 2  ;;  %v1722_v37 = vrot.slane %v5049_v22, 2 }
 0x194   : > { %6368 = vst [vmem:[#allocation27_spill] sm:$0xff] %v5169_v18  ;;  %v1712_v18 = vrot.slane %v5025_v7, 2  ;;  %v1723_v50 = vrot.slane %v5053_v3, 2  ;;  %v1725_v61 = vrot.slane %v5057_v36, 2  ;;  %v1727_v8 = vrot.slane %v5061_v0, 2 }
 0x195   : > { %6369 = vst [vmem:[#allocation28_spill] sm:$0xff] %v5173_v38  ;;  %v1715_v38 = vrot.slane %v5033_v10, 2  ;;  %v1728_v7 = vrot.slane %v5065_v29, 2  ;;  %v6373_v10 = vld [vmem:[#allocation19_spill] sm:$0xff]  ;;  %v5206_v45 = vmul.f32 %v4955_v55, %v6375_v58  ;;  %v1730_v22 = vrot.slane %v5069_v21, 2 }
 0x196   : > { %6370 = vst [vmem:[#allocation33_spill] sm:$0xff] %v5177_v32  ;;  %v6371_v32 = vld [vmem:[#allocation18_spill] sm:$0xff]  ;;  %v5202_v46 = vmul.f32 %v4955_v55, %v6373_v10  ;;  %v1704_v3 = vsel %vm607_vm1, %v1702_v43, %v1703_v28  ;;  %v1706_v36 = vsel %vm607_vm1, %v1703_v28, %v1705_v27  ;;  %v1709_v0 = vsel %vm607_vm1, %v1707_v57, %v1708_v15 }
 0x197   : > { %v5198_v17 = vmul.f32 %v4955_v55, %v6371_v32  ;;  %v1711_v29 = vsel %vm607_vm1, %v1708_v15, %v1710_v4  ;;  %v1714_v32 = vsel %vm607_vm1, %v1712_v18, %v1713_v20  ;;  %v1719_v10 = vsel %vm607_vm1, %v1717_v26, %v1718_v6 }
 0x198   : > { %6374 = vst [vmem:[#allocation14_spill] sm:$0xff] %v5202_v46  ;;  %v1721_v46 = vsel %vm607_vm1, %v1718_v6, %v1720_v34  ;;  %v1724_v55 = vsel %vm607_vm1, %v1722_v37, %v1723_v50  ;;  %v1726_v21 = vsel %vm607_vm1, %v1723_v50, %v1725_v61  ;;  %v5220_v43 = vsel %vm607_vm1, %v1727_v8, %v1728_v7 }
 0x199   : > { %6372 = vst [vmem:[#allocation13_spill] sm:$0xff] %v5198_v17  ;;  %v1716_v17 = vsel %vm607_vm1, %v1713_v20, %v1715_v38  ;;  %v1732_v27 = vrot.slane %v5073_v33, 2  ;;  %v5224_v28 = vsel %vm607_vm1, %v1728_v7, %v1730_v22  ;;  %v1733_v15 = vrot.slane %v5077_v13, 2 }
 0x19a   : > { %v1735_v18 = vrot.slane %v5081_v42, 2  ;;  %v1737_v38 = vrot.slane %v5085_v2, 2  ;;  %v1738_v57 = vrot.slane %v5089_v51, 2  ;;  %v1814_v4 = vadd.f32 %v1704_v3, %v4903_v39 }
 0x19b   : > { %v1815_v20 = vadd.f32 %v1706_v36, %v4907_v54  ;;  %v1816_v26 = vadd.f32 %v1709_v0, %v4910_v40  ;;  %v1740_v6 = vrot.slane %v5093_v60, 2  ;;  %v1742_v33 = vrot.slane %v5097_v48, 2 }
 0x19c   : > { %v1743_v34 = vrot.slane %v5101_v11, 2  ;;  %v1817_v13 = vadd.f32 %v1711_v29, %v4913_v12  ;;  %v1847_v42 = vsel %vm1846_vm2, %v1814_v4, 0.0  ;;  %v5241_v39 = vsel %vm607_vm1, %v1732_v27, %v1733_v15 }
 0x19d   : > { %v1848_v2 = vsel %vm1846_vm2, %v1815_v20, 0.0  ;;  %v1850_v51 = vsel %vm1846_vm2, %v1816_v26, 0.0  ;;  %v5244_v54 = vsel %vm607_vm1, %v1733_v15, %v1735_v18  ;;  %v1745_v40 = vrot.slane %v5105_v31, 2 }
 0x19e   : > { %v1849_v60 = vadd.f32 %v1848_v2, %v1847_v42  ;;  %v1747_v48 = vrot.slane %v5109_v23, 2  ;;  %v1748_v11 = vrot.slane %v5113_v9, 2  ;;  %v1818_v12 = vadd.f32 %v1714_v32, %v4916_v44 }
 0x19f   : > { %v1852_v37 = vsel %vm1846_vm2, %v1817_v13, 0.0  ;;  %v5252_v50 = vsel %vm607_vm1, %v1737_v38, %v1738_v57  ;;  %v5255_v61 = vsel %vm607_vm1, %v1738_v57, %v1740_v6  ;;  %v1750_v8 = vrot.slane %v5117_v56, 2 }
 0x1a0   : > { %v1851_v7 = vadd.f32 %v1850_v51, %v1849_v60  ;;  %v5259_v31 = vsel %vm607_vm1, %v1742_v33, %v1743_v34  ;;  %v1752_v23 = vrot.slane %v5121_v41, 2  ;;  %v1819_v9 = vadd.f32 %v1716_v17, %v4919_v47 }
 0x1a1   : > { %v1854_v44 = vsel %vm1846_vm2, %v1818_v12, 0.0  ;;  %v5265_v58 = vsel %vm607_vm1, %v1743_v34, %v1745_v40  ;;  %v1753_v22 = vrot.slane %v5125_v25, 2  ;;  %v1755_v3 = vrot.slane %v5129_v53, 2 }
 0x1a2   : > { %v1853_v36 = vadd.f32 %v1852_v37, %v1851_v7  ;;  %v5270_v56 = vsel %vm607_vm1, %v1747_v48, %v1748_v11  ;;  %v1757_v0 = vrot.slane %v5133_v14, 2  ;;  %v1820_v29 = vadd.f32 %v1719_v10, %v4922_v30 }
 0x1a3   : > { %v1856_v41 = vsel %vm1846_vm2, %v1819_v9, 0.0  ;;  %v5276_v47 = vsel %vm607_vm1, %v1748_v11, %v1750_v8  ;;  %v1758_v17 = vrot.slane %v5137_v5, 2  ;;  %v1760_v32 = vrot.slane %v5141_v52, 2 }
 0x1a4   : > { %v1855_v25 = vadd.f32 %v1854_v44, %v1853_v36  ;;  %v1821_v53 = vadd.f32 %v1721_v46, %v4925_v19  ;;  %v1858_v27 = vsel %vm1846_vm2, %v1820_v29, 0.0  ;;  %v1918_v15 = vmul.f32 %v1814_v4, %v1814_v4  ;;  %v6377_v44 = vld [vmem:[#allocation28_spill] sm:$0xff]  ;;  %v6378_v36 = vld [vmem:[#allocation37_spill] sm:$0xff] }
 0x1a5   : > { %v1919_v18 = vmul.f32 %v1815_v20, %v1815_v20  ;;  %v5283_v14 = vsel %vm607_vm1, %v1752_v23, %v1753_v22  ;;  %v5286_v30 = vsel %vm607_vm1, %v1753_v22, %v1755_v3  ;;  %v1920_v38 = vmul.f32 %v1816_v26, %v1816_v26 }
 0x1a6   : > { %v1857_v10 = vadd.f32 %v1856_v41, %v1855_v25  ;;  %v1762_v57 = vrot.slane %v5145_v24, 2  ;;  %v1822_v5 = vadd.f32 %v1724_v55, %v4928_v59  ;;  %v1860_v52 = vsel %vm1846_vm2, %v1821_v53, 0.0  ;;  %v6380_v25 = vld [vmem:[#allocation13_spill] sm:$0xff] }
 0x1a7   : > { %v1921_v6 = vmul.f32 %v1817_v13, %v1817_v13  ;;  %v5292_v19 = vsel %vm607_vm1, %v1757_v0, %v1758_v17  ;;  %v1763_v46 = vrot.slane %v5149_v62, 2  ;;  %v1823_v4 = vadd.f32 %v1726_v21, %v4931_v35 }
 0x1a8   : > { %v1859_v20 = vadd.f32 %v1858_v27, %v1857_v10  ;;  %v1862_v33 = vsel %vm1846_vm2, %v1822_v5, 0.0  ;;  %v1922_v34 = vmul.f32 %v1818_v12, %v1818_v12  ;;  %v1950_v26 = vsel %vm1846_vm2, %v1918_v15, 0.0 }
 0x1a9   : > { %v1951_v42 = vsel %vm1846_vm2, %v1919_v18, 0.0  ;;  %v5300_v59 = vsel %vm607_vm1, %v1758_v17, %v1760_v32  ;;  %v1953_v2 = vsel %vm1846_vm2, %v1920_v38, 0.0  ;;  %v1824_v51 = vadd.f32 %v5220_v43, %v4934_v16  ;;  %v6376_v16 = vld [vmem:[#allocation27_spill] sm:$0xff]  ;;  %v6381_v18 = vld [vmem:[#allocation32_spill] sm:$0xff] }
 0x1aa   : > { %v1861_v55 = vadd.f32 %v1860_v52, %v1859_v20  ;;  %v1952_v13 = vadd.f32 %v1951_v42, %v1950_v26  ;;  %v1864_v35 = vsel %vm1846_vm2, %v1823_v4, 0.0  ;;  %v1923_v21 = vmul.f32 %v1819_v9, %v1819_v9  ;;  %v6383_v26 = vld [vmem:[#allocation20_spill] sm:$0xff] }
 0x1ab   : > { %v1955_v40 = vsel %vm1846_vm2, %v1921_v6, 0.0  ;;  %v1765_v60 = vrot.slane %v5153_v49, 2  ;;  %v1767_v48 = vrot.slane %v5157_v1, 2  ;;  %v1825_v37 = vadd.f32 %v5224_v28, %v4937_v63  ;;  %v6379_v63 = vld [vmem:[#allocation33_spill] sm:$0xff] }
 0x1ac   : > { %v1863_v11 = vadd.f32 %v1862_v33, %v1861_v55  ;;  %v1954_v12 = vadd.f32 %v1953_v2, %v1952_v13  ;;  %v1866_v8 = vsel %vm1846_vm2, %v1824_v51, 0.0  ;;  %v1924_v7 = vmul.f32 %v1820_v29, %v1820_v29 }
 0x1ad   : > { %v1957_v23 = vsel %vm1846_vm2, %v1922_v34, 0.0  ;;  %v1772_v43 = vrot.slane %v6376_v16, 2  ;;  %v1773_v9 = vrot.slane %v6377_v44, 2  ;;  %v1826_v0 = vadd.f32 %v5241_v39, %v6378_v36  ;;  %v6382_v39 = vld [vmem:[#allocation14_spill] sm:$0xff] }
 0x1ae   : > { %v1865_v22 = vadd.f32 %v1864_v35, %v1863_v11  ;;  %v1956_v3 = vadd.f32 %v1955_v40, %v1954_v12  ;;  %v1868_v41 = vsel %vm1846_vm2, %v1825_v37, 0.0  ;;  %v1925_v17 = vmul.f32 %v1821_v53, %v1821_v53  ;;  %v6384_v40 = vld [vmem:[#allocation21_spill] sm:$0xff] }
 0x1af   : > { %v1959_v32 = vsel %vm1846_vm2, %v1923_v21, 0.0  ;;  %v1775_v28 = vrot.slane %v6379_v63, 2  ;;  %v1777_v29 = vrot.slane %v6380_v25, 2  ;;  %v1827_v10 = vadd.f32 %v5244_v54, %v6381_v18 }
 0x1b0   : > { %v1867_v27 = vadd.f32 %v1866_v8, %v1865_v22  ;;  %v1958_v15 = vadd.f32 %v1957_v23, %v1956_v3  ;;  %v1870_v38 = vsel %vm1846_vm2, %v1826_v0, 0.0  ;;  %v1926_v52 = vmul.f32 %v1822_v5, %v1822_v5 }
 0x1b1   : > { %v1961_v6 = vsel %vm1846_vm2, %v1924_v7, 0.0  ;;  %v1778_v20 = vrot.slane %v6382_v39, 2  ;;  %v1780_v53 = vrot.slane %v5206_v45, 2  ;;  %v1828_v42 = vadd.f32 %v5252_v50, %v6383_v26  ;;  %v6385_v7 = vld [vmem:[#allocation22_spill] sm:$0xff] }
 0x1b2   : > { %v1869_v33 = vadd.f32 %v1868_v41, %v1867_v27  ;;  %v1960_v34 = vadd.f32 %v1959_v32, %v1958_v15  ;;  %v1872_v55 = vsel %vm1846_vm2, %v1827_v10, 0.0  ;;  %v1927_v13 = vmul.f32 %v1823_v4, %v1823_v4  ;;  %v6388_v32 = vld [vmem:[#allocation39_spill] sm:$0xff]  ;;  %v6390_v27 = vld [vmem:[#allocation40_spill] sm:$0xff] }
 0x1b3   : > { %v1963_v2 = vsel %vm1846_vm2, %v1925_v17, 0.0  ;;  %v1774_v54 = vsel %vm607_vm1, %v1772_v43, %v1773_v9  ;;  %v1776_v5 = vsel %vm607_vm1, %v1773_v9, %v1775_v28  ;;  %v1829_v11 = vadd.f32 %v5255_v61, %v6384_v40  ;;  %v6386_v43 = vld [vmem:[#allocation43_spill] sm:$0xff] }
 0x1b4   : > { %v1871_v35 = vadd.f32 %v1870_v38, %v1869_v33  ;;  %v1962_v21 = vadd.f32 %v1961_v6, %v1960_v34  ;;  %v1874_v45 = vsel %vm1846_vm2, %v1828_v42, 0.0  ;;  %v1928_v12 = vmul.f32 %v1824_v51, %v1824_v51  ;;  %v6387_v51 = vld [vmem:[#allocation24_spill] sm:$0xff] }
 0x1b5   : > { %v1965_v8 = vsel %vm1846_vm2, %v1926_v52, 0.0  ;;  %v1779_v50 = vsel %vm607_vm1, %v1777_v29, %v1778_v20  ;;  %v1830_v4 = vadd.f32 %v5259_v31, %v6385_v7  ;;  %v5341_v44 = vadd.f32 %v1774_v54, %v6386_v43  ;;  %v6389_v29 = vld [vmem:[#allocation25_spill] sm:$0xff] }
 0x1b6   : > { %v1873_v23 = vadd.f32 %v1872_v55, %v1871_v35  ;;  %v1964_v16 = vadd.f32 %v1963_v2, %v1962_v21  ;;  %v1876_v9 = vsel %vm1846_vm2, %v1829_v11, 0.0  ;;  %v1929_v22 = vmul.f32 %v1825_v37, %v1825_v37  ;;  %v6393_v2 = vld [vmem:[#allocation29_spill] sm:$0xff] }
 0x1b7   : > { %v1967_v61 = vsel %vm1846_vm2, %v1927_v13, 0.0  ;;  %v1781_v3 = vsel %vm607_vm1, %v1778_v20, %v1780_v53  ;;  %v1831_v36 = vadd.f32 %v5265_v58, %v6387_v51  ;;  %v5349_v63 = vadd.f32 %v1776_v5, %v6388_v32  ;;  %v6391_v20 = vld [vmem:[#allocation26_spill] sm:$0xff]  ;;  %v6392_v53 = vld [vmem:[#allocation52_spill] sm:$0xff] }
 0x1b8   : > { %v1875_v41 = vadd.f32 %v1874_v45, %v1873_v23  ;;  %v1966_v17 = vadd.f32 %v1965_v8, %v1964_v16  ;;  %v1878_v31 = vsel %vm1846_vm2, %v1830_v4, 0.0  ;;  %v1930_v28 = vmul.f32 %v1826_v0, %v1826_v0  ;;  %v6396_v32 = vld [vmem:[#allocation82_spill] sm:$0xff] }
 0x1b9   : > { %v1969_v25 = vsel %vm1846_vm2, %v1928_v12, 0.0  ;;  %v1832_v37 = vadd.f32 %v5270_v56, %v6389_v29  ;;  %v5356_v15 = vadd.f32 %v1779_v50, %v6390_v27  ;;  %v1880_v58 = vsel %vm1846_vm2, %v1831_v36, 0.0  ;;  %v6394_v12 = vld [vmem:[#allocation30_spill] sm:$0xff] }
 0x1ba   : > { %v1877_v18 = vadd.f32 %v1876_v9, %v1875_v41  ;;  %v1968_v38 = vadd.f32 %v1967_v61, %v1966_v17  ;;  %v1931_v52 = vmul.f32 %v1827_v10, %v1827_v10  ;;  %v1946_v6 = vmul.f32 %v5341_v44, %v5341_v44 }
 0x1bb   : > { %v1971_v39 = vsel %vm1846_vm2, %v1929_v22, 0.0  ;;  %v1833_v0 = vadd.f32 %v5276_v47, %v6391_v20  ;;  %v5365_v33 = vadd.f32 %v1781_v3, %v6392_v53  ;;  %v1882_v26 = vsel %vm1846_vm2, %v1832_v37, 0.0 }
 0x1bc   : > { %v1879_v56 = vadd.f32 %v1878_v31, %v1877_v18  ;;  %v1970_v34 = vadd.f32 %v1969_v25, %v1968_v38  ;;  %v1932_v55 = vmul.f32 %v1828_v42, %v1828_v42  ;;  %v1947_v13 = vmul.f32 %v5349_v63, %v5349_v63  ;;  %v6398_v38 = vld [vmem:[#allocation23_spill] sm:$0xff] }
 0x1bd   : > { %v1973_v10 = vsel %vm1846_vm2, %v1930_v28, 0.0  ;;  %v1834_v54 = vadd.f32 %v5283_v14, %v6393_v2  ;;  %v1884_v35 = vsel %vm1846_vm2, %v1833_v0, 0.0  ;;  %v1933_v21 = vmul.f32 %v1829_v11, %v1829_v11  ;;  %v6397_v28 = vld [vmem:[#allocation38_spill] sm:$0xff] }
 0x1be   : > { %v1881_v5 = vadd.f32 %v1880_v58, %v1879_v56  ;;  %v1972_v47 = vadd.f32 %v1971_v39, %v1970_v34  ;;  %v1948_v40 = vmul.f32 %v5356_v15, %v5356_v15  ;;  %v1975_v45 = vsel %vm1846_vm2, %v1931_v52, 0.0  ;;  %v6400_v56 = vld [vmem:[#allocation12_spill] sm:$0xff] }
 0x1bf   : > { %v5378_v42 = vsel %vm1846_vm2, %v1946_v6, 0.0  ;;  %v1835_v8 = vadd.f32 %v5286_v30, %v6394_v12  ;;  %v1886_v7 = vsel %vm1846_vm2, %v1834_v54, 0.0  ;;  %v1934_v23 = vmul.f32 %v1830_v4, %v1830_v4  ;;  %v6395_v30 = vld [vmem:[#allocation31_spill] sm:$0xff]  ;;  %v6399_v6 = vld [vmem:[#allocation34_spill] sm:$0xff]  ;;  %v6401_v34 = vld [vmem:[#allocation36_spill] sm:$0xff] }
 0x1c0   : > { %v1883_v50 = vadd.f32 %v1882_v26, %v1881_v5  ;;  %v1974_v14 = vadd.f32 %v1973_v10, %v1972_v47  ;;  %v1949_v16 = vmul.f32 %v5365_v33, %v5365_v33  ;;  %v1977_v11 = vsel %vm1846_vm2, %v1932_v55, 0.0  ;;  %v6403_v47 = vld [vmem:[#allocation35_spill] sm:$0xff] }
 0x1c1   : > { %v5387_v43 = vsel %vm1846_vm2, %v1947_v13, 0.0  ;;  %v1764_v9 = vsel %vm607_vm1, %v1762_v57, %v1763_v46  ;;  %v1836_v22 = vadd.f32 %v5292_v19, %v6395_v30  ;;  %v1888_v4 = vsel %vm1846_vm2, %v1835_v8, 0.0 }
 0x1c2   : > { %v1885_v61 = vadd.f32 %v1884_v35, %v1883_v50  ;;  %v1976_v3 = vadd.f32 %v1975_v45, %v1974_v14  ;;  %v1935_v51 = vmul.f32 %v1831_v36, %v1831_v36  ;;  %v1979_v41 = vsel %vm1846_vm2, %v1933_v21, 0.0 }
 0x1c3   : > { %v5399_v17 = vsel %vm1846_vm2, %v1948_v40, 0.0  ;;  %v1768_v31 = vrot.slane %v6396_v32, 2  ;;  %v1837_v24 = vadd.f32 %v5300_v59, %v6397_v28  ;;  %v1890_v29 = vsel %vm1846_vm2, %v1836_v22, 0.0 }
 0x1c4   : > { %v1887_v25 = vadd.f32 %v1886_v7, %v1885_v61  ;;  %v1978_v57 = vadd.f32 %v1977_v11, %v1976_v3  ;;  %v1936_v19 = vmul.f32 %v1832_v37, %v1832_v37  ;;  %v1981_v27 = vsel %vm1846_vm2, %v1934_v23, 0.0 }
 0x1c5   : > { %v5407_v18 = vsel %vm1846_vm2, %v1949_v16, 0.0  ;;  %v1766_v36 = vsel %vm607_vm1, %v1763_v46, %v1765_v60  ;;  %v1770_v58 = vrot.slane %v6398_v38, 2  ;;  %v1838_v39 = vadd.f32 %v1764_v9, %v6399_v6  ;;  %v6402_v60 = vld [vmem:[#allocation11_spill] sm:$0xff] }
 0x1c6   : > { %v1889_v52 = vadd.f32 %v1888_v4, %v1887_v25  ;;  %v1980_v59 = vadd.f32 %v1979_v41, %v1978_v57  ;;  %v1892_v20 = vsel %vm1846_vm2, %v1837_v24, 0.0  ;;  %v1937_v37 = vmul.f32 %v1833_v0, %v1833_v0 }
 0x1c7   : > { %v1983_v53 = vsel %vm1846_vm2, %v1935_v51, 0.0  ;;  %v1600_v26 = vadd.f32 %v6401_v34, %v6400_v56  ;;  %v1769_v62 = vsel %vm607_vm1, %v1767_v48, %v1768_v31  ;;  %v1839_v55 = vadd.f32 %v1766_v36, %v6402_v60 }
 0x1c8   : > { %v1891_v49 = vadd.f32 %v1890_v29, %v1889_v52  ;;  %v1982_v46 = vadd.f32 %v1981_v27, %v1980_v59  ;;  %v1894_v13 = vsel %vm1846_vm2, %v1838_v39, 0.0  ;;  %v1938_v10 = vmul.f32 %v1834_v54, %v1834_v54 }
 0x1c9   : > { %v1985_v2 = vsel %vm1846_vm2, %v1936_v19, 0.0  ;;  %v1771_v0 = vsel %vm607_vm1, %v1768_v31, %v1770_v58  ;;  %v1840_v21 = vadd.f32 %v1769_v62, %v6403_v47  ;;  %v1896_v40 = vsel %vm1846_vm2, %v1839_v55, 0.0 }
 0x1ca   : > { %v1893_v5 = vadd.f32 %v1892_v20, %v1891_v49  ;;  %v1984_v35 = vadd.f32 %v1983_v53, %v1982_v46  ;;  %v1939_v1 = vmul.f32 %v1835_v8, %v1835_v8  ;;  %v1987_v48 = vsel %vm1846_vm2, %v1937_v37, 0.0 }
 0x1cb   : > { %v1841_v50 = vadd.f32 %v1771_v0, %v1600_v26  ;;  %v1898_v7 = vsel %vm1846_vm2, %v1840_v21, 0.0  ;;  %v1940_v14 = vmul.f32 %v1836_v22, %v1836_v22  ;;  %v1989_v54 = vsel %vm1846_vm2, %v1938_v10, 0.0 }
 0x1cc   : > { %v1895_v45 = vadd.f32 %v1894_v13, %v1893_v5  ;;  %v1986_v12 = vadd.f32 %v1985_v2, %v1984_v35  ;;  %v1941_v9 = vmul.f32 %v1837_v24, %v1837_v24  ;;  %v1991_v30 = vsel %vm1846_vm2, %v1939_v1, 0.0 }
 0x1cd   : > { %v1900_v11 = vsel %vm1846_vm2, %v1841_v50, 0.0  ;;  %v1902_v8 = vsel %vm1846_vm2, %v5341_v44, 0.0  ;;  %v1942_v4 = vmul.f32 %v1838_v39, %v1838_v39  ;;  %v1993_v51 = vsel %vm1846_vm2, %v1940_v14, 0.0 }
 0x1ce   : > { %v1897_v23 = vadd.f32 %v1896_v40, %v1895_v45  ;;  %v1988_v16 = vadd.f32 %v1987_v48, %v1986_v12  ;;  %v1904_v22 = vsel %vm1846_vm2, %v5349_v63, 0.0  ;;  %v1943_v31 = vmul.f32 %v1839_v55, %v1839_v55 }
 0x1cf   : > { %v1995_v28 = vsel %vm1846_vm2, %v1941_v9, 0.0  ;;  %v1906_v57 = vsel %vm1846_vm2, %v5356_v15, 0.0  ;;  %v1944_v29 = vmul.f32 %v1840_v21, %v1840_v21  ;;  %v1997_v44 = vsel %vm1846_vm2, %v1942_v4, 0.0 }
 0x1d0   : > { %v1899_v61 = vadd.f32 %v1898_v7, %v1897_v23  ;;  %v1990_v3 = vadd.f32 %v1989_v54, %v1988_v16  ;;  %v1908_v36 = vsel %vm1846_vm2, %v5365_v33, 0.0  ;;  %v1945_v38 = vmul.f32 %v1841_v50, %v1841_v50 }
 0x1d1   : > { %v1999_v63 = vsel %vm1846_vm2, %v1943_v31, 0.0  ;;  %v2001_v59 = vsel %vm1846_vm2, %v1944_v29, 0.0 }
 0x1d2   : > { %v1901_v41 = vadd.f32 %v1900_v11, %v1899_v61  ;;  %v1992_v32 = vadd.f32 %v1991_v30, %v1990_v3  ;;  %v2003_v15 = vsel %vm1846_vm2, %v1945_v38, 0.0 }
 0x1d4   : > { %v1903_v25 = vadd.f32 %v1902_v8, %v1901_v41  ;;  %v1994_v24 = vadd.f32 %v1993_v51, %v1992_v32 }
 0x1d6   : > { %v1905_v19 = vadd.f32 %v1904_v22, %v1903_v25  ;;  %v1996_v27 = vadd.f32 %v1995_v28, %v1994_v24 }
 0x1d8   : > { %v1907_v58 = vadd.f32 %v1906_v57, %v1905_v19  ;;  %v1998_v52 = vadd.f32 %v1997_v44, %v1996_v27 }
 0x1da   : > { %v1909_v6 = vadd.f32 %v1908_v36, %v1907_v58  ;;  %v2000_v39 = vadd.f32 %v1999_v63, %v1998_v52 }
 0x1dc   : > { %v1910_v20 = vrot.slane %v1909_v6, 4  ;;  %v2002_v37 = vadd.f32 %v2001_v59, %v2000_v39 }
 0x1de   : > { %v1911_v53 = vadd.f32 %v1910_v20, %v1909_v6  ;;  %v2004_v56 = vadd.f32 %v2003_v15, %v2002_v37 }
 0x1e0   : > { %v1912_v33 = vrot.slane %v1911_v53, 2  ;;  %v2006_v34 = vadd.f32 %v5378_v42, %v2004_v56 }
 0x1e2   : > { %v1913_v26 = vadd.f32 %v1912_v33, %v1911_v53  ;;  %v2008_v62 = vadd.f32 %v5387_v43, %v2006_v34 }
 0x1e4   : > { %v1914_v49 = vrot.slane %v1913_v26, 1  ;;  %v2010_v46 = vadd.f32 %v5399_v17, %v2008_v62 }
 0x1e6   : > { %v1915_v60 = vadd.f32 %v1914_v49, %v1913_v26  ;;  %v2012_v55 = vadd.f32 %v5407_v18, %v2010_v46 }
 0x1e8   : > { %1917 = vst.msk [vmem:[%s166_s17] sm:$0x1] %vm1916_vm3, %v1915_v60  ;;  %v2013_v42 = vrot.slane %v2012_v55, 4 }
 0x1e9   : > { %2260 = shalt.err (!%p2257_p3)
}
 0x1ea   : > { %2141 = dma.vmem_to_hbm [thread:$0]  (%p2387_p5), %s2036_s19, 16, %s2038_s20, %s2021_s24   ;;  %v2014_v43 = vadd.f32 %v2013_v42, %v2012_v55 }
 0x1eb   : > { %s2046_s7 = scalar_lea.hbm %s5509_s3, %s2370_s16  ;;  %s172_s9 = scalar_lea.vmem [#allocation4], %s5449_s8 }
 0x1ec   : > { %v2015_v17 = vrot.slane %v2014_v43, 2  ;;  %s2048_s10 = sshll.u32 %s172_s9, 4  ;;  %s2050_s11 = sshll.u32 %s2046_s7, 4  ;;  %s2049_s10 = int_to_ptr.vmem [resolvable:$true] %s2048_s10  ;;  %s2051_s11 = int_to_ptr.hbm [resolvable:$true] %s2050_s11 }
 0x1ed   : > { %s2025_s17 = scalar_lea.sflag [#allocation5], %s5449_s8  ;;  %s2275_s25 = sshra.s32 %s2051_s11, 4  ;;  %s2276_s25 = int_to_ptr.hbm [resolvable:$true] %s2275_s25 }
 0x1ee   : > { %v2016_v18 = vadd.f32 %v2015_v17, %v2014_v43  ;;  %s2277_s19 = scalar_lea.hbm %s2276_s25, 1  ;;  %s2281_s24 = scalar_lea.hbm %s5509_s3, 2 }
 0x1ef   : > { %p2278_p4 = scmp.ne.s32.totalorder %s2276_s25, %s2277_s19  ;;  %p2282_p9 = scmp.lt.s32.totalorder %s2276_s25, %s5509_s3 }
 0x1f0   : > { %v2017_v13 = vrot.slane %v2016_v18, 1  ;;  %p2283_p10 = scmp.lt.s32.totalorder %s2281_s24, %s2277_s19 }
 0x1f1   : > { %p2279_p7 = pnand %p2278_p4, %p2387_p5 }
 0x1f2   : > { %v2018_v10 = vadd.f32 %v2017_v13, %v2016_v18  ;;  %p2284_p11 = por %p2283_p10, %p2282_p9 }
 0x1f3   : > { %p2280_p8 = pneg %p2279_p7 }
 0x1f4   : > { %2019 = vst.msk [vmem:[%s172_s9] sm:$0x1] %vm1916_vm3, %v2018_v10 }
 0x1f5   : > { %p2285_p12 = pnand %p2284_p11, %p2280_p8 }
 0x1f7   : > { %2288 = shalt.err (!%p2285_p12)
}
 0x1f8   : > { %2142 = dma.vmem_to_hbm [thread:$0]  (%p2387_p5), %s2049_s10, 16, %s2051_s11, %s2025_s17  }
 0x1f9 PF: > { %p2152_p13 = scmp.ge.s32.totalorder %s2327_s15, 2  ;;  %s2062_s8 = sand.u32 1, %s2315_s12  }
 0x1fa   : > { %s2063_s28 = scalar_lea.sflag [#allocation3], %s2062_s8 }
 0x1fb   : > { %p2146_p0 = pnand %p2152_p13, %p2391_p6 }
 0x1fd   : > { %p2147_p1 = pneg %p2146_p0 }
 0x1ff   : > { %2306 = dma.done.wait (%p2147_p1), %s2063_s28, 16  }
 0x200   : > { %2308 = vsyncadd (%p2147_p1), %s2063_s28, 4294967280  ;;  %s2072_s29 = scalar_lea.sflag [#allocation5], %s2062_s8 }
 0x201   : > { %2310 = dma.done.wait (%p2147_p1), %s2072_s29, 16  }
 0x202   : > { %2312 = vsyncadd (%p2147_p1), %s2072_s29, 4294967280  ;;  %p17_p5 = scmp.ge.s32.totalorder %s2374_s18, 4   ;;  %s6404_s12 = smov %s2319_s13 }
 0x203   : > { %s6405_s13 = smov %s2323_s14  ;;  %s6406_s14 = smov %s2385_s21 }
 0x204   : > { %s6407_s15 = smov %s2374_s18  ;;  %19 = sbr.rel (!%p17_p5) target bundleno = 5 (0x5), region = 80 }
 0x209   :  { %2077 = vsyncpa [#allocation3], 1 }
 0x20a   :  { %2079 = vsyncpa [#allocation3 + $0x1], 1 }
 0x20b   :  { %2080 = vsyncpa [#allocation5], 1 }
 0x20c   :  { %2082 = vsyncpa [#allocation5 + $0x1], 1 }

</bundles_post_ra>
